<compile_context>
chip_gen: v5e
topology: v5e:2x2
jax: 0.10.0
libtpu: 0.0.40
codegen_flags: <defaults>
</compile_context>

<pallas_src>
import functools

import jax
import jax.numpy as jnp
from jax.experimental import pallas as pl
from jax.experimental.pallas import tpu as pltpu


# ----------------------------------------------------------------------------
# Fused ResBlock kernel (n_blk NCHW images per grid step)
# ----------------------------------------------------------------------------
def _resblock_kernel(x_ref, w1_ref, b1_ref, w2_ref, b2_ref, o_ref,
                     pad_ref, patches_ref, *, H, W, n_blk):
    """Fused ResBlock.

    x_ref       : (n_blk, C, H*W)        f32  raw NCHW bytes
    w1_ref      : (9*C, Cmid)            bf16 im2col-flattened 3x3 conv weights
    b1_ref      : (1, Cmid)              f32
    w2_ref      : (Cmid, C)              bf16 1x1 conv weights
    b2_ref      : (1, C)                 f32
    o_ref       : (n_blk, C, H*W)        f32  NCHW-byte-order output
    pad_ref     : (n_blk, H+2, W+2, C)   bf16 VMEM halo scratch
    patches_ref : (n_blk*H*W, 9*C)       bf16 VMEM im2col scratch
    """
    C = x_ref.shape[1]
    M = n_blk * H * W

    # relu(input) in f32 -- this is also the residual (inplace ReLU rewrites x).
    r = jnp.maximum(x_ref[...], 0.0)                       # (n_blk, C, H*W) f32

    # NCHW -> NHWC inside the kernel (XLU has slack here), cast once to bf16,
    # write into the zero-halo scratch.  Halo stays zero == relu(0).
    r_hwc = jnp.transpose(r, (0, 2, 1))                    # (n_blk, H*W, C) f32
    pad_ref[...] = jnp.zeros_like(pad_ref)
    pad_ref[:, 1:H + 1, 1:W + 1, :] = (
        r_hwc.reshape(n_blk, H, W, C).astype(pad_ref.dtype))

    # im2col: scatter the 9 shifted taps (bf16) into the patches scratch.
    for kh in range(3):
        for kw in range(3):
            t = kh * 3 + kw
            tap = pad_ref[:, kh:kh + H, kw:kw + W, :].reshape(M, C)
            patches_ref[:, t * C:(t + 1) * C] = tap

    # conv3x3 as ONE MXU matmul (K = 9*C), + bias + relu, f32 accumulation.
    h = jnp.dot(patches_ref[...], w1_ref[...],
                preferred_element_type=jnp.float32)        # (M, Cmid) f32
    h = jnp.maximum(h + b1_ref[...], 0.0)

    # conv1x1 + bias.
    out = jnp.dot(h.astype(w2_ref.dtype), w2_ref[...],
                  preferred_element_type=jnp.float32) + b2_ref[...]  # (M, C) f32

    # Back to NCHW byte order, residual add (f32), lane-dense store.
    out = jnp.transpose(out.reshape(n_blk, H * W, C), (0, 2, 1))
    o_ref[...] = (out + r).astype(o_ref.dtype)


# ----------------------------------------------------------------------------
# Parameter init (PyTorch-default-like) + one-time layout transforms
# ----------------------------------------------------------------------------
def init_resblock(key, in_channel, channel):
    """Returns (pallas_params, torch_params)."""
    k1w, k1b, k2w, k2b = jax.random.split(key, 4)
    bound1 = 1.0 / (in_channel * 9) ** 0.5
    w1 = jax.random.uniform(k1w, (channel, in_channel, 3, 3), jnp.float32,
                            -bound1, bound1)
    b1 = jax.random.uniform(k1b, (channel,), jnp.float32, -bound1, bound1)
    bound2 = 1.0 / (channel * 1) ** 0.5
    w2 = jax.random.uniform(k2w, (in_channel, channel, 1, 1), jnp.float32,
                            -bound2, bound2)
    b2 = jax.random.uniform(k2b, (in_channel,), jnp.float32, -bound2, bound2)
    torch_params = (w1, b1, w2, b2)

    # Done once, outside the forward path: OIHW -> (KH,KW,Cin,Cout) -> flat.
    # Row order (kh*3+kw)*Cin + cin matches the kernel's patch scatter order.
    w1_mat = jnp.transpose(w1, (2, 3, 1, 0)).reshape(
        9 * in_channel, channel).astype(jnp.bfloat16)
    w2_mat = jnp.transpose(w2, (2, 3, 1, 0)).reshape(
        channel, in_channel).astype(jnp.bfloat16)
    b1_row = b1.reshape(1, channel).astype(jnp.float32)
    b2_row = b2.reshape(1, in_channel).astype(jnp.float32)
    return (w1_mat, b1_row, w2_mat, b2_row), torch_params


# ----------------------------------------------------------------------------
# Forward (NCHW in / NCHW out) -- wrapper does only free reshapes
# ----------------------------------------------------------------------------
@functools.partial(jax.jit, static_argnames=("images_per_step",))
def resblock_forward(x_nchw, pallas_params, images_per_step=None):
    w1_mat, b1_row, w2_mat, b2_row = pallas_params
    N, C, H, W = x_nchw.shape
    Cmid = w1_mat.shape[-1]

    if images_per_step is None:
        # >= 2 grid steps keeps both v7x TensorCores busy; on single-TC
        # v5e/v6e pass images_per_step=N to amortize per-grid-step overhead.
        images_per_step = N // 2 if (N >= 2 and N % 2 == 0) else N
    assert N % images_per_step == 0
    n_blk = images_per_step
    steps = N // n_blk

    x_flat = x_nchw.reshape(N, C, H * W).astype(jnp.float32)  # byte-identical

    # VMEM budget from actual block + scratch sizes (+ headroom for temps).
    f32b, bf16b = 4, 2
    blk_io = 2 * (n_blk * C * H * W * f32b)                       # in + out
    blk_w = (9 * C * Cmid + Cmid * C) * bf16b + (Cmid + C) * f32b
    scr = (n_blk * (H + 2) * (W + 2) * C * bf16b
           + n_blk * H * W * 9 * C * bf16b)
    vmem_bytes = 2 * (blk_io + blk_w) + scr + (8 << 20)

    out_flat = pl.pallas_call(
        functools.partial(_resblock_kernel, H=H, W=W, n_blk=n_blk),
        out_shape=jax.ShapeDtypeStruct((N, C, H * W), jnp.float32),
        grid=(steps,),
        in_specs=[
            pl.BlockSpec((n_blk, C, H * W), lambda n: (n, 0, 0)),
            pl.BlockSpec((9 * C, Cmid), lambda n: (0, 0)),
            pl.BlockSpec((1, Cmid), lambda n: (0, 0)),
            pl.BlockSpec((Cmid, C), lambda n: (0, 0)),
            pl.BlockSpec((1, C), lambda n: (0, 0)),
        ],
        out_specs=pl.BlockSpec((n_blk, C, H * W), lambda n: (n, 0, 0)),
        scratch_shapes=[
            pltpu.VMEM((n_blk, H + 2, W + 2, C), jnp.bfloat16),
            pltpu.VMEM((n_blk * H * W, 9 * C), jnp.bfloat16),
        ],
        compiler_params=pltpu.CompilerParams(
            dimension_semantics=("parallel",),
            vmem_limit_bytes=int(vmem_bytes)),
    )(x_flat, w1_mat, b1_row, w2_mat, b2_row)

    return out_flat.reshape(N, C, H, W)                    # free, byte-identical


# ----------------------------------------------------------------------------
# Pure-JAX reference (f32) for validation
# ----------------------------------------------------------------------------
def resblock_forward_ref(x_nchw, torch_params):
    w1, b1, w2, b2 = torch_params
    x = x_nchw.astype(jnp.float32)
    r = jnp.maximum(x, 0.0)                   # inplace ReLU also rewrites residual
    h = jax.lax.conv_general_dilated(
        r, w1, (1, 1), [(1, 1), (1, 1)],
        dimension_numbers=("NCHW", "OIHW", "NCHW")) + b1[None, :, None, None]
    h = jnp.maximum(h, 0.0)
    y = jax.lax.conv_general_dilated(
        h, w2, (1, 1), [(0, 0), (0, 0)],
        dimension_numbers=("NCHW", "OIHW", "NCHW")) + b2[None, :, None, None]
    return y + r


# ----------------------------------------------------------------------------
if __name__ == "__main__":
    key = jax.random.PRNGKey(0)
    k_param, k_x = jax.random.split(key)

    # ResBlock(in_channel=32, channel=16) on a (2, 32, 16, 16) input.
    N, in_channel, channel, H, W = 2, 32, 16, 16, 16
    pallas_params, torch_params = init_resblock(k_param, in_channel, channel)
    x = jax.random.normal(k_x, (N, in_channel, H, W), jnp.float32)

    y = jax.block_until_ready(resblock_forward(x, pallas_params))
    assert y.shape == (N, in_channel, H, W), y.shape

    y_ref = jax.block_until_ready(resblock_forward_ref(x, torch_params))
    err = float(jnp.max(jnp.abs(y - y_ref)))
    # bf16 MXU operands vs pure-f32 reference: typical error ~1e-3.
    assert err < 2e-2, err

    print("KERNEL_OK")
</pallas_src>

<mosaic_0001>
module attributes {stable_mosaic.version = 11 : i64} {
  func.func @_resblock_kernel(%arg0: i32, %arg1: memref<1x32x256xf32, #tpu.memory_space<vmem>>, %arg2: memref<288x16xbf16, #tpu.memory_space<vmem>>, %arg3: memref<1x16xf32, #tpu.memory_space<vmem>>, %arg4: memref<16x32xbf16, #tpu.memory_space<vmem>>, %arg5: memref<1x32xf32, #tpu.memory_space<vmem>>, %arg6: memref<1x32x256xf32, #tpu.memory_space<vmem>>, %arg7: memref<1x18x18x32xbf16, #tpu.memory_space<vmem>>, %arg8: memref<256x288xbf16, #tpu.memory_space<vmem>>) attributes {dimension_semantics = [#tpu.dimension_semantics<parallel>], iteration_bounds = array<i64: 2>, scalar_prefetch = 0 : i64, scratch_operands = 2 : i64, tpu.core_type = #tpu.core_type<tc>, window_params = [{transform_indices = @transform_0, window_bounds = array<i64: 1, 32, 256>}, {pipeline_mode = #tpu.pipeline_mode<synchronous>, transform_indices = @transform_1, window_bounds = array<i64: 288, 16>}, {pipeline_mode = #tpu.pipeline_mode<synchronous>, transform_indices = @transform_2, window_bounds = array<i64: 1, 16>}, {pipeline_mode = #tpu.pipeline_mode<synchronous>, transform_indices = @transform_3, window_bounds = array<i64: 16, 32>}, {pipeline_mode = #tpu.pipeline_mode<synchronous>, transform_indices = @transform_4, window_bounds = array<i64: 1, 32>}, {transform_indices = @transform_5, window_bounds = array<i64: 1, 32, 256>}]} {
    %c0 = arith.constant 0 : index
    %c0_0 = arith.constant 0 : index
    %c0_1 = arith.constant 0 : index
    %0 = vector.load %arg1[%c0, %c0_0, %c0_1] : memref<1x32x256xf32, #tpu.memory_space<vmem>>, vector<1x32x256xf32>
    %cst = arith.constant 0.000000e+00 : f32
    %1 = vector.broadcast %cst : f32 to vector<1x32x256xf32>
    %2 = arith.maximumf %0, %1 : vector<1x32x256xf32>
    %3 = tpu.transpose %2, [0, 2, 1] : vector<1x32x256xf32> -> vector<1x256x32xf32>
    %cst_2 = arith.constant 0.000000e+00 : bf16
    %4 = vector.broadcast %cst_2 : bf16 to vector<1x18x18x32xbf16>
    %c0_3 = arith.constant 0 : index
    %c0_4 = arith.constant 0 : index
    %c0_5 = arith.constant 0 : index
    %c0_6 = arith.constant 0 : index
    %5 = vector.load %arg7[%c0_3, %c0_4, %c0_5, %c0_6] : memref<1x18x18x32xbf16, #tpu.memory_space<vmem>>, vector<1x18x18x32xbf16>
    tpu.vector_store %arg7[%c0_3, %c0_4, %c0_5, %c0_6], %4 {strides = array<i32>} : memref<1x18x18x32xbf16, #tpu.memory_space<vmem>>, vector<1x18x18x32xbf16>,
    %6 = vector.shape_cast %3 : vector<1x256x32xf32> to vector<1x16x16x32xf32>
    %7 = arith.truncf %6 : vector<1x16x16x32xf32> to vector<1x16x16x32xbf16>
    %c0_7 = arith.constant 0 : index
    %c1 = arith.constant 1 : index
    %c1_8 = arith.constant 1 : index
    %c0_9 = arith.constant 0 : index
    %8 = vector.load %arg7[%c0_7, %c1, %c1_8, %c0_9] : memref<1x18x18x32xbf16, #tpu.memory_space<vmem>>, vector<1x16x16x32xbf16>
    tpu.vector_store %arg7[%c0_7, %c1, %c1_8, %c0_9], %7 {strides = array<i32>} : memref<1x18x18x32xbf16, #tpu.memory_space<vmem>>, vector<1x16x16x32xbf16>,
    %c0_10 = arith.constant 0 : index
    %c0_11 = arith.constant 0 : index
    %c0_12 = arith.constant 0 : index
    %c0_13 = arith.constant 0 : index
    %9 = vector.load %arg7[%c0_10, %c0_11, %c0_12, %c0_13] : memref<1x18x18x32xbf16, #tpu.memory_space<vmem>>, vector<1x16x16x32xbf16>
    %10 = vector.shape_cast %9 : vector<1x16x16x32xbf16> to vector<256x32xbf16>
    %c0_14 = arith.constant 0 : index
    %c0_15 = arith.constant 0 : index
    %11 = vector.load %arg8[%c0_14, %c0_15] : memref<256x288xbf16, #tpu.memory_space<vmem>>, vector<256x32xbf16>
    tpu.vector_store %arg8[%c0_14, %c0_15], %10 {strides = array<i32>} : memref<256x288xbf16, #tpu.memory_space<vmem>>, vector<256x32xbf16>,
    %c0_16 = arith.constant 0 : index
    %c0_17 = arith.constant 0 : index
    %c1_18 = arith.constant 1 : index
    %c0_19 = arith.constant 0 : index
    %12 = vector.load %arg7[%c0_16, %c0_17, %c1_18, %c0_19] : memref<1x18x18x32xbf16, #tpu.memory_space<vmem>>, vector<1x16x16x32xbf16>
    %13 = vector.shape_cast %12 : vector<1x16x16x32xbf16> to vector<256x32xbf16>
    %c0_20 = arith.constant 0 : index
    %c32 = arith.constant 32 : index
    %14 = vector.load %arg8[%c0_20, %c32] : memref<256x288xbf16, #tpu.memory_space<vmem>>, vector<256x32xbf16>
    tpu.vector_store %arg8[%c0_20, %c32], %13 {strides = array<i32>} : memref<256x288xbf16, #tpu.memory_space<vmem>>, vector<256x32xbf16>,
    %c0_21 = arith.constant 0 : index
    %c0_22 = arith.constant 0 : index
    %c2 = arith.constant 2 : index
    %c0_23 = arith.constant 0 : index
    %15 = vector.load %arg7[%c0_21, %c0_22, %c2, %c0_23] : memref<1x18x18x32xbf16, #tpu.memory_space<vmem>>, vector<1x16x16x32xbf16>
    %16 = vector.shape_cast %15 : vector<1x16x16x32xbf16> to vector<256x32xbf16>
    %c0_24 = arith.constant 0 : index
    %c64 = arith.constant 64 : index
    %17 = vector.load %arg8[%c0_24, %c64] : memref<256x288xbf16, #tpu.memory_space<vmem>>, vector<256x32xbf16>
    tpu.vector_store %arg8[%c0_24, %c64], %16 {strides = array<i32>} : memref<256x288xbf16, #tpu.memory_space<vmem>>, vector<256x32xbf16>,
    %c0_25 = arith.constant 0 : index
    %c1_26 = arith.constant 1 : index
    %c0_27 = arith.constant 0 : index
    %c0_28 = arith.constant 0 : index
    %18 = vector.load %arg7[%c0_25, %c1_26, %c0_27, %c0_28] : memref<1x18x18x32xbf16, #tpu.memory_space<vmem>>, vector<1x16x16x32xbf16>
    %19 = vector.shape_cast %18 : vector<1x16x16x32xbf16> to vector<256x32xbf16>
    %c0_29 = arith.constant 0 : index
    %c96 = arith.constant 96 : index
    %20 = vector.load %arg8[%c0_29, %c96] : memref<256x288xbf16, #tpu.memory_space<vmem>>, vector<256x32xbf16>
    tpu.vector_store %arg8[%c0_29, %c96], %19 {strides = array<i32>} : memref<256x288xbf16, #tpu.memory_space<vmem>>, vector<256x32xbf16>,
    %c0_30 = arith.constant 0 : index
    %c1_31 = arith.constant 1 : index
    %c1_32 = arith.constant 1 : index
    %c0_33 = arith.constant 0 : index
    %21 = vector.load %arg7[%c0_30, %c1_31, %c1_32, %c0_33] : memref<1x18x18x32xbf16, #tpu.memory_space<vmem>>, vector<1x16x16x32xbf16>
    %22 = vector.shape_cast %21 : vector<1x16x16x32xbf16> to vector<256x32xbf16>
    %c0_34 = arith.constant 0 : index
    %c128 = arith.constant 128 : index
    %23 = vector.load %arg8[%c0_34, %c128] : memref<256x288xbf16, #tpu.memory_space<vmem>>, vector<256x32xbf16>
    tpu.vector_store %arg8[%c0_34, %c128], %22 {strides = array<i32>} : memref<256x288xbf16, #tpu.memory_space<vmem>>, vector<256x32xbf16>,
    %c0_35 = arith.constant 0 : index
    %c1_36 = arith.constant 1 : index
    %c2_37 = arith.constant 2 : index
    %c0_38 = arith.constant 0 : index
    %24 = vector.load %arg7[%c0_35, %c1_36, %c2_37, %c0_38] : memref<1x18x18x32xbf16, #tpu.memory_space<vmem>>, vector<1x16x16x32xbf16>
    %25 = vector.shape_cast %24 : vector<1x16x16x32xbf16> to vector<256x32xbf16>
    %c0_39 = arith.constant 0 : index
    %c160 = arith.constant 160 : index
    %26 = vector.load %arg8[%c0_39, %c160] : memref<256x288xbf16, #tpu.memory_space<vmem>>, vector<256x32xbf16>
    tpu.vector_store %arg8[%c0_39, %c160], %25 {strides = array<i32>} : memref<256x288xbf16, #tpu.memory_space<vmem>>, vector<256x32xbf16>,
    %c0_40 = arith.constant 0 : index
    %c2_41 = arith.constant 2 : index
    %c0_42 = arith.constant 0 : index
    %c0_43 = arith.constant 0 : index
    %27 = vector.load %arg7[%c0_40, %c2_41, %c0_42, %c0_43] : memref<1x18x18x32xbf16, #tpu.memory_space<vmem>>, vector<1x16x16x32xbf16>
    %28 = vector.shape_cast %27 : vector<1x16x16x32xbf16> to vector<256x32xbf16>
    %c0_44 = arith.constant 0 : index
    %c192 = arith.constant 192 : index
    %29 = vector.load %arg8[%c0_44, %c192] : memref<256x288xbf16, #tpu.memory_space<vmem>>, vector<256x32xbf16>
    tpu.vector_store %arg8[%c0_44, %c192], %28 {strides = array<i32>} : memref<256x288xbf16, #tpu.memory_space<vmem>>, vector<256x32xbf16>,
    %c0_45 = arith.constant 0 : index
    %c2_46 = arith.constant 2 : index
    %c1_47 = arith.constant 1 : index
    %c0_48 = arith.constant 0 : index
    %30 = vector.load %arg7[%c0_45, %c2_46, %c1_47, %c0_48] : memref<1x18x18x32xbf16, #tpu.memory_space<vmem>>, vector<1x16x16x32xbf16>
    %31 = vector.shape_cast %30 : vector<1x16x16x32xbf16> to vector<256x32xbf16>
    %c0_49 = arith.constant 0 : index
    %c224 = arith.constant 224 : index
    %32 = vector.load %arg8[%c0_49, %c224] : memref<256x288xbf16, #tpu.memory_space<vmem>>, vector<256x32xbf16>
    tpu.vector_store %arg8[%c0_49, %c224], %31 {strides = array<i32>} : memref<256x288xbf16, #tpu.memory_space<vmem>>, vector<256x32xbf16>,
    %c0_50 = arith.constant 0 : index
    %c2_51 = arith.constant 2 : index
    %c2_52 = arith.constant 2 : index
    %c0_53 = arith.constant 0 : index
    %33 = vector.load %arg7[%c0_50, %c2_51, %c2_52, %c0_53] : memref<1x18x18x32xbf16, #tpu.memory_space<vmem>>, vector<1x16x16x32xbf16>
    %34 = vector.shape_cast %33 : vector<1x16x16x32xbf16> to vector<256x32xbf16>
    %c0_54 = arith.constant 0 : index
    %c256 = arith.constant 256 : index
    %35 = vector.load %arg8[%c0_54, %c256] : memref<256x288xbf16, #tpu.memory_space<vmem>>, vector<256x32xbf16>
    tpu.vector_store %arg8[%c0_54, %c256], %34 {strides = array<i32>} : memref<256x288xbf16, #tpu.memory_space<vmem>>, vector<256x32xbf16>,
    %c0_55 = arith.constant 0 : index
    %c0_56 = arith.constant 0 : index
    %36 = vector.load %arg8[%c0_55, %c0_56] : memref<256x288xbf16, #tpu.memory_space<vmem>>, vector<256x288xbf16>
    %c0_57 = arith.constant 0 : index
    %c0_58 = arith.constant 0 : index
    %37 = vector.load %arg2[%c0_57, %c0_58] : memref<288x16xbf16, #tpu.memory_space<vmem>>, vector<288x16xbf16>
    %cst_59 = arith.constant dense<0.000000e+00> : vector<256x16xf32>
    %38 = tpu.matmul %36, %37, %cst_59 {dimension_numbers = #tpu.dot_dimension_numbers<[1], [0], [0], [1], [0, 0, 1, 1], [], []>} : vector<256x288xbf16>, vector<288x16xbf16>, vector<256x16xf32> -> vector<256x16xf32>
    %c0_60 = arith.constant 0 : index
    %c0_61 = arith.constant 0 : index
    %39 = vector.load %arg3[%c0_60, %c0_61] : memref<1x16xf32, #tpu.memory_space<vmem>>, vector<1x16xf32>
    %40 = vector.broadcast %39 : vector<1x16xf32> to vector<256x16xf32>
    %41 = arith.addf %38, %40 : vector<256x16xf32>
    %cst_62 = arith.constant 0.000000e+00 : f32
    %42 = vector.broadcast %cst_62 : f32 to vector<256x16xf32>
    %43 = arith.maximumf %41, %42 : vector<256x16xf32>
    %44 = arith.truncf %43 : vector<256x16xf32> to vector<256x16xbf16>
    %c0_63 = arith.constant 0 : index
    %c0_64 = arith.constant 0 : index
    %45 = vector.load %arg4[%c0_63, %c0_64] : memref<16x32xbf16, #tpu.memory_space<vmem>>, vector<16x32xbf16>
    %cst_65 = arith.constant dense<0.000000e+00> : vector<256x32xf32>
    %46 = tpu.matmul %44, %45, %cst_65 {dimension_numbers = #tpu.dot_dimension_numbers<[1], [0], [0], [1], [0, 0, 1, 1], [], []>} : vector<256x16xbf16>, vector<16x32xbf16>, vector<256x32xf32> -> vector<256x32xf32>
    %c0_66 = arith.constant 0 : index
    %c0_67 = arith.constant 0 : index
    %47 = vector.load %arg5[%c0_66, %c0_67] : memref<1x32xf32, #tpu.memory_space<vmem>>, vector<1x32xf32>
    %48 = vector.broadcast %47 : vector<1x32xf32> to vector<256x32xf32>
    %49 = arith.addf %46, %48 : vector<256x32xf32>
    %50 = vector.shape_cast %49 : vector<256x32xf32> to vector<1x256x32xf32>
    %51 = tpu.transpose %50, [0, 2, 1] : vector<1x256x32xf32> -> vector<1x32x256xf32>
    %52 = arith.addf %51, %2 : vector<1x32x256xf32>
    %c0_68 = arith.constant 0 : index
    %c0_69 = arith.constant 0 : index
    %c0_70 = arith.constant 0 : index
    %53 = vector.load %arg6[%c0_68, %c0_69, %c0_70] : memref<1x32x256xf32, #tpu.memory_space<vmem>>, vector<1x32x256xf32>
    tpu.vector_store %arg6[%c0_68, %c0_69, %c0_70], %52 {strides = array<i32>} : memref<1x32x256xf32, #tpu.memory_space<vmem>>, vector<1x32x256xf32>,
    return
  }
  func.func @transform_0(%arg0: i32) -> (i32, i32, i32) {
    %c0_i32 = arith.constant 0 : i32
    %c0_i32_0 = arith.constant 0 : i32
    %c0_i32_1 = arith.constant 0 : i32
    return %arg0, %c0_i32, %c0_i32_0 : i32, i32, i32
  }
  func.func @transform_1(%arg0: i32) -> (i32, i32) {
    %c0_i32 = arith.constant 0 : i32
    %c0_i32_0 = arith.constant 0 : i32
    %c0_i32_1 = arith.constant 0 : i32
    return %c0_i32, %c0_i32_0 : i32, i32
  }
  func.func @transform_2(%arg0: i32) -> (i32, i32) {
    %c0_i32 = arith.constant 0 : i32
    %c0_i32_0 = arith.constant 0 : i32
    %c0_i32_1 = arith.constant 0 : i32
    return %c0_i32, %c0_i32_0 : i32, i32
  }
  func.func @transform_3(%arg0: i32) -> (i32, i32) {
    %c0_i32 = arith.constant 0 : i32
    %c0_i32_0 = arith.constant 0 : i32
    %c0_i32_1 = arith.constant 0 : i32
    return %c0_i32, %c0_i32_0 : i32, i32
  }
  func.func @transform_4(%arg0: i32) -> (i32, i32) {
    %c0_i32 = arith.constant 0 : i32
    %c0_i32_0 = arith.constant 0 : i32
    %c0_i32_1 = arith.constant 0 : i32
    return %c0_i32, %c0_i32_0 : i32, i32
  }
  func.func @transform_5(%arg0: i32) -> (i32, i32, i32) {
    %c0_i32 = arith.constant 0 : i32
    %c0_i32_0 = arith.constant 0 : i32
    %c0_i32_1 = arith.constant 0 : i32
    return %arg0, %c0_i32, %c0_i32_0 : i32, i32, i32
  }
}

</mosaic_0001>

<bundles_post_ra>
// kernel: resblock_forward.1
= control target key start
LH: loop header
LB: loop body
LE: loop exit
PB: predicated region body
PF: predicated region fallthrough
CT: control target
= control target key end

     0   :  { %s5536_s18 = smov 0   ;;  %s7464_s0 = inlined_call_operand.vmem [shape: f32[2,32,256], index: 0, kind: input, shape index: {}]   ;;  %s7465_s1 = inlined_call_operand.vmem [shape: bf16[288,16], index: 1, kind: input, shape index: {}]   ;;  %s7466_s2 = inlined_call_operand.vmem [shape: f32[1,16], index: 2, kind: input, shape index: {}]   ;;  %s7467_s3 = inlined_call_operand.vmem [shape: bf16[16,32], index: 3, kind: input, shape index: {}]   ;;  %s7468_s4 = inlined_call_operand.vmem [shape: f32[1,32], index: 4, kind: input, shape index: {}]   ;;  %s7469_s5 = inlined_call_operand.vmem [shape: f32[2,32,256], index: 5, kind: output, shape index: {}]  }
   0x1 LB: > { %s4954_s19 = sadd.s32 4294967295, %s5500_s18   ;;  %p4958_p0 = scmp.ge.s32.totalorder %s5500_s18, 1  ;;  %s5500_s18 = sphi %s5536_s18, %s15_s18  }
   0x2   : > { %p187_p1 = scmp.lt.s32.totalorder %s5500_s18, 3 }
   0x4   : > { %p188_p2 = pnand %p4958_p0, %p187_p1 }
   0x6   : > { %191 = sbr.rel (%p188_p2) target bundleno = 1303 (0x517), region = 40 }
   0xb   : > { %p215_p3 = scmp.lt.s32.totalorder %s4954_s19, 1  ;;  %vm306_vm0 = vcmask 257024   ;;  %v5502_v0 = vmov 0   ;;  %vm309_vm1 = vcmask 253952   ;;  %vm947_vm2 = vsmask.f32 3328 }
   0xc   : > { %311 = vst.msk [vmem:[#allocation2 + $0xc] sm:$0xf] %vm306_vm0, %v5502_v0  ;;  %vm948_vm3 = vsmask.f32 7440  ;;  %vm719_vm5 = vsmask.f32 7938 }
   0xd   : > { %s7582_s19 = smov (!%p215_p3, %s4954_s19), 1  ;;  %335 = vst.msk [vmem:[#allocation2 + $0x6c] sm:$0xf] %vm306_vm0, %v5502_v0  ;;  %vm5710_vm4 = vmor %vm947_vm2, %vm948_vm3  ;;  %s5503_s24 = smov 32   ;;  %vm394_vm7 = vsmask.f32 256 }
   0xe   : > { %s5313_s20 = sshll.u32 %s7582_s19, 6  ;;  %307 = vst.msk [vmem:[#allocation2] sm:$0xf] %vm306_vm0, %v5502_v0  ;;  %vm5718_vm6 = vmand %vm306_vm0, %vm719_vm5  ;;  %vm395_vm8 = vsmask.f32 4368  ;;  %vm1559_vm11 = vcmask 1042432  }
   0xf   : > { %s5554_s23 = scalar_lea.vmem %s7464_s0, %s5313_s20  ;;  %308 = vst.msk [vmem:[#allocation2 + $0x4] sm:$0xf] %vm306_vm0, %v5502_v0  ;;  %vm5726_vm9 = vmor %vm394_vm7, %vm395_vm8  ;;  %vm1560_vm12 = vcmask 1046532   ;;  %vm4305_vm14 = vcmask 261120   ;;  %s5504_s29 = smov 64   ;;  %vm1430_vm15 = vcmask 519424  }
  0x10   : > { %v5559_v1 = vld [vmem:[%s5554_s23] sm:$0xff]  ;;  %v5562_v2 = vld [vmem:[%s5554_s23 + $0x8] sm:$0xff]  ;;  %v5569_v5 = vld [vmem:[%s5554_s23 + $0x10] sm:$0xff]  ;;  %312 = vst.msk [vmem:[#allocation2 + $0x10] sm:$0xf] %vm306_vm0, %v5502_v0  ;;  %s5505_s30 = smov 96   ;;  %s224_s9 = scalar_lea.vmem %s7469_s5, %s5313_s20 }
  0x11   : > { %7507 = vst [vmem:[#allocation4_spill] sm:$0xff] %v5559_v1  ;;  %v7477_v3 = vmax.f32 %v5559_v1, 0.0  ;;  %v7473_v4 = vmax.f32 %v5562_v2, 0.0  ;;  %v5572_v6 = vld [vmem:[%s5554_s23 + $0x18] sm:$0xff]  ;;  %v7476_v8 = vmax.f32 %v5569_v5, 0.0  ;;  %v5599_v11 = vld [vmem:[%s5554_s23 + $0x20] sm:$0xff]  ;;  %vm5731_vm10 = vmand %vm309_vm1, %vm394_vm7 }
  0x12   : > { %7508 = vst [vmem:[#allocation5_spill] sm:$0xff] %v5562_v2  ;;  %v7472_v9 = vmax.f32 %v5572_v6, 0.0  ;;  %v5602_v12 = vld [vmem:[%s5554_s23 + $0x28] sm:$0xff]  ;;  %v7475_v13 = vmax.f32 %v5599_v11, 0.0  ;;  %v5627_v16 = vld [vmem:[%s5554_s23 + $0x30] sm:$0xff]  ;;  %v5630_v17 = vld [vmem:[%s5554_s23 + $0x38] sm:$0xff] }
  0x13   : > { %7509 = vst [vmem:[#allocation6_spill] sm:$0xff] %v5569_v5  ;;  %v5395_v7 = vpack.i.bf16 %v7473_v4, %v7477_v3  ;;  %v7471_v14 = vmax.f32 %v5602_v12, 0.0  ;;  %v7474_v18 = vmax.f32 %v5627_v16, 0.0  ;;  %v7470_v19 = vmax.f32 %v5630_v17, 0.0  ;;  %v721_v47 = vld [vmem:[#allocation2 + $0xc] sm:$0xf]  ;;  %vm5810_vm13 = vmor %vm1559_vm11, %vm1560_vm12 }
  0x14   : > { %7510 = vst [vmem:[#allocation7_spill] sm:$0xff] %v5572_v6  ;;  %v5397_v10 = vpack.i.bf16 %v7472_v9, %v7476_v8  ;;  %v779_v48 = vld [vmem:[#allocation2 + $0x6c] sm:$0xf]  ;;  %vm1963_vm2 = vcmask 1044224   ;;  %vm4681_vm3 = vcmask 130048  }
  0x15   : > { %5396 = vxpose.xlu0.b32.start [1/4] (short) %v5395_v7, 128  ;;  %314 = vst.msk [vmem:[#allocation2 + $0x18] sm:$0xf] %vm306_vm0, %v5502_v0  ;;  %v5399_v15 = vpack.i.bf16 %v7471_v14, %v7475_v13  ;;  %v5401_v20 = vpack.i.bf16 %v7470_v19, %v7474_v18  ;;  %v899_v21 = vld [vmem:[#allocation2] sm:$0xf] }
  0x16   : > { %315 = vst.msk [vmem:[#allocation2 + $0x1c] sm:$0xf] %vm306_vm0, %v5502_v0  ;;  %v951_v22 = vshrl.u32 %v899_v21, 16  ;;  %v954_v23 = vshll.u32 %v899_v21, 16  ;;  %v900_v26 = vld [vmem:[#allocation2 + $0x4] sm:$0xf] }
  0x17   : > { %317 = vst.msk [vmem:[#allocation2 + $0x24] sm:$0xf] %vm306_vm0, %v5502_v0  ;;  %v960_v29 = vshll.u32 %v900_v26, 16  ;;  %v964_v38 = vshrl.u32 %v900_v26, 16 }
  0x18   : > { %318 = vst.msk [vmem:[#allocation2 + $0x28] sm:$0xf] %vm306_vm0, %v5502_v0  ;;  %v953_v24 = vrot.slane %v951_v22, 4  ;;  %v956_v25 = vrot.slane %v954_v23, 5 }
  0x19   : > { %320 = vst.msk [vmem:[#allocation2 + $0x30] sm:$0xf] %vm306_vm0, %v5502_v0  ;;  %v962_v33 = vrot.slane %v960_v29, 5  ;;  %v966_v45 = vrot.slane %v964_v38, 4 }
  0x1a   : > { %7511 = vst [vmem:[#allocation8_spill] sm:$0xff] %v5599_v11  ;;  %v957_v28 = vor.u32 %v956_v25, %v953_v24 }
  0x1b   : > { %7512 = vst [vmem:[#allocation9_spill] sm:$0xff] %v5602_v12  ;;  %v967_v57 = vor.u32 %v966_v45, %v962_v33 }
  0x1c   : > { %321 = vst.msk [vmem:[#allocation2 + $0x34] sm:$0xf] %vm306_vm0, %v5502_v0  ;;  %v958_v32 = vrot.slane %v957_v28, 4  ;;  %v730_v45 = vld [vmem:[#allocation2 + $0x18] sm:$0xf] }
  0x1d   : > { %323 = vst.msk [vmem:[#allocation2 + $0x3c] sm:$0xf] %vm306_vm0, %v5502_v0  ;;  %5398 = vxpose.xlu0.b32.cont [2/4] (short) %v5397_v10, 128 }
  0x1e   : > { %324 = vst.msk [vmem:[#allocation2 + $0x40] sm:$0xf] %vm306_vm0, %v5502_v0  ;;  %v963_v37 = vsel %vm5710_vm4, %v958_v32, %v962_v33 }
  0x1f   : > { %326 = vst.msk [vmem:[#allocation2 + $0x48] sm:$0xf] %vm306_vm0, %v5502_v0  ;;  %1334 = vrot.lane.b32.xlu1 %v963_v37, %s5503_s24 }
  0x20   : > { %327 = vst.msk [vmem:[#allocation2 + $0x4c] sm:$0xf] %vm306_vm0, %v5502_v0 }
  0x21   : > { %329 = vst.msk [vmem:[#allocation2 + $0x54] sm:$0xf] %vm306_vm0, %v5502_v0 }
  0x22   : > { %330 = vst.msk [vmem:[#allocation2 + $0x58] sm:$0xf] %vm306_vm0, %v5502_v0 }
  0x23   : > { %332 = vst.msk [vmem:[#allocation2 + $0x60] sm:$0xf] %vm306_vm0, %v5502_v0 }
  0x24   : > { %7513 = vst [vmem:[#allocation10_spill] sm:$0xff] %v5627_v16 }
  0x25   : > { %7514 = vst [vmem:[#allocation11_spill] sm:$0xff] %v5630_v17  ;;  %5400 = vxpose.xlu0.b32.cont [3/4] (short) %v5399_v15, 128 }
  0x26   : > { %333 = vst.msk [vmem:[#allocation2 + $0x64] sm:$0xf] %vm306_vm0, %v5502_v0 }
  0x27   : > { %336 = vst.msk [vmem:[#allocation2 + $0x70] sm:$0xf] %vm306_vm0, %v5502_v0 }
  0x28   : > { %338 = vst.msk [vmem:[#allocation2 + $0x78] sm:$0xf] %vm306_vm0, %v5502_v0 }
  0x29   : > { %339 = vst.msk [vmem:[#allocation2 + $0x7c] sm:$0xf] %vm306_vm0, %v5502_v0 }
  0x2a   : > { %341 = vst.msk [vmem:[#allocation2 + $0x84] sm:$0xf] %vm306_vm0, %v5502_v0 }
  0x2b   : > { %342 = vst.msk [vmem:[#allocation2 + $0x88] sm:$0xf] %vm306_vm0, %v5502_v0 }
  0x2c   : > { %344 = vst.msk [vmem:[#allocation2 + $0x90] sm:$0xf] %vm306_vm0, %v5502_v0 }
  0x2d   : > { %345 = vst.msk [vmem:[#allocation2 + $0x94] sm:$0xf] %vm306_vm0, %v5502_v0  ;;  %5402 = vxpose.xlu0.b32.end [4/4] (short) %v5401_v20, 128 }
  0x2e   : > { %347 = vst.msk [vmem:[#allocation2 + $0x9c] sm:$0xf] %vm306_vm0, %v5502_v0 }
  0x2f   : > { %348 = vst.msk [vmem:[#allocation2 + $0xa0] sm:$0xf] %vm306_vm0, %v5502_v0 }
  0x30   : > { %350 = vst.msk [vmem:[#allocation2 + $0xa8] sm:$0xf] %vm306_vm0, %v5502_v0 }
  0x31   : > { %351 = vst.msk [vmem:[#allocation2 + $0xac] sm:$0xf] %vm306_vm0, %v5502_v0 }
  0x32   : > { %353 = vst.msk [vmem:[#allocation2 + $0xb4] sm:$0xf] %vm306_vm0, %v5502_v0 }
  0x33   : > { %354 = vst.msk [vmem:[#allocation2 + $0xb8] sm:$0xf] %vm306_vm0, %v5502_v0 }
  0x34   : > { %356 = vst.msk [vmem:[#allocation2 + $0xc0] sm:$0xf] %vm306_vm0, %v5502_v0 }
  0x35   : > { %357 = vst.msk [vmem:[#allocation2 + $0xc4] sm:$0xf] %vm306_vm0, %v5502_v0 }
  0x36   : > { %359 = vst.msk [vmem:[#allocation2 + $0xcc] sm:$0xf] %vm306_vm0, %v5502_v0 }
  0x37   : > { %360 = vst.msk [vmem:[#allocation2 + $0xd0] sm:$0xf] %vm306_vm0, %v5502_v0 }
  0x38   : > { %313 = vst.msk [vmem:[#allocation2 + $0x14] sm:$0x1] %vm309_vm1, %v5502_v0 }
  0x39   : > { %337 = vst.msk [vmem:[#allocation2 + $0x74] sm:$0x1] %vm309_vm1, %v5502_v0 }
  0x3a   : > { %310 = vst.msk [vmem:[#allocation2 + $0x8] sm:$0x1] %vm309_vm1, %v5502_v0 }
  0x3b   : > { %316 = vst.msk [vmem:[#allocation2 + $0x20] sm:$0x1] %vm309_vm1, %v5502_v0 }
  0x3c   : > { %319 = vst.msk [vmem:[#allocation2 + $0x2c] sm:$0x1] %vm309_vm1, %v5502_v0 }
  0x3d   : > { %322 = vst.msk [vmem:[#allocation2 + $0x38] sm:$0x1] %vm309_vm1, %v5502_v0 }
  0x3e   : > { %325 = vst.msk [vmem:[#allocation2 + $0x44] sm:$0x1] %vm309_vm1, %v5502_v0 }
  0x3f   : > { %328 = vst.msk [vmem:[#allocation2 + $0x50] sm:$0x1] %vm309_vm1, %v5502_v0  ;;  %v727_v25 = vld [vmem:[#allocation2 + $0x14] sm:$0x1] }
  0x40   : > { %331 = vst.msk [vmem:[#allocation2 + $0x5c] sm:$0x1] %vm309_vm1, %v5502_v0  ;;  %v783_v26 = vld [vmem:[#allocation2 + $0x74] sm:$0x1] }
  0x41   : > { %334 = vst.msk [vmem:[#allocation2 + $0x68] sm:$0x1] %vm309_vm1, %v5502_v0  ;;  %v901_v52 = vld [vmem:[#allocation2 + $0x8] sm:$0x1] }
  0x42   : > { %340 = vst.msk [vmem:[#allocation2 + $0x80] sm:$0x1] %vm309_vm1, %v5502_v0  ;;  %v970_v58 = vshll.u32 %v901_v52, 16 }
  0x43   : > { %343 = vst.msk [vmem:[#allocation2 + $0x8c] sm:$0x1] %vm309_vm1, %v5502_v0 }
  0x44   : > { %346 = vst.msk [vmem:[#allocation2 + $0x98] sm:$0x1] %vm309_vm1, %v5502_v0  ;;  %v972_v7 = vrot.slane %v970_v58, 5 }
  0x45   : > { %349 = vst.msk [vmem:[#allocation2 + $0xa4] sm:$0x1] %vm309_vm1, %v5502_v0 }
  0x46   : > { %352 = vst.msk [vmem:[#allocation2 + $0xb0] sm:$0x1] %vm309_vm1, %v5502_v0 }
  0x47   : > { %355 = vst.msk [vmem:[#allocation2 + $0xbc] sm:$0x1] %vm309_vm1, %v5502_v0 }
  0x48   : > { %358 = vst.msk [vmem:[#allocation2 + $0xc8] sm:$0x1] %vm309_vm1, %v5502_v0 }
  0x49   : > { %361 = vst.msk [vmem:[#allocation2 + $0xd4] sm:$0x1] %vm309_vm1, %v5502_v0  ;;  %v968_v0 = vrot.slane %v967_v57, 4  ;;  %vm1770_vm1 = vcmask 781824  }
  0x4b   : > { %v973_v37 = vsel %vm5710_vm4, %v968_v0, %v972_v7  ;;  %v5380_v0 = vld [vmem:[%s7465_s1 + $0x88] sm:$0xff] }
  0x4c   : > { %1336 = vrot.lane.b32.xlu1 %v973_v37, %s5503_s24  ;;  %4538 = vmatpush.bf16.msra.mxu2 %v5380_v0 }
  0xb9   : > { %v5403_v27 = vpop.trf.xlu0 }
  0xba   : > { %v5407_v30 = vunpack.i.h.bf16 %v5403_v27  ;;  %v5404_v31 = vunpack.i.l.bf16 %v5403_v27 }
  0xbc   : > { %v378_v34 = vpack.c.bf16 %v5407_v30, %v5407_v30  ;;  %v362_v35 = vpack.c.bf16 %v5404_v31, %v5404_v31 }
  0xbe   : > { %v534_v39 = vshrl.u32 %v378_v34, 16  ;;  %v398_v40 = vshrl.u32 %v362_v35, 16  ;;  %v537_v41 = vshll.u32 %v378_v34, 16  ;;  %v401_v44 = vshll.u32 %v362_v35, 16 }
  0xc0   : > { %v536_v42 = vrot.slane %v534_v39, 7  ;;  %v400_v43 = vrot.slane %v398_v40, 7 }
  0xc1   : > { %v5408_v49 = vpop.trf.xlu0 }
  0xc2   : > { %v539_v50 = vor.u32 %v537_v41, %v536_v42  ;;  %v403_v51 = vor.u32 %v401_v44, %v400_v43  ;;  %v5412_v53 = vunpack.i.h.bf16 %v5408_v49  ;;  %v5409_v54 = vunpack.i.l.bf16 %v5408_v49 }
  0xc3   : > { %v404_v63 = vrot.slane %v400_v43, 4  ;;  %v540_v33 = vrot.slane %v536_v42, 4 }
  0xc4   : > { %v780_v55 = vsel %vm5718_vm6, %v539_v50, %v779_v48  ;;  %v722_v56 = vsel %vm5718_vm6, %v403_v51, %v721_v47  ;;  %v379_v59 = vpack.c.bf16 %v5412_v53, %v5412_v53  ;;  %v363_v60 = vpack.c.bf16 %v5409_v54, %v5409_v54  ;;  %v786_v54 = vld [vmem:[#allocation2 + $0x78] sm:$0xf] }
  0xc5   : > { %781 = vst [vmem:[#allocation2 + $0x6c] sm:$0xf] %v780_v55 }
  0xc6   : > { %723 = vst [vmem:[#allocation2 + $0xc] sm:$0xf] %v722_v56  ;;  %v542_v61 = vshrl.u32 %v379_v59, 16  ;;  %v406_v62 = vshrl.u32 %v363_v60, 16  ;;  %v545_v20 = vshll.u32 %v379_v59, 16  ;;  %v409_v22 = vshll.u32 %v363_v60, 16 }
  0xc8   : > { %v544_v15 = vrot.slane %v542_v61, 7  ;;  %v408_v21 = vrot.slane %v406_v62, 7 }
  0xc9   : > { %v5413_v23 = vpop.trf.xlu0 }
  0xca   : > { %v5417_v27 = vunpack.i.h.bf16 %v5413_v23  ;;  %v5414_v28 = vunpack.i.l.bf16 %v5413_v23  ;;  %v547_v29 = vor.u32 %v545_v20, %v544_v15  ;;  %v549_v30 = vrot.slane %v544_v15, 4 }
  0xcb   : > { %v411_v31 = vor.u32 %v409_v22, %v408_v21  ;;  %v413_v32 = vrot.slane %v408_v21, 4 }
  0xcc   : > { %v380_v34 = vpack.c.bf16 %v5417_v27, %v5417_v27  ;;  %v364_v35 = vpack.c.bf16 %v5414_v28, %v5414_v28  ;;  %v784_v38 = vsel %vm5731_vm10, %v549_v30, %v783_v26  ;;  %v548_v42 = vsel %vm5726_vm9, %v540_v33, %v547_v29  ;;  %v926_v49 = vld [vmem:[#allocation2 + $0x6c] sm:$0xf]  ;;  %v5379_v27 = vld [vmem:[%s7465_s1 + $0x80] sm:$0xff] }
  0xcd   : > { %v412_v39 = vsel %vm5726_vm9, %v404_v63, %v411_v31  ;;  %v728_v40 = vsel %vm5731_vm10, %v413_v32, %v727_v25  ;;  %v902_v41 = vld [vmem:[#allocation2 + $0xc] sm:$0xf]  ;;  %785 = vst [vmem:[#allocation2 + $0x74] sm:$0x1] %v784_v38  ;;  %v1167_v60 = vshrl.u32 %v926_v49, 16  ;;  %v1170_v61 = vshll.u32 %v926_v49, 16  ;;  %4539 = vmatpush.bf16.msra.mxu2 %v5379_v27 }
  0xce   : > { %v551_v43 = vshrl.u32 %v380_v34, 16  ;;  %v415_v44 = vshrl.u32 %v364_v35, 16  ;;  %724 = vst.msk [vmem:[#allocation2 + $0x10] sm:$0xf] %vm306_vm0, %v412_v39  ;;  %v975_v47 = vshrl.u32 %v902_v41, 16  ;;  %v978_v48 = vshll.u32 %v902_v41, 16 }
  0xcf   : > { %729 = vst [vmem:[#allocation2 + $0x14] sm:$0x1] %v728_v40  ;;  %v554_v51 = vshll.u32 %v380_v34, 16  ;;  %v418_v53 = vshll.u32 %v364_v35, 16  ;;  %v5762_v31 = vrot.slane %v1167_v60, 4  ;;  %v5764_v32 = vrot.slane %v1170_v61, 5 }
  0xd0   : > { %v5747_v50 = vrot.slane %v551_v43, 7  ;;  %v417_v52 = vrot.slane %v415_v44, 7  ;;  %782 = vst.msk [vmem:[#allocation2 + $0x70] sm:$0xf] %vm306_vm0, %v548_v42  ;;  %v977_v56 = vrot.slane %v975_v47, 4  ;;  %v980_v57 = vrot.slane %v978_v48, 5 }
  0xd1   : > { %v5418_v55 = vpop.trf.xlu0  ;;  %v734_v43 = vld [vmem:[#allocation2 + $0x20] sm:$0x1] }
  0xd2   : > { %v556_v58 = vor.u32 %v554_v51, %v5747_v50  ;;  %v420_v59 = vor.u32 %v418_v53, %v417_v52  ;;  %v5422_v62 = vunpack.i.h.bf16 %v5418_v55  ;;  %v5419_v63 = vunpack.i.l.bf16 %v5418_v55  ;;  %v790_v44 = vld [vmem:[#allocation2 + $0x80] sm:$0x1] }
  0xd3   : > { %v981_v20 = vor.u32 %v980_v57, %v977_v56  ;;  %v557_v21 = vrot.slane %v5747_v50, 4  ;;  %v421_v25 = vrot.slane %v417_v52, 4 }
  0xd4   : > { %v787_v7 = vsel %vm5718_vm6, %v556_v58, %v786_v54  ;;  %v731_v15 = vsel %vm5718_vm6, %v420_v59, %v730_v45  ;;  %v381_v22 = vpack.c.bf16 %v5422_v62, %v5422_v62  ;;  %v365_v23 = vpack.c.bf16 %v5419_v63, %v5419_v63  ;;  %v5766_v48 = vld [vmem:[#allocation2 + $0x74] sm:$0x1] }
  0xd5   : > { %788 = vst [vmem:[#allocation2 + $0x78] sm:$0xf] %v787_v7  ;;  %v903_v26 = vld [vmem:[#allocation2 + $0x10] sm:$0xf]  ;;  %v982_v34 = vrot.slane %v981_v20, 4  ;;  %v1186_v61 = vshll.u32 %v5766_v48, 16 }
  0xd6   : > { %732 = vst [vmem:[#allocation2 + $0x18] sm:$0xf] %v731_v15  ;;  %v559_v28 = vshrl.u32 %v381_v22, 16  ;;  %v423_v29 = vshrl.u32 %v365_v23, 16  ;;  %v904_v30 = vld [vmem:[#allocation2 + $0x14] sm:$0x1] }
  0xd7   : > { %v562_v33 = vshll.u32 %v381_v22, 16  ;;  %v984_v35 = vshll.u32 %v903_v26, 16  ;;  %v988_v37 = vshrl.u32 %v903_v26, 16  ;;  %v426_v40 = vshll.u32 %v365_v23, 16  ;;  %v737_v15 = vld [vmem:[#allocation2 + $0x24] sm:$0xf] }
  0xd8   : > { %v561_v38 = vrot.slane %v559_v28, 7  ;;  %v425_v39 = vrot.slane %v423_v29, 7  ;;  %v994_v42 = vshll.u32 %v904_v30, 16  ;;  %v793_v20 = vld [vmem:[#allocation2 + $0x84] sm:$0xf] }
  0xd9   : > { %v5423_v41 = vpop.trf.xlu0  ;;  %v986_v55 = vrot.slane %v984_v35, 5  ;;  %v990_v56 = vrot.slane %v988_v37, 4  ;;  %v5787_v37 = vld [vmem:[#allocation2 + $0x70] sm:$0xf] }
  0xda   : > { %v5427_v45 = vunpack.i.h.bf16 %v5423_v41  ;;  %v5424_v47 = vunpack.i.l.bf16 %v5423_v41  ;;  %v564_v49 = vor.u32 %v562_v33, %v561_v38  ;;  %v566_v50 = vrot.slane %v561_v38, 4 }
  0xdb   : > { %v428_v51 = vor.u32 %v426_v40, %v425_v39  ;;  %v430_v52 = vrot.slane %v425_v39, 4  ;;  %v987_v23 = vsel %vm5710_vm4, %v982_v34, %v986_v55  ;;  %v996_v33 = vrot.slane %v994_v42, 5 }
  0xdc   : > { %v382_v53 = vpack.c.bf16 %v5427_v45, %v5427_v45  ;;  %v366_v54 = vpack.c.bf16 %v5424_v47, %v5424_v47  ;;  %v791_v57 = vsel %vm5731_vm10, %v566_v50, %v790_v44  ;;  %v565_v62 = vsel %vm5726_vm9, %v557_v21, %v564_v49  ;;  %1338 = vrot.lane.b32.xlu2 %v987_v23, %s5503_s24 }
  0xdd   : > { %v429_v58 = vsel %vm5726_vm9, %v421_v25, %v428_v51  ;;  %v735_v59 = vsel %vm5731_vm10, %v430_v52, %v734_v43  ;;  %v905_v60 = vld [vmem:[#allocation2 + $0x18] sm:$0xf]  ;;  %792 = vst [vmem:[#allocation2 + $0x80] sm:$0x1] %v791_v57  ;;  %v991_v25 = vor.u32 %v990_v56, %v986_v55  ;;  %v1176_v47 = vshll.u32 %v5787_v37, 16 }
  0xde   : > { %v568_v63 = vshrl.u32 %v382_v53, 16  ;;  %v432_v0 = vshrl.u32 %v366_v54, 16  ;;  %v5777_v7 = vld [vmem:[#allocation2 + $0x18] sm:$0xe]  ;;  %733 = vst.msk [vmem:[#allocation2 + $0x1c] sm:$0xf] %vm306_vm0, %v429_v58 }
  0xdf   : > { %v571_v22 = vshll.u32 %v382_v53, 16  ;;  %v999_v26 = vshrl.u32 %v905_v60, 16  ;;  %736 = vst [vmem:[#allocation2 + $0x20] sm:$0x1] %v735_v59  ;;  %v435_v29 = vshll.u32 %v366_v54, 16  ;;  %v1002_v21 = vshll.u32 %v905_v60, 16 }
  0xe0   : > { %v5782_v27 = vrot.slane %v568_v63, 7  ;;  %v434_v28 = vrot.slane %v432_v0, 7  ;;  %789 = vst.msk [vmem:[#allocation2 + $0x7c] sm:$0xf] %vm306_vm0, %v565_v62  ;;  %v4995_v35 = vrot.slane %v5777_v7, 9  ;;  %v992_v39 = vrot.slane %v991_v25, 4 }
  0xe1   : > { %v5428_v30 = vpop.trf.xlu0  ;;  %v1001_v40 = vrot.slane %v999_v26, 4  ;;  %v1004_v42 = vrot.slane %v1002_v21, 5  ;;  %v1180_v62 = vshrl.u32 %v5787_v37, 16  ;;  %v2829_v24 = vld [vmem:[#allocation2 + $0x18] sm:$0xf] }
  0xe2   : > { %v573_v34 = vor.u32 %v571_v22, %v5782_v27  ;;  %v437_v38 = vor.u32 %v435_v29, %v434_v28  ;;  %v5432_v41 = vunpack.i.h.bf16 %v5428_v30  ;;  %v5429_v43 = vunpack.i.l.bf16 %v5428_v30  ;;  %v797_v29 = vld [vmem:[#allocation2 + $0x8c] sm:$0x1] }
  0xe3   : > { %v574_v49 = vrot.slane %v5782_v27, 4  ;;  %v438_v50 = vrot.slane %v434_v28, 4  ;;  %v997_v53 = vsel %vm5710_vm4, %v992_v39, %v996_v33  ;;  %v1005_v55 = vor.u32 %v1004_v42, %v1001_v40  ;;  %v741_v28 = vld [vmem:[#allocation2 + $0x2c] sm:$0x1] }
  0xe4   : > { %v794_v44 = vsel %vm5718_vm6, %v573_v34, %v793_v20  ;;  %v738_v45 = vsel %vm5718_vm6, %v437_v38, %v737_v15  ;;  %v383_v51 = vpack.c.bf16 %v5432_v41, %v5432_v41  ;;  %v367_v52 = vpack.c.bf16 %v5429_v43, %v5429_v43  ;;  %1340 = vrot.lane.b32.xlu2 %v997_v53, %s5503_s24 }
  0xe5   : > { %795 = vst [vmem:[#allocation2 + $0x84] sm:$0xf] %v794_v44  ;;  %v906_v54 = vld [vmem:[#allocation2 + $0x1c] sm:$0xf]  ;;  %v1006_v0 = vrot.slane %v1005_v55, 4 }
  0xe6   : > { %739 = vst [vmem:[#allocation2 + $0x24] sm:$0xf] %v738_v45  ;;  %v3582_v56 = vld [vmem:[#allocation2 + $0x1c] sm:$0xf]  ;;  %v576_v57 = vshrl.u32 %v383_v51, 16  ;;  %v579_v58 = vshll.u32 %v383_v51, 16 }
  0xe7   : > { %v440_v59 = vshrl.u32 %v367_v52, 16  ;;  %v907_v60 = vld [vmem:[#allocation2 + $0x20] sm:$0x1]  ;;  %v443_v63 = vshll.u32 %v367_v52, 16  ;;  %v1008_v15 = vshll.u32 %v906_v54, 16  ;;  %v1012_v20 = vshrl.u32 %v906_v54, 16 }
  0xe8   : > { %v578_v22 = vrot.slane %v576_v57, 7  ;;  %v1018_v26 = vshll.u32 %v907_v60, 16  ;;  %v3679_v27 = vrot.slane %v3582_v56, 5  ;;  %v3583_v60 = vld [vmem:[#allocation2 + $0x20] sm:$0x1] }
  0xe9   : > { %v442_v23 = vrot.slane %v440_v59, 7  ;;  %v5433_v25 = vpop.trf.xlu0  ;;  %v1010_v41 = vrot.slane %v1008_v15, 5  ;;  %v1014_v43 = vrot.slane %v1012_v20, 4  ;;  %v5821_v15 = vrot.slane %v1176_v47, 5 }
  0xea   : > { %v5437_v21 = vunpack.i.h.bf16 %v5433_v25  ;;  %v5434_v30 = vunpack.i.l.bf16 %v5433_v25  ;;  %v581_v33 = vor.u32 %v579_v58, %v578_v22  ;;  %v583_v34 = vrot.slane %v578_v22, 4  ;;  %v800_v58 = vld [vmem:[#allocation2 + $0x90] sm:$0xf] }
  0xeb   : > { %v445_v38 = vor.u32 %v443_v63, %v442_v23  ;;  %v447_v39 = vrot.slane %v442_v23, 4  ;;  %v1015_v59 = vor.u32 %v1014_v43, %v1010_v41  ;;  %v3680_v63 = vsel %vm5810_vm13, %v4995_v35, %v3679_v27 }
  0xec   : > { %v384_v37 = vpack.c.bf16 %v5437_v21, %v5437_v21  ;;  %v368_v40 = vpack.c.bf16 %v5434_v30, %v5434_v30  ;;  %v798_v44 = vsel %vm5731_vm10, %v583_v34, %v797_v29  ;;  %v582_v42 = vsel %vm5726_vm9, %v574_v49, %v581_v33  ;;  %3821 = vst.msk [vmem:[#allocation3 + $0x8] sm:$0xf] %vm306_vm0, %v3680_v63 }
  0xed   : > { %v446_v45 = vsel %vm5726_vm9, %v438_v50, %v445_v38  ;;  %v742_v51 = vsel %vm5731_vm10, %v447_v39, %v741_v28  ;;  %v908_v52 = vld [vmem:[#allocation2 + $0x24] sm:$0xf]  ;;  %799 = vst [vmem:[#allocation2 + $0x8c] sm:$0x1] %v798_v44  ;;  %v744_v50 = vld [vmem:[#allocation2 + $0x30] sm:$0xf]  ;;  %v1011_v49 = vsel %vm5710_vm4, %v1006_v0, %v1010_v41 }
  0xee   : > { %v585_v53 = vshrl.u32 %v384_v37, 16  ;;  %v588_v54 = vshll.u32 %v384_v37, 16  ;;  %v449_v55 = vshrl.u32 %v368_v40, 16  ;;  %v452_v56 = vshll.u32 %v368_v40, 16  ;;  %740 = vst.msk [vmem:[#allocation2 + $0x28] sm:$0xf] %vm306_vm0, %v446_v45  ;;  %1342 = vrot.lane.b32.xlu1 %v1011_v49, %s5503_s24 }
  0xef   : > { %743 = vst [vmem:[#allocation2 + $0x2c] sm:$0x1] %v742_v51  ;;  %v1020_v23 = vrot.slane %v1018_v26, 5  ;;  %v3681_v25 = vrot.slane %v3679_v27, 4  ;;  %v1016_v0 = vrot.slane %v1015_v59, 4  ;;  %v1023_v29 = vshrl.u32 %v908_v52, 16 }
  0xf0   : > { %v5823_v20 = vrot.slane %v585_v53, 7  ;;  %v5825_v22 = vrot.slane %v449_v55, 7  ;;  %796 = vst.msk [vmem:[#allocation2 + $0x88] sm:$0xf] %vm306_vm0, %v582_v42  ;;  %v1026_v7 = vshll.u32 %v908_v52, 16  ;;  %v1182_v21 = vrot.slane %v1180_v62, 4 }
  0xf1   : > { %v5438_v28 = vpop.trf.xlu0  ;;  %v3682_v30 = vrot.slane %v3583_v60, 5  ;;  %v5834_v33 = vrot.slane %v1186_v61, 5  ;;  %v1021_v26 = vsel %vm5710_vm4, %v1016_v0, %v1020_v23  ;;  %v1025_v61 = vrot.slane %v1023_v29, 4  ;;  %v748_v0 = vld [vmem:[#allocation2 + $0x38] sm:$0x1] }
  0xf2   : > { %v590_v35 = vor.u32 %v588_v54, %v5823_v20  ;;  %v454_v47 = vor.u32 %v452_v56, %v5825_v22  ;;  %v5442_v27 = vunpack.i.h.bf16 %v5438_v28  ;;  %1344 = vrot.lane.b32.xlu2 %v1021_v26, %s5503_s24  ;;  %v5439_v38 = vunpack.i.l.bf16 %v5438_v28 }
  0xf3   : > { %v3683_v39 = vsel %vm5810_vm13, %v3681_v25, %v3682_v30  ;;  %v1028_v37 = vrot.slane %v1026_v7, 5  ;;  %v1183_v40 = vor.u32 %v1182_v21, %v5821_v15  ;;  %v591_v41 = vrot.slane %v5823_v20, 4 }
  0xf4   : > { %v801_v34 = vsel %vm5718_vm6, %v590_v35, %v800_v58  ;;  %v745_v62 = vsel %vm5718_vm6, %v454_v47, %v744_v50  ;;  %v385_v48 = vpack.c.bf16 %v5442_v27, %v5442_v27  ;;  %v455_v43 = vrot.slane %v5825_v22, 4  ;;  %3822 = vst.msk [vmem:[#allocation3 + $0x14] sm:$0xf] %vm306_vm0, %v3683_v39  ;;  %v804_v22 = vld [vmem:[#allocation2 + $0x98] sm:$0x1] }
  0xf5   : > { %802 = vst [vmem:[#allocation2 + $0x90] sm:$0xf] %v801_v34  ;;  %v369_v44 = vpack.c.bf16 %v5439_v38, %v5439_v38  ;;  %v909_v45 = vld [vmem:[#allocation2 + $0x28] sm:$0xf]  ;;  %v1029_v52 = vor.u32 %v1028_v37, %v1025_v61  ;;  %v5849_v58 = vrot.slane %v1183_v40, 4  ;;  %v1173_v37 = vor.u32 %v5764_v32, %v5762_v31 }
  0xf6   : > { %746 = vst [vmem:[#allocation2 + $0x30] sm:$0xf] %v745_v62  ;;  %v593_v42 = vshrl.u32 %v385_v48, 16  ;;  %v596_v51 = vshll.u32 %v385_v48, 16  ;;  %v1032_v53 = vshll.u32 %v909_v45, 16  ;;  %v1036_v56 = vshrl.u32 %v909_v45, 16 }
  0xf7   : > { %v457_v54 = vshrl.u32 %v369_v44, 16  ;;  %v460_v55 = vshll.u32 %v369_v44, 16  ;;  %v910_v50 = vld [vmem:[#allocation2 + $0x2c] sm:$0x1]  ;;  %v1030_v60 = vrot.slane %v1029_v52, 4  ;;  %v1189_v32 = vsel %vm5710_vm4, %v5849_v58, %v5834_v33 }
  0xf8   : > { %v595_v49 = vrot.slane %v593_v42, 7  ;;  %v1034_v63 = vrot.slane %v1032_v53, 5  ;;  %v1042_v20 = vshll.u32 %v910_v50, 16  ;;  %v1038_v26 = vrot.slane %v1036_v56, 4  ;;  %v3584_v27 = vld [vmem:[#allocation2 + $0x24] sm:$0xe] }
  0xf9   : > { %v5443_v59 = vpop.trf.xlu0  ;;  %v459_v23 = vrot.slane %v457_v54, 7  ;;  %v5021_v38 = vld [vmem:[#allocation3 + $0x8] sm:$0xf]  ;;  %v3585_v48 = vld [vmem:[#allocation2 + $0x28] sm:$0xf] }
  0xfa   : > { %v5447_v25 = vunpack.i.h.bf16 %v5443_v59  ;;  %v598_v28 = vor.u32 %v596_v51, %v595_v49  ;;  %v600_v29 = vrot.slane %v595_v49, 4  ;;  %v5444_v7 = vunpack.i.l.bf16 %v5443_v59  ;;  %v3586_v61 = vld [vmem:[#allocation2 + $0x2c] sm:$0x1]  ;;  %v807_v52 = vld [vmem:[#allocation2 + $0x9c] sm:$0xf] }
  0xfb   : > { %v1035_v21 = vsel %vm5710_vm4, %v1030_v60, %v1034_v63  ;;  %v462_v35 = vor.u32 %v460_v55, %v459_v23  ;;  %v464_v47 = vrot.slane %v459_v23, 4  ;;  %v5317_v45 = vld [vmem:[#allocation3 + $0x10] sm:$0xf0]  ;;  %v1039_v55 = vor.u32 %v1038_v26, %v1034_v63 }
  0xfc   : > { %v386_v30 = vpack.c.bf16 %v5447_v25, %v5447_v25  ;;  %1346 = vrot.lane.b32.xlu1 %v1035_v21, %s5503_s24  ;;  %v805_v34 = vsel %vm5731_vm10, %v600_v29, %v804_v22  ;;  %v599_v62 = vsel %vm5726_vm9, %v591_v41, %v598_v28  ;;  %v370_v39 = vpack.c.bf16 %v5444_v7, %v5444_v7  ;;  %v751_v22 = vld [vmem:[#allocation2 + $0x3c] sm:$0xf] }
  0xfd   : > { %806 = vst [vmem:[#allocation2 + $0x98] sm:$0x1] %v805_v34  ;;  %v463_v40 = vsel %vm5726_vm9, %v455_v43, %v462_v35  ;;  %v749_v44 = vsel %vm5731_vm10, %v464_v47, %v748_v0  ;;  %v5022_v41 = vor.u32 %v5317_v45, %v5021_v38  ;;  %v1044_v31 = vrot.slane %v1042_v20, 5  ;;  %v911_v0 = vld [vmem:[#allocation2 + $0x30] sm:$0xf] }
  0xfe   : > { %v602_v42 = vshrl.u32 %v386_v30, 16  ;;  %v605_v51 = vshll.u32 %v386_v30, 16  ;;  %747 = vst.msk [vmem:[#allocation2 + $0x34] sm:$0xf] %vm306_vm0, %v463_v40  ;;  %v466_v53 = vshrl.u32 %v370_v39, 16  ;;  %v469_v54 = vshll.u32 %v370_v39, 16 }
  0xff   : > { %750 = vst [vmem:[#allocation2 + $0x38] sm:$0x1] %v749_v44  ;;  %v3686_v43 = vrot.slane %v3585_v48, 5  ;;  %5275 = vmatmul.msk.bf16.vlgmr.msra.gmra.mxu2 %vm4305_vm14, %v5022_v41  ;;  %v1040_v49 = vrot.slane %v1039_v55, 4  ;;  %v4996_v60 = vrot.slane %v3584_v27, 9  ;;  %v3689_v63 = vrot.slane %v3586_v61, 5 }
 0x100   : > { %v5865_v56 = vrot.slane %v602_v42, 7  ;;  %803 = vst.msk [vmem:[#allocation2 + $0x94] sm:$0xf] %vm306_vm0, %v599_v62  ;;  %v5873_v50 = vrot.slane %v466_v53, 7  ;;  %v1174_v25 = vrot.slane %v1173_v37, 4  ;;  %v1047_v34 = vshrl.u32 %v911_v0, 16 }
 0x101   : > { %v5448_v59 = vpop.trf.xlu0  ;;  %v1045_v58 = vsel %vm5710_vm4, %v1040_v49, %v1044_v31  ;;  %v3687_v35 = vsel %vm5810_vm13, %v4996_v60, %v3686_v43  ;;  %v930_v47 = vld [vmem:[#allocation2 + $0x7c] sm:$0xf]  ;;  %v3688_v27 = vrot.slane %v3686_v43, 4  ;;  %v1050_v40 = vshll.u32 %v911_v0, 16 }
 0x102   : > { %v607_v23 = vor.u32 %v605_v51, %v5865_v56  ;;  %v5452_v20 = vunpack.i.h.bf16 %v5448_v59  ;;  %v608_v28 = vrot.slane %v5865_v56, 4  ;;  %v471_v33 = vor.u32 %v469_v54, %v5873_v50  ;;  %1348 = vrot.lane.b32.xlu2 %v1045_v58, %s5503_s24  ;;  %3823 = vst.msk [vmem:[#allocation3 + $0x20] sm:$0xf] %vm306_vm0, %v3687_v35 }
 0x103   : > { %v5449_v21 = vunpack.i.l.bf16 %v5448_v59  ;;  %v472_v30 = vrot.slane %v5873_v50, 4  ;;  %v3690_v61 = vsel %vm5810_vm13, %v3688_v27, %v3689_v63  ;;  %v1049_v37 = vrot.slane %v1047_v34, 4  ;;  %v755_v59 = vld [vmem:[#allocation2 + $0x44] sm:$0x1] }
 0x104   : > { %v808_v29 = vsel %vm5718_vm6, %v607_v23, %v807_v52  ;;  %v387_v7 = vpack.c.bf16 %v5452_v20, %v5452_v20  ;;  %1372 = vrot.lane.b32.xlu1 %v1189_v32, %s5503_s24  ;;  %v752_v26 = vsel %vm5718_vm6, %v471_v33, %v751_v22  ;;  %3824 = vst.msk [vmem:[#allocation3 + $0x2c] sm:$0xf] %vm306_vm0, %v3690_v61  ;;  %v811_v52 = vld [vmem:[#allocation2 + $0xa4] sm:$0x1]  ;;  %v1052_v54 = vrot.slane %v1050_v40, 5 }
 0x105   : > { %809 = vst [vmem:[#allocation2 + $0x9c] sm:$0xf] %v808_v29  ;;  %v371_v39 = vpack.c.bf16 %v5449_v21, %v5449_v21  ;;  %v912_v48 = vld [vmem:[#allocation2 + $0x34] sm:$0xf]  ;;  %v1179_v41 = vsel %vm5710_vm4, %v1174_v25, %v5821_v15  ;;  %v1200_v56 = vshll.u32 %v930_v47, 16  ;;  %v1204_v31 = vshrl.u32 %v930_v47, 16 }
 0x106   : > { %753 = vst [vmem:[#allocation2 + $0x3c] sm:$0xf] %v752_v26  ;;  %v610_v62 = vshrl.u32 %v387_v7, 16  ;;  %v613_v38 = vshll.u32 %v387_v7, 16  ;;  %v1056_v44 = vshll.u32 %v912_v48, 16  ;;  %v1053_v63 = vor.u32 %v1052_v54, %v1049_v37 }
 0x107   : > { %v474_v42 = vshrl.u32 %v371_v39, 16  ;;  %v477_v51 = vshll.u32 %v371_v39, 16  ;;  %v931_v22 = vld [vmem:[#allocation2 + $0x80] sm:$0x1]  ;;  %v5903_v29 = vrot.slane %v1200_v56, 5  ;;  %v1206_v26 = vrot.slane %v1204_v31, 4 }
 0x108   : > { %v612_v45 = vrot.slane %v610_v62, 7  ;;  %v5896_v55 = vrot.slane %v1056_v44, 5  ;;  %v1054_v58 = vrot.slane %v1053_v63, 4  ;;  %v929_v7 = vld [vmem:[#allocation2 + $0x78] sm:$0xf] }
 0x109   : > { %v5453_v53 = vpop.trf.xlu0  ;;  %v476_v50 = vrot.slane %v474_v42, 7  ;;  %v5033_v47 = vld [vmem:[#allocation3 + $0x20] sm:$0xf]  ;;  %v1207_v61 = vor.u32 %v1206_v26, %v5903_v29  ;;  %v758_v37 = vld [vmem:[#allocation2 + $0x48] sm:$0xf]  ;;  %v1194_v42 = vshll.u32 %v929_v7, 16 }
 0x10a   : > { %v615_v32 = vor.u32 %v613_v38, %v612_v45  ;;  %v617_v43 = vrot.slane %v612_v45, 4  ;;  %v5457_v49 = vunpack.i.h.bf16 %v5453_v53  ;;  %v5454_v60 = vunpack.i.l.bf16 %v5453_v53  ;;  %1370 = vrot.lane.b32.xlu2 %v1179_v41, %s5503_s24  ;;  %v814_v41 = vld [vmem:[#allocation2 + $0xa8] sm:$0xf] }
 0x10b   : > { %v479_v20 = vor.u32 %v477_v51, %v476_v50  ;;  %v481_v15 = vrot.slane %v476_v50, 4  ;;  %v5320_v27 = vld [vmem:[#allocation3 + $0x28] sm:$0xf0]  ;;  %v1059_v38 = vsel %vm5710_vm4, %v1054_v58, %v5896_v55  ;;  %v1191_v45 = vshrl.u32 %v929_v7, 16  ;;  %v933_v56 = vld [vmem:[#allocation2 + $0x88] sm:$0xf] }
 0x10c   : > { %v812_v23 = vsel %vm5731_vm10, %v617_v43, %v811_v52  ;;  %v616_v25 = vsel %vm5726_vm9, %v608_v28, %v615_v32  ;;  %v388_v0 = vpack.c.bf16 %v5457_v49, %v5457_v49  ;;  %v372_v33 = vpack.c.bf16 %v5454_v60, %v5454_v60  ;;  %1350 = vrot.lane.b32.xlu0 %v1059_v38, %s5503_s24  ;;  %v5923_v49 = vld [vmem:[#allocation2 + $0x34] sm:$0xf] }
 0x10d   : > { %813 = vst [vmem:[#allocation2 + $0xa4] sm:$0x1] %v812_v23  ;;  %v480_v21 = vsel %vm5726_vm9, %v472_v30, %v479_v20  ;;  %v756_v35 = vsel %vm5731_vm10, %v481_v15, %v755_v59  ;;  %v1210_v28 = vshll.u32 %v931_v22, 16  ;;  %v5034_v39 = vor.u32 %v5320_v27, %v5033_v47  ;;  %v2503_v23 = vld [vmem:[#allocation2 + $0x38] sm:$0x1] }
 0x10e   : > { %810 = vst.msk [vmem:[#allocation2 + $0xa0] sm:$0xf] %vm306_vm0, %v616_v25  ;;  %v619_v34 = vshrl.u32 %v388_v0, 16  ;;  %v622_v62 = vshll.u32 %v388_v0, 16  ;;  %v483_v30 = vshrl.u32 %v372_v33, 16  ;;  %v486_v48 = vshll.u32 %v372_v33, 16 }
 0x10f   : > { %754 = vst.msk [vmem:[#allocation2 + $0x40] sm:$0xf] %vm306_vm0, %v480_v21  ;;  %v1212_v44 = vrot.slane %v1210_v28, 5  ;;  %5276 = vmatmul.msk.bf16.gmra.mxu2 %vm4305_vm14, %v5034_v39  ;;  %v1208_v53 = vrot.slane %v1207_v61, 4  ;;  %v1193_v43 = vrot.slane %v1191_v45, 4  ;;  %v1196_v50 = vrot.slane %v1194_v42, 5 }
 0x110   : > { %757 = vst [vmem:[#allocation2 + $0x44] sm:$0x1] %v756_v35  ;;  %v5916_v40 = vrot.slane %v619_v34, 7  ;;  %v5919_v52 = vrot.slane %v483_v30, 7  ;;  %v837_v20 = vld [vmem:[#allocation2 + $0xc] sm:$0xf] }
 0x111   : > { %v5458_v51 = vpop.trf.xlu0  ;;  %v1213_v63 = vsel %vm5710_vm4, %v1208_v53, %v1212_v44  ;;  %v1197_v25 = vor.u32 %v1196_v50, %v1193_v43  ;;  %v934_v33 = vld [vmem:[#allocation2 + $0x8c] sm:$0x1]  ;;  %869 = vst.msk [vmem:[#allocation3 + $0x18] sm:$0xf] %vm306_vm0, %v837_v20  ;;  %v7485_v35 = vrot.slane %v5923_v49, 5  ;;  %v2614_v34 = vrot.slane %v2503_v23, 5 }
 0x112   : > { %v5462_v54 = vunpack.i.h.bf16 %v5458_v51  ;;  %v624_v31 = vor.u32 %v622_v62, %v5916_v40  ;;  %v625_v32 = vrot.slane %v5916_v40, 4  ;;  %v488_v59 = vor.u32 %v486_v48, %v5919_v52  ;;  %1376 = vrot.lane.b32.xlu1 %v1213_v63, %s5503_s24  ;;  %v3587_v47 = vld [vmem:[#allocation2 + $0x30] sm:$0xe]  ;;  %v818_v28 = vld [vmem:[#allocation2 + $0xb0] sm:$0x1] }
 0x113   : > { %v489_v60 = vrot.slane %v5919_v52, 4  ;;  %v5459_v0 = vunpack.i.l.bf16 %v5458_v51  ;;  %v1198_v26 = vrot.slane %v1197_v25, 4  ;;  %v1224_v62 = vshll.u32 %v933_v56, 16  ;;  %v3588_v61 = vld [vmem:[#allocation2 + $0x34] sm:$0xf] }
 0x114   : > { %v389_v22 = vpack.c.bf16 %v5462_v54, %v5462_v54  ;;  %v815_v15 = vsel %vm5718_vm6, %v624_v31, %v814_v41  ;;  %v759_v58 = vsel %vm5718_vm6, %v488_v59, %v758_v37  ;;  %v2613_v39 = vrot.slane %v7485_v35, 4  ;;  %v3589_v42 = vld [vmem:[#allocation2 + $0x38] sm:$0x1]  ;;  %v932_v50 = vld [vmem:[#allocation2 + $0x84] sm:$0xf] }
 0x115   : > { %816 = vst [vmem:[#allocation2 + $0xa8] sm:$0xf] %v815_v15  ;;  %v373_v27 = vpack.c.bf16 %v5459_v0, %v5459_v0  ;;  %v1228_v30 = vshrl.u32 %v933_v56, 16  ;;  %v1234_v48 = vshll.u32 %v934_v33, 16  ;;  %v1203_v37 = vsel %vm5710_vm4, %v1198_v26, %v5903_v29  ;;  %v762_v59 = vld [vmem:[#allocation2 + $0x50] sm:$0x1] }
 0x116   : > { %v627_v7 = vshrl.u32 %v389_v22, 16  ;;  %v630_v21 = vshll.u32 %v389_v22, 16  ;;  %760 = vst [vmem:[#allocation2 + $0x48] sm:$0xf] %v759_v58  ;;  %v5941_v45 = vrot.slane %v1224_v62, 5  ;;  %1374 = vrot.lane.b32.xlu2 %v1203_v37, %s5503_s24  ;;  %v2615_v53 = vsel %vm5810_vm13, %v2613_v39, %v2614_v34 }
 0x117   : > { %v491_v40 = vshrl.u32 %v373_v27, 16  ;;  %v494_v44 = vshll.u32 %v373_v27, 16  ;;  %v1230_v54 = vrot.slane %v1228_v30, 4  ;;  %2714 = vrot.lane.b32.xlu0 %v2615_v53, %s5503_s24  ;;  %v1236_v31 = vrot.slane %v1234_v48, 5  ;;  %v3030_v58 = vld [vmem:[#allocation2 + $0x3c] sm:$0xf] }
 0x118   : > { %v629_v38 = vrot.slane %v627_v7, 7  ;;  %v4997_v43 = vrot.slane %v3587_v47, 9  ;;  %v3693_v29 = vrot.slane %v3588_v61, 5  ;;  %v3696_v20 = vrot.slane %v3589_v42, 5  ;;  %v3031_v34 = vld [vmem:[#allocation2 + $0x40] sm:$0xf] }
 0x119   : > { %v5463_v51 = vpop.trf.xlu0  ;;  %v493_v56 = vrot.slane %v491_v40, 7  ;;  %v1231_v23 = vor.u32 %v1230_v54, %v5941_v45  ;;  %v1218_v47 = vshll.u32 %v932_v50, 16  ;;  %v1464_v48 = vld [vmem:[#allocation2 + $0x4] sm:$0xf]  ;;  %v3142_v61 = vshrl.u32 %v3030_v58, 16 }
 0x11a   : > { %v632_v41 = vor.u32 %v630_v21, %v629_v38  ;;  %v634_v52 = vrot.slane %v629_v38, 4  ;;  %v3694_v0 = vsel %vm5810_vm13, %v4997_v43, %v3693_v29  ;;  %v3695_v33 = vrot.slane %v3693_v29, 4  ;;  %v1465_v40 = vld [vmem:[#allocation2 + $0x8] sm:$0x1]  ;;  %v821_v54 = vld [vmem:[#allocation2 + $0xb4] sm:$0xf] }
 0x11b   : > { %v496_v15 = vor.u32 %v494_v44, %v493_v56  ;;  %v498_v25 = vrot.slane %v493_v56, 4  ;;  %v1232_v7 = vrot.slane %v1231_v23, 4  ;;  %v1215_v21 = vshrl.u32 %v932_v50, 16  ;;  %3825 = vst.msk [vmem:[#allocation3 + $0x38] sm:$0xf] %vm306_vm0, %v3694_v0 }
 0x11c   : > { %v819_v63 = vsel %vm5731_vm10, %v634_v52, %v818_v28  ;;  %v633_v22 = vsel %vm5726_vm9, %v625_v32, %v632_v41  ;;  %v5467_v26 = vunpack.i.h.bf16 %v5463_v51  ;;  %v3697_v27 = vsel %vm5810_vm13, %v3695_v33, %v3696_v20  ;;  %v765_v33 = vld [vmem:[#allocation2 + $0x54] sm:$0xf]  ;;  %v916_v8 = vld [vmem:[#allocation2 + $0x44] sm:$0x1] }
 0x11d   : > { %820 = vst [vmem:[#allocation2 + $0xb0] sm:$0x1] %v819_v63  ;;  %v497_v32 = vsel %vm5726_vm9, %v489_v60, %v496_v15  ;;  %v763_v28 = vsel %vm5731_vm10, %v498_v25, %v762_v59  ;;  %v1237_v62 = vsel %vm5710_vm4, %v1232_v7, %v1236_v31  ;;  %v1217_v38 = vrot.slane %v1215_v21, 4  ;;  %v1463_v63 = vld [vmem:[#allocation2] sm:$0xe] }
 0x11e   : > { %817 = vst.msk [vmem:[#allocation2 + $0xac] sm:$0xf] %vm306_vm0, %v633_v22  ;;  %v1220_v39 = vrot.slane %v1218_v47, 5  ;;  %v390_v30 = vpack.c.bf16 %v5467_v26, %v5467_v26  ;;  %1380 = vrot.lane.b32.xlu1 %v1237_v62, %s5503_s24  ;;  %v5464_v60 = vunpack.i.l.bf16 %v5463_v51  ;;  %v3145_v37 = vshll.u32 %v3030_v58, 16  ;;  %v5973_v25 = vld [vmem:[#allocation2 + $0x34] sm:$0xf] }
 0x11f   : > { %761 = vst.msk [vmem:[#allocation2 + $0x4c] sm:$0xf] %vm306_vm0, %v497_v32  ;;  %v3151_v53 = vshll.u32 %v3031_v34, 16  ;;  %v3144_v31 = vrot.slane %v3142_v61, 4  ;;  %v1564_v51 = vrot.slane %v1464_v48, 5  ;;  %v1567_v15 = vrot.slane %v1465_v40, 5 }
 0x120   : > { %764 = vst [vmem:[#allocation2 + $0x50] sm:$0x1] %v763_v28  ;;  %v1221_v42 = vor.u32 %v1220_v39, %v1217_v38  ;;  %v636_v41 = vshrl.u32 %v390_v30, 16  ;;  %v639_v52 = vshll.u32 %v390_v30, 16  ;;  %v374_v56 = vpack.c.bf16 %v5464_v60, %v5464_v60  ;;  %v1477_v47 = vld [vmem:[#allocation2 + $0x38] sm:$0x1] }
 0x121   : > { %v5966_v44 = vpop.trf.xlu0  ;;  %3826 = vst.msk [vmem:[#allocation3 + $0x44] sm:$0xf] %vm306_vm0, %v3697_v27  ;;  %v3147_v43 = vrot.slane %v3145_v37, 5  ;;  %v5971_v59 = vrot.slane %v3151_v53, 5  ;;  %v1566_v21 = vrot.slane %v1564_v51, 4  ;;  %v4963_v34 = vrot.slane %v1463_v63, 9 }
 0x122   : > { %v1222_v29 = vrot.slane %v1221_v42, 4  ;;  %v5969_v50 = vrot.slane %v636_v41, 7  ;;  %v500_v22 = vshrl.u32 %v374_v56, 16  ;;  %v503_v23 = vshll.u32 %v374_v56, 16  ;;  %v838_v26 = vld [vmem:[#allocation2 + $0x10] sm:$0xf] }
 0x123   : > { %v3148_v20 = vor.u32 %v3147_v43, %v3144_v31  ;;  %v5045_v32 = vld [vmem:[#allocation3 + $0x38] sm:$0xf]  ;;  %v5472_v62 = vunpack.i.h.bf16 %v5966_v44  ;;  %v1568_v38 = vsel %vm5810_vm13, %v1566_v21, %v1567_v15  ;;  %v3590_v39 = vld [vmem:[#allocation2 + $0x3c] sm:$0xe]  ;;  %v3591_v30 = vld [vmem:[#allocation2 + $0x40] sm:$0xf]  ;;  %v1565_v40 = vsel %vm5810_vm13, %v4963_v34, %v1564_v51 }
 0x124   : > { %v1227_v0 = vsel %vm5710_vm4, %v1222_v29, %v5941_v45  ;;  %v641_v58 = vor.u32 %v639_v52, %v5969_v50  ;;  %v642_v7 = vrot.slane %v5969_v50, 4  ;;  %v5981_v28 = vrot.slane %v500_v22, 7  ;;  %870 = vst.msk [vmem:[#allocation3 + $0x24] sm:$0xf] %vm306_vm0, %v838_v26  ;;  %v2504_v21 = vld [vmem:[#allocation2 + $0x3c] sm:$0xe] }
 0x125   : > { %1378 = vrot.lane.b32.xlu2 %v1227_v0, %s5503_s24  ;;  %v3149_v27 = vrot.slane %v3148_v20, 4  ;;  %v391_v41 = vpack.c.bf16 %v5472_v62, %v5472_v62  ;;  %v5469_v52 = vunpack.i.l.bf16 %v5966_v44  ;;  %v7484_v53 = vrot.slane %v5973_v25, 5  ;;  %v825_v34 = vld [vmem:[#allocation2 + $0xbc] sm:$0x1]  ;;  %v1804_v62 = vld [vmem:[#allocation2 + $0x10] sm:$0xf] }
 0x126   : > { %v822_v45 = vsel %vm5718_vm6, %v641_v58, %v821_v54  ;;  %v505_v60 = vor.u32 %v503_v23, %v5981_v28  ;;  %v506_v61 = vrot.slane %v5981_v28, 4  ;;  %1676 = vrot.lane.b32.xlu1 %v1568_v38, %s5504_s29  ;;  %v3592_v54 = vld [vmem:[#allocation2 + $0x44] sm:$0x1]  ;;  %v1595_v43 = vrot.slane %v1477_v47, 5 }
 0x127   : > { %823 = vst [vmem:[#allocation2 + $0xb4] sm:$0xf] %v822_v45  ;;  %v3154_v37 = vsel %vm5710_vm4, %v3149_v27, %v5971_v59  ;;  %v4998_v29 = vrot.slane %v3590_v39, 9  ;;  %v3700_v63 = vrot.slane %v3591_v30, 5  ;;  %v644_v51 = vshrl.u32 %v391_v41, 16 }
 0x128   : > { %v5323_v48 = vld [vmem:[#allocation3 + $0x40] sm:$0xf0]  ;;  %3465 = vrot.lane.b32.xlu0 %v3154_v37, %s5505_s30  ;;  %v766_v31 = vsel %vm5718_vm6, %v505_v60, %v765_v33  ;;  %v647_v22 = vshll.u32 %v391_v41, 16  ;;  %v375_v23 = vpack.c.bf16 %v5469_v52, %v5469_v52  ;;  %v1594_v20 = vrot.slane %v7484_v53, 4  ;;  %v6007_v33 = vld [vmem:[#allocation2 + $0x40] sm:$0xf] }
 0x129   : > { %v5046_v42 = vor.u32 %v5323_v48, %v5045_v32  ;;  %v5473_v56 = vpop.trf.xlu0  ;;  %767 = vst [vmem:[#allocation2 + $0x54] sm:$0xf] %v766_v31  ;;  %v3701_v44 = vsel %vm5810_vm13, %v4998_v29, %v3700_v63  ;;  %v3702_v15 = vrot.slane %v3700_v63, 4  ;;  %v3703_v0 = vrot.slane %v3592_v54, 5  ;;  %v6015_v39 = vld [vmem:[#allocation2 + $0x10] sm:$0xf] }
 0x12a   : > { %v5477_v58 = vunpack.i.h.bf16 %v5473_v56  ;;  %v646_v47 = vrot.slane %v644_v51, 7  ;;  %v508_v26 = vshrl.u32 %v375_v23, 16  ;;  %v511_v32 = vshll.u32 %v375_v23, 16  ;;  %3827 = vst.msk [vmem:[#allocation3 + $0x50] sm:$0xf] %vm306_vm0, %v3701_v44 }
 0x12b   : > { %5277 = vmatmul.msk.bf16.gmra.mxu2 %vm4305_vm14, %v5046_v42  ;;  %v1596_v27 = vsel %vm5810_vm13, %v1594_v20, %v1595_v43  ;;  %v3704_v45 = vsel %vm5810_vm13, %v3702_v15, %v3703_v0  ;;  %v769_v30 = vld [vmem:[#allocation2 + $0x5c] sm:$0x1]  ;;  %v5474_v42 = vunpack.i.l.bf16 %v5473_v56  ;;  %v7483_v54 = vrot.slane %v6007_v33, 5  ;;  %v853_v31 = vld [vmem:[#allocation2 + $0x6c] sm:$0xf] }
 0x12c   : > { %v392_v38 = vpack.c.bf16 %v5477_v58, %v5477_v58  ;;  %v649_v48 = vor.u32 %v647_v22, %v646_v47  ;;  %v651_v60 = vrot.slane %v646_v47, 4  ;;  %v510_v37 = vrot.slane %v508_v26, 7  ;;  %3828 = vst.msk [vmem:[#allocation3 + $0x5c] sm:$0xf] %vm306_vm0, %v3704_v45  ;;  %v2494_v23 = vld [vmem:[#allocation2 + $0x14] sm:$0x1] }
 0x12d   : > { %1674 = vrot.lane.b32.xlu2 %v1565_v40, %s5504_s29  ;;  %v4983_v40 = vrot.slane %v2504_v21, 9  ;;  %885 = vst.msk [vmem:[#allocation3 + $0xd8] sm:$0xf] %vm306_vm0, %v853_v31  ;;  %v376_v22 = vpack.c.bf16 %v5474_v42, %v5474_v42  ;;  %v2590_v20 = vrot.slane %v6015_v39, 5  ;;  %v828_v15 = vld [vmem:[#allocation2 + $0xc0] sm:$0xf] }
 0x12e   : > { %1869 = vrot.lane.b32.xlu1 %v1804_v62, %s5505_s30  ;;  %v653_v41 = vshrl.u32 %v392_v38, 16  ;;  %v656_v52 = vshll.u32 %v392_v38, 16  ;;  %v826_v43 = vsel %vm5731_vm10, %v651_v60, %v825_v34  ;;  %v513_v29 = vor.u32 %v511_v32, %v510_v37  ;;  %v3593_v58 = vld [vmem:[#allocation2 + $0x48] sm:$0xe]  ;;  %v3594_v32 = vld [vmem:[#allocation2 + $0x4c] sm:$0xf] }
 0x12f   : > { %v515_v63 = vrot.slane %v510_v37, 4  ;;  %v650_v51 = vsel %vm5726_vm9, %v642_v7, %v649_v48  ;;  %827 = vst [vmem:[#allocation2 + $0xbc] sm:$0x1] %v826_v43  ;;  %v1803_v7 = vld [vmem:[#allocation2 + $0xc] sm:$0xf]  ;;  %v517_v26 = vshrl.u32 %v376_v22, 16  ;;  %v2619_v28 = vsel %vm5810_vm13, %v4983_v40, %v7483_v54 }
 0x130   : > { %1692 = vrot.lane.b32.xlu0 %v1596_v27, %s5504_s29  ;;  %v6028_v56 = vrot.slane %v653_v41, 7  ;;  %v514_v44 = vsel %vm5726_vm9, %v506_v61, %v513_v29  ;;  %824 = vst.msk [vmem:[#allocation2 + $0xb8] sm:$0xf] %vm306_vm0, %v650_v51  ;;  %v3595_v27 = vld [vmem:[#allocation2 + $0x50] sm:$0x1]  ;;  %v520_v34 = vshll.u32 %v376_v22, 16 }
 0x131   : > { %v770_v50 = vsel %vm5731_vm10, %v515_v63, %v769_v30  ;;  %v5478_v0 = vpop.trf.xlu0  ;;  %768 = vst.msk [vmem:[#allocation2 + $0x58] sm:$0xf] %vm306_vm0, %v514_v44  ;;  %v5057_v21 = vld [vmem:[#allocation3 + $0x50] sm:$0xf]  ;;  %v2592_v62 = vrot.slane %v2590_v20, 4  ;;  %v2593_v45 = vrot.slane %v2494_v23, 5 }
 0x132   : > { %v658_v47 = vor.u32 %v656_v52, %v6028_v56  ;;  %v5482_v61 = vunpack.i.h.bf16 %v5478_v0  ;;  %771 = vst [vmem:[#allocation2 + $0x5c] sm:$0x1] %v770_v50  ;;  %v2492_v38 = vld [vmem:[#allocation2 + $0xc] sm:$0xe]  ;;  %v6049_v60 = vrot.slane %v517_v26, 7  ;;  %v5479_v31 = vunpack.i.l.bf16 %v5478_v0 }
 0x133   : > { %v5326_v30 = vld [vmem:[#allocation3 + $0x58] sm:$0xf0]  ;;  %v839_v42 = vld [vmem:[#allocation2 + $0x18] sm:$0xf]  ;;  %v772_v52 = vld [vmem:[#allocation2 + $0x60] sm:$0xf]  ;;  %v2594_v40 = vsel %vm5810_vm13, %v2592_v62, %v2593_v45 }
 0x134   : > { %v829_v48 = vsel %vm5718_vm6, %v658_v47, %v828_v15  ;;  %v393_v37 = vpack.c.bf16 %v5482_v61, %v5482_v61  ;;  %v5058_v41 = vor.u32 %v5326_v30, %v5057_v21  ;;  %v4999_v43 = vrot.slane %v3593_v58, 9  ;;  %v3022_v22 = vld [vmem:[#allocation2 + $0x1c] sm:$0xf]  ;;  %871 = vst.msk [vmem:[#allocation3 + $0x30] sm:$0xf] %vm306_vm0, %v839_v42 }
 0x135   : > { %1867 = vrot.lane.b32.xlu2 %v1803_v7, %s5505_s30  ;;  %830 = vst [vmem:[#allocation2 + $0xc0] sm:$0xf] %v829_v48  ;;  %v522_v29 = vor.u32 %v520_v34, %v6049_v60  ;;  %v832_v23 = vld [vmem:[#allocation2 + $0xc8] sm:$0x1]  ;;  %v377_v44 = vpack.c.bf16 %v5479_v31, %v5479_v31  ;;  %v3707_v50 = vrot.slane %v3594_v32, 5  ;;  %v3710_v7 = vrot.slane %v3595_v27, 5 }
 0x136   : > { %2702 = vrot.lane.b32.xlu1 %v2594_v40, %s5503_s24  ;;  %v661_v63 = vshrl.u32 %v393_v37, 16  ;;  %v664_v51 = vshll.u32 %v393_v37, 16  ;;  %v1339_v15 = vpop.permute.xlu2 %1338  ;;  %v3023_v21 = vld [vmem:[#allocation2 + $0x20] sm:$0x1]  ;;  %v659_v0 = vrot.slane %v6028_v56, 4  ;;  %v4979_v47 = vrot.slane %v2492_v38, 9 }
 0x137   : > { %v773_v58 = vsel %vm5718_vm6, %v522_v29, %v772_v52  ;;  %1433 = vst.msk [vmem:[#allocation3 + $0x18] sm:$0xf] %vm1430_vm15, %v1339_v15  ;;  %v3021_v61 = vld [vmem:[#allocation2 + $0x18] sm:$0xf]  ;;  %v528_v34 = vshll.u32 %v377_v44, 16  ;;  %v3708_v32 = vsel %vm5810_vm13, %v4999_v43, %v3707_v50  ;;  %v3709_v27 = vrot.slane %v3707_v50, 4 }
 0x138   : > { %2716 = vrot.lane.b32.xlu0 %v2619_v28, %s5503_s24  ;;  %v663_v26 = vrot.slane %v661_v63, 7  ;;  %774 = vst [vmem:[#allocation2 + $0x60] sm:$0xf] %v773_v58  ;;  %v525_v28 = vshrl.u32 %v377_v44, 16  ;;  %v523_v62 = vrot.slane %v6049_v60, 4  ;;  %v3079_v38 = vshll.u32 %v3022_v22, 16 }
 0x139   : > { %v776_v56 = vld [vmem:[#allocation2 + $0x68] sm:$0x1]  ;;  %v2838_v30 = vld [vmem:[#allocation2 + $0x4c] sm:$0xf]  ;;  %3829 = vst.msk [vmem:[#allocation3 + $0x68] sm:$0xf] %vm306_vm0, %v3708_v32  ;;  %v2591_v37 = vsel %vm5810_vm13, %v4979_v47, %v2590_v20  ;;  %v3711_v52 = vsel %vm5810_vm13, %v3709_v27, %v3710_v7 }
 0x13a   : > { %v666_v45 = vor.u32 %v664_v51, %v663_v26  ;;  %v668_v46 = vrot.slane %v663_v26, 4  ;;  %v3596_v48 = vld [vmem:[#allocation2 + $0x54] sm:$0xe]  ;;  %v527_v42 = vrot.slane %v525_v28, 7  ;;  %v1478_v40 = vld [vmem:[#allocation2 + $0x3c] sm:$0xe] }
 0x13b   : > { %5278 = vmatmul.msk.bf16.gmra.mxu2 %vm4305_vm14, %v5058_v41  ;;  %v2830_v41 = vld [vmem:[#allocation2 + $0x1c] sm:$0xf]  ;;  %v6072_v60 = vld [vmem:[#allocation2 + $0x40] sm:$0xf]  ;;  %v3083_v31 = vshrl.u32 %v3022_v22, 16  ;;  %v6080_v20 = vrot.slane %v3079_v38, 5 }
 0x13c   : > { %v3597_v43 = vld [vmem:[#allocation2 + $0x58] sm:$0xf]  ;;  %v3598_v29 = vld [vmem:[#allocation2 + $0x5c] sm:$0x1]  ;;  %v833_v63 = vsel %vm5731_vm10, %v668_v46, %v832_v23  ;;  %v667_v39 = vsel %vm5726_vm9, %v659_v0, %v666_v45  ;;  %3830 = vst.msk [vmem:[#allocation3 + $0x74] sm:$0xf] %vm306_vm0, %v3711_v52  ;;  %v530_v50 = vor.u32 %v528_v34, %v527_v42  ;;  %v1335_v34 = vpop.permute.xlu1 %1334 }
 0x13d   : > { %2700 = vrot.lane.b32.xlu2 %v2591_v37, %s5503_s24  ;;  %v3089_v51 = vshll.u32 %v3023_v21, 16  ;;  %v840_v44 = vld [vmem:[#allocation2 + $0x1c] sm:$0xf]  ;;  %834 = vst [vmem:[#allocation2 + $0xc8] sm:$0x1] %v833_v63  ;;  %v532_v7 = vrot.slane %v527_v42, 4 }
 0x13e   : > { %v3085_v22 = vrot.slane %v3083_v31, 4  ;;  %v3070_v15 = vshrl.u32 %v3021_v61, 16  ;;  %831 = vst.msk [vmem:[#allocation2 + $0xc4] sm:$0xf] %vm306_vm0, %v667_v39  ;;  %2895 = vrot.lane.b32.xlu1 %v2830_v41, %s5504_s29  ;;  %v3073_v58 = vshll.u32 %v3021_v61, 16  ;;  %v531_v23 = vsel %vm5726_vm9, %v523_v62, %v530_v50  ;;  %v1341_v47 = vpop.permute.xlu2 %1340 }
 0x13f   : > { %v777_v0 = vsel %vm5731_vm10, %v532_v7, %v776_v56  ;;  %v6090_v26 = vld [vmem:[#allocation2 + $0x10] sm:$0xf]  ;;  %v5000_v28 = vrot.slane %v3596_v48, 9  ;;  %872 = vst.msk [vmem:[#allocation3 + $0x3c] sm:$0xf] %vm306_vm0, %v840_v44  ;;  %v4968_v61 = vrot.slane %v1478_v40, 9 }
 0x140   : > { %2911 = vrot.lane.b32.xlu0 %v2838_v30, %s5504_s29  ;;  %v3086_v21 = vor.u32 %v3085_v22, %v6080_v20  ;;  %775 = vst.msk [vmem:[#allocation2 + $0x64] sm:$0xf] %vm306_vm0, %v531_v23  ;;  %v7482_v10 = vrot.slane %v6072_v60, 5  ;;  %v3714_v32 = vrot.slane %v3597_v43, 5  ;;  %v3717_v27 = vrot.slane %v3598_v29, 5 }
 0x141   : > { %778 = vst [vmem:[#allocation2 + $0x68] sm:$0x1] %v777_v0  ;;  %v3091_v56 = vrot.slane %v3089_v51, 5  ;;  %v3072_v45 = vrot.slane %v3070_v15, 4  ;;  %v3075_v46 = vrot.slane %v3073_v58, 5  ;;  %v1571_v38 = vrot.slane %v6090_v26, 5 }
 0x142   : > { %v3087_v62 = vrot.slane %v3086_v21, 4  ;;  %v5069_v30 = vld [vmem:[#allocation3 + $0x68] sm:$0xf]  ;;  %1434 = vst.msk [vmem:[#allocation3 + $0x24] sm:$0xf] %vm1430_vm15, %v1341_v47  ;;  %v3715_v48 = vsel %vm5810_vm13, %v5000_v28, %v3714_v32  ;;  %v3716_v37 = vrot.slane %v3714_v32, 4  ;;  %v1600_v52 = vsel %vm5810_vm13, %v4968_v61, %v7482_v10 }
 0x143   : > { %v5329_v42 = vld [vmem:[#allocation3 + $0x70] sm:$0xf0]  ;;  %3831 = vst.msk [vmem:[#allocation3 + $0x80] sm:$0xf] %vm306_vm0, %v3715_v48  ;;  %v835_v41 = vld [vmem:[#allocation2] sm:$0xf]  ;;  %v3076_v29 = vor.u32 %v3075_v46, %v3072_v45 }
 0x144   : > { %v3718_v40 = vsel %vm5810_vm13, %v3716_v37, %v3717_v27  ;;  %867 = vst.msk [vmem:[#allocation3] sm:$0xf] %vm306_vm0, %v835_v41  ;;  %v5070_v31 = vor.u32 %v5329_v42, %v5069_v30  ;;  %v3092_v43 = vsel %vm5710_vm4, %v3087_v62, %v3091_v56  ;;  %v1468_v63 = vld [vmem:[#allocation2 + $0x14] sm:$0x1]  ;;  %v1573_v39 = vrot.slane %v1571_v38, 4  ;;  %v1337_v58 = vpop.permute.xlu1 %1336 }
 0x145   : > { %2893 = vrot.lane.b32.xlu2 %v2829_v24, %s5504_s29  ;;  %3832 = vst.msk [vmem:[#allocation3 + $0x8c] sm:$0xf] %vm306_vm0, %v3718_v40  ;;  %v3602_v51 = vld [vmem:[#allocation2 + $0x6c] sm:$0xe]  ;;  %v3603_v44 = vld [vmem:[#allocation2 + $0x70] sm:$0xf] }
 0x146   : > { %3455 = vrot.lane.b32.xlu1 %v3092_v43, %s5505_s30  ;;  %1431 = vst.msk [vmem:[#allocation3] sm:$0xf] %vm1430_vm15, %v1335_v34  ;;  %v3037_v50 = vld [vmem:[#allocation2 + $0x58] sm:$0xf]  ;;  %v836_v7 = vld [vmem:[#allocation2 + $0x4] sm:$0xf] }
 0x147   : > { %v3599_v22 = vld [vmem:[#allocation2 + $0x60] sm:$0xe]  ;;  %v3077_v15 = vrot.slane %v3076_v29, 4  ;;  %868 = vst.msk [vmem:[#allocation3 + $0xc] sm:$0xf] %vm306_vm0, %v836_v7  ;;  %v3728_v28 = vrot.slane %v3603_v44, 5 }
 0x148   : > { %1694 = vrot.lane.b32.xlu0 %v1600_v52, %s5504_s29  ;;  %v3600_v23 = vld [vmem:[#allocation2 + $0x64] sm:$0xf]  ;;  %v5001_v0 = vrot.slane %v3599_v22, 9  ;;  %v1814_v21 = vld [vmem:[#allocation2 + $0x4c] sm:$0xf]  ;;  %v1574_v61 = vrot.slane %v1468_v63, 5 }
 0x149   : > { %1432 = vst.msk [vmem:[#allocation3 + $0xc] sm:$0xf] %vm1430_vm15, %v1337_v58  ;;  %v3601_v47 = vld [vmem:[#allocation2 + $0x68] sm:$0x1]  ;;  %v3082_v34 = vsel %vm5710_vm4, %v3077_v15, %v6080_v20  ;;  %v3721_v27 = vrot.slane %v3600_v23, 5  ;;  %v3199_v56 = vshll.u32 %v3037_v50, 16 }
 0x14a   : > { %v3724_v24 = vrot.slane %v3601_v47, 5  ;;  %v842_v62 = vld [vmem:[#allocation2 + $0x28] sm:$0xf]  ;;  %v3203_v45 = vshrl.u32 %v3037_v50, 16  ;;  %v5002_v46 = vrot.slane %v3602_v51, 9  ;;  %v1575_v30 = vsel %vm5810_vm13, %v1573_v39, %v1574_v61 }
 0x14b   : > { %5279 = vmatmul.msk.bf16.gmra.mxu2 %vm4305_vm14, %v5070_v31  ;;  %v3722_v48 = vsel %vm5810_vm13, %v5001_v0, %v3721_v27  ;;  %v3723_v37 = vrot.slane %v3721_v27, 4  ;;  %874 = vst.msk [vmem:[#allocation3 + $0x54] sm:$0xf] %vm306_vm0, %v842_v62  ;;  %v1466_v20 = vld [vmem:[#allocation2 + $0xc] sm:$0xe]  ;;  %v3730_v40 = vrot.slane %v3728_v28, 4 }
 0x14c   : > { %v1345_v32 = vpop.permute.xlu2 %1344  ;;  %3833 = vst.msk [vmem:[#allocation3 + $0x98] sm:$0xf] %vm306_vm0, %v3722_v48  ;;  %v3604_v42 = vld [vmem:[#allocation2 + $0x74] sm:$0x1]  ;;  %v3729_v41 = vsel %vm5810_vm13, %v5002_v46, %v3728_v28  ;;  %v3038_v31 = vld [vmem:[#allocation2 + $0x5c] sm:$0x1] }
 0x14d   : > { %3453 = vrot.lane.b32.xlu2 %v3082_v34, %s5505_s30  ;;  %1436 = vst.msk [vmem:[#allocation3 + $0x3c] sm:$0xf] %vm1430_vm15, %v1345_v32  ;;  %v3725_v52 = vsel %vm5810_vm13, %v3723_v37, %v3724_v24  ;;  %v6136_v43 = vrot.slane %v3199_v56, 5  ;;  %v3205_v29 = vrot.slane %v3203_v45, 4  ;;  %v4964_v63 = vrot.slane %v1466_v20, 9 }
 0x14e   : > { %1680 = vrot.lane.b32.xlu1 %v1575_v30, %s5504_s29  ;;  %3834 = vst.msk [vmem:[#allocation3 + $0xa4] sm:$0xf] %vm306_vm0, %v3725_v52  ;;  %v6139_v39 = vld [vmem:[#allocation2 + $0x1c] sm:$0xf]  ;;  %v3731_v51 = vrot.slane %v3604_v42, 5  ;;  %v3209_v0 = vshll.u32 %v3038_v31, 16 }
 0x14f   : > { %3835 = vst.msk [vmem:[#allocation3 + $0xb0] sm:$0xf] %vm306_vm0, %v3729_v41  ;;  %v5081_v44 = vld [vmem:[#allocation3 + $0x80] sm:$0xf]  ;;  %v5332_v50 = vld [vmem:[#allocation3 + $0x88] sm:$0xf0]  ;;  %v1572_v22 = vsel %vm5810_vm13, %v4964_v63, %v1571_v38  ;;  %v3206_v23 = vor.u32 %v3205_v29, %v6136_v43 }
 0x150   : > { %1889 = vrot.lane.b32.xlu0 %v1814_v21, %s5505_s30  ;;  %v855_v7 = vld [vmem:[#allocation2 + $0x78] sm:$0xf]  ;;  %v3732_v15 = vsel %vm5810_vm13, %v3730_v40, %v3731_v51  ;;  %v2839_v58 = vld [vmem:[#allocation2 + $0x54] sm:$0xf]  ;;  %v5082_v21 = vor.u32 %v5332_v50, %v5081_v44  ;;  %v1806_v47 = vld [vmem:[#allocation2 + $0x1c] sm:$0xf] }
 0x151   : > { %887 = vst.msk [vmem:[#allocation3 + $0xf0] sm:$0xf] %vm306_vm0, %v855_v7  ;;  %v2597_v26 = vrot.slane %v6139_v39, 5  ;;  %v841_v28 = vld [vmem:[#allocation2 + $0x24] sm:$0xf]  ;;  %v3207_v38 = vrot.slane %v3206_v23, 4 }
 0x152   : > { %3836 = vst.msk [vmem:[#allocation3 + $0xbc] sm:$0xf] %vm306_vm0, %v3732_v15  ;;  %v3211_v34 = vrot.slane %v3209_v0, 5  ;;  %v2497_v61 = vld [vmem:[#allocation2 + $0x20] sm:$0x1] }
 0x153   : > { %873 = vst.msk [vmem:[#allocation3 + $0x48] sm:$0xf] %vm306_vm0, %v841_v28  ;;  %v857_v32 = vld [vmem:[#allocation2 + $0x84] sm:$0xf]  ;;  %v2599_v27 = vrot.slane %v2597_v26, 4  ;;  %v2600_v46 = vrot.slane %v2497_v61, 5 }
 0x154   : > { %v3025_v24 = vld [vmem:[#allocation2 + $0x28] sm:$0xf]  ;;  %889 = vst.msk [vmem:[#allocation3 + $0x108] sm:$0xf] %vm306_vm0, %v857_v32  ;;  %v1805_v62 = vld [vmem:[#allocation2 + $0x18] sm:$0xf]  ;;  %v3212_v37 = vsel %vm5710_vm4, %v3207_v38, %v3211_v34 }
 0x155   : > { %1678 = vrot.lane.b32.xlu2 %v1572_v22, %s5504_s29  ;;  %v2495_v56 = vld [vmem:[#allocation2 + $0x18] sm:$0xe]  ;;  %v854_v45 = vld [vmem:[#allocation2 + $0x70] sm:$0xf]  ;;  %v3103_v20 = vshll.u32 %v3025_v24, 16  ;;  %v3107_v42 = vshrl.u32 %v3025_v24, 16  ;;  %v2601_v52 = vsel %vm5810_vm13, %v2599_v27, %v2600_v46 }
 0x156   : > { %1873 = vrot.lane.b32.xlu1 %v1806_v47, %s5505_s30  ;;  %v6158_v48 = vld [vmem:[#allocation2 + $0x58] sm:$0xf]  ;;  %886 = vst.msk [vmem:[#allocation3 + $0xe4] sm:$0xf] %vm306_vm0, %v854_v45  ;;  %v3606_v40 = vld [vmem:[#allocation2 + $0x7c] sm:$0xf] }
 0x157   : > { %v3605_v41 = vld [vmem:[#allocation2 + $0x78] sm:$0xe]  ;;  %v3607_v31 = vld [vmem:[#allocation2 + $0x80] sm:$0x1]  ;;  %v3735_v63 = vrot.slane %v3606_v40, 5  ;;  %v4980_v51 = vrot.slane %v2495_v56, 9 }
 0x158   : > { %2913 = vrot.lane.b32.xlu0 %v2839_v58, %s5504_s29  ;;  %v5003_v29 = vrot.slane %v3605_v41, 9  ;;  %v856_v39 = vld [vmem:[#allocation2 + $0x7c] sm:$0xf]  ;;  %v7481_v50 = vrot.slane %v6158_v48, 5  ;;  %v3024_v7 = vld [vmem:[#allocation2 + $0x24] sm:$0xf] }
 0x159   : > { %888 = vst.msk [vmem:[#allocation3 + $0xfc] sm:$0xf] %vm306_vm0, %v856_v39  ;;  %v5093_v22 = vld [vmem:[#allocation3 + $0x98] sm:$0xf]  ;;  %v6172_v15 = vrot.slane %v3103_v20, 5  ;;  %v3109_v58 = vrot.slane %v3107_v42, 4  ;;  %v2598_v24 = vsel %vm5810_vm13, %v4980_v51, %v2597_v26 }
 0x15a   : > { %v3736_v23 = vsel %vm5810_vm13, %v5003_v29, %v3735_v63  ;;  %v2512_v0 = vld [vmem:[#allocation2 + $0x5c] sm:$0x1]  ;;  %v3737_v47 = vrot.slane %v3735_v63, 4  ;;  %v3738_v28 = vrot.slane %v3607_v31, 5  ;;  %v1815_v34 = vld [vmem:[#allocation2 + $0x54] sm:$0xf] }
 0x15b   : > { %5280 = vmatmul.msk.bf16.gmra.mxu2 %vm4305_vm14, %v5082_v21  ;;  %v3039_v21 = vld [vmem:[#allocation2 + $0x60] sm:$0xf]  ;;  %3837 = vst.msk [vmem:[#allocation3 + $0xc8] sm:$0xf] %vm306_vm0, %v3736_v23  ;;  %v5335_v38 = vld [vmem:[#allocation3 + $0xa0] sm:$0xf0]  ;;  %v3110_v26 = vor.u32 %v3109_v58, %v6172_v15 }
 0x15c   : > { %v1349_v30 = vpop.permute.xlu2 %1348  ;;  %v3026_v61 = vld [vmem:[#allocation2 + $0x2c] sm:$0x1]  ;;  %v858_v32 = vld [vmem:[#allocation2 + $0x88] sm:$0xf]  ;;  %v3608_v27 = vld [vmem:[#allocation2 + $0x84] sm:$0xe]  ;;  %v3739_v46 = vsel %vm5810_vm13, %v3737_v47, %v3738_v28 }
 0x15d   : > { %1871 = vrot.lane.b32.xlu2 %v1805_v62, %s5505_s30  ;;  %1438 = vst.msk [vmem:[#allocation3 + $0x54] sm:$0xf] %vm1430_vm15, %v1349_v30  ;;  %v3094_v56 = vshrl.u32 %v3024_v7, 16  ;;  %v3097_v45 = vshll.u32 %v3024_v7, 16  ;;  %v3609_v30 = vld [vmem:[#allocation2 + $0x88] sm:$0xf] }
 0x15e   : > { %2706 = vrot.lane.b32.xlu1 %v2601_v52, %s5503_s24  ;;  %890 = vst.msk [vmem:[#allocation3 + $0x114] sm:$0xf] %vm306_vm0, %v858_v32  ;;  %v3217_v20 = vshll.u32 %v3039_v21, 16  ;;  %v5004_v42 = vrot.slane %v3608_v27, 9  ;;  %v3742_v41 = vrot.slane %v3609_v30, 5  ;;  %v5094_v52 = vor.u32 %v5335_v38, %v5093_v22 }
 0x15f   : > { %v2832_v40 = vld [vmem:[#allocation2 + $0x28] sm:$0xf]  ;;  %3838 = vst.msk [vmem:[#allocation3 + $0xd4] sm:$0xf] %vm306_vm0, %v3739_v46  ;;  %v3610_v31 = vld [vmem:[#allocation2 + $0x8c] sm:$0x1] }
 0x160   : > { %3475 = vrot.lane.b32.xlu0 %v3212_v37, %s5505_s30  ;;  %v1343_v44 = vpop.permute.xlu1 %1342  ;;  %v3214_v37 = vshrl.u32 %v3039_v21, 16  ;;  %v2634_v29 = vrot.slane %v7481_v50, 4  ;;  %v2635_v63 = vrot.slane %v2512_v0, 5  ;;  %v3743_v39 = vsel %vm5810_vm13, %v5004_v42, %v3742_v41  ;;  %v6192_v22 = vld [vmem:[#allocation2 + $0x1c] sm:$0xf] }
 0x161   : > { %1435 = vst.msk [vmem:[#allocation3 + $0x30] sm:$0xf] %vm1430_vm15, %v1343_v44  ;;  %v3744_v51 = vrot.slane %v3742_v41, 4  ;;  %v3113_v44 = vshll.u32 %v3026_v61, 16  ;;  %v3096_v7 = vrot.slane %v3094_v56, 4  ;;  %v3099_v58 = vrot.slane %v3097_v45, 5 }
 0x162   : > { %3839 = vst.msk [vmem:[#allocation3 + $0xe0] sm:$0xf] %vm306_vm0, %v3743_v39  ;;  %v3216_v23 = vrot.slane %v3214_v37, 4  ;;  %v3219_v21 = vrot.slane %v3217_v20, 5  ;;  %v3745_v47 = vrot.slane %v3610_v31, 5  ;;  %v3111_v0 = vrot.slane %v3110_v26, 4 }
 0x163   : > { %v1996_v28 = vld [vmem:[#allocation2 + $0xc] sm:$0xf]  ;;  %v3040_v38 = vld [vmem:[#allocation2 + $0x64] sm:$0xf]  ;;  %v843_v27 = vld [vmem:[#allocation2 + $0x30] sm:$0xf]  ;;  %v2636_v45 = vsel %vm5810_vm13, %v2634_v29, %v2635_v63  ;;  %v3100_v46 = vor.u32 %v3099_v58, %v3096_v7 }
 0x164   : > { %v1371_v62 = vpop.permute.xlu2 %1370  ;;  %v2831_v32 = vld [vmem:[#allocation2 + $0x24] sm:$0xf]  ;;  %v3115_v61 = vrot.slane %v3113_v44, 5  ;;  %875 = vst.msk [vmem:[#allocation3 + $0x60] sm:$0xf] %vm306_vm0, %v843_v27  ;;  %v2045_v56 = vshrl.u32 %v1996_v28, 16  ;;  %v3220_v30 = vor.u32 %v3219_v21, %v3216_v23 }
 0x165   : > { %2704 = vrot.lane.b32.xlu2 %v2598_v24, %s5503_s24  ;;  %1449 = vst.msk [vmem:[#allocation3 + $0xd8] sm:$0xf] %vm1430_vm15, %v1371_v62  ;;  %v1578_v24 = vrot.slane %v6192_v22, 5  ;;  %v3223_v37 = vshll.u32 %v3040_v38, 16  ;;  %v1997_v20 = vld [vmem:[#allocation2 + $0x10] sm:$0xf] }
 0x166   : > { %2899 = vrot.lane.b32.xlu1 %v2832_v40, %s5504_s29  ;;  %v3116_v42 = vsel %vm5710_vm4, %v3111_v0, %v3115_v61  ;;  %v5370_v41 = vld [vmem:[%s7465_s1 + $0x38] sm:$0xff]  ;;  %v1471_v40 = vld [vmem:[#allocation2 + $0x20] sm:$0x1]  ;;  %v5369_v31 = vld [vmem:[%s7465_s1 + $0x30] sm:$0xff]  ;;  %v2047_v63 = vrot.slane %v2045_v56, 4  ;;  %v2054_v39 = vshll.u32 %v1997_v20, 16 }
 0x167   : > { %v1580_v26 = vrot.slane %v1578_v24, 4  ;;  %4354 = vmatpush.bf16.msra.mxu0 %v5370_v41  ;;  %v2006_v29 = vld [vmem:[#allocation2 + $0x34] sm:$0xf]  ;;  %v3221_v44 = vrot.slane %v3220_v30, 4  ;;  %v6217_v7 = vrot.slane %v3223_v37, 5  ;;  %v2058_v23 = vshrl.u32 %v1997_v20, 16 }
 0x168   : > { %1891 = vrot.lane.b32.xlu0 %v1815_v34, %s5505_s30  ;;  %v3746_v34 = vsel %vm5810_vm13, %v3744_v51, %v3745_v47  ;;  %v3101_v51 = vrot.slane %v3100_v46, 4  ;;  %v2007_v58 = vld [vmem:[#allocation2 + $0x38] sm:$0x1]  ;;  %v2130_v0 = vshrl.u32 %v2006_v29, 16  ;;  %v5485_v27 = vld [vmem:[#allocation2 + $0x34] sm:$0xf] }
 0x169   : > { %3840 = vst.msk [vmem:[#allocation3 + $0xec] sm:$0xf] %vm306_vm0, %v3746_v34  ;;  %v6219_v47 = vld [vmem:[#allocation2 + $0x58] sm:$0xf]  ;;  %v2136_v38 = vshll.u32 %v2007_v58, 16  ;;  %v1060_v34 = vshrl.u32 %v5485_v27, 16  ;;  %v3226_v41 = vsel %vm5710_vm4, %v3221_v44, %v6217_v7 }
 0x16a   : > { %v3106_v61 = vsel %vm5710_vm4, %v3101_v51, %v6172_v15  ;;  %v5105_v56 = vld [vmem:[#allocation3 + $0xb0] sm:$0xf]  ;;  %v2132_v37 = vrot.slane %v2130_v0, 4  ;;  %v5117_v14 = vld [vmem:[#allocation3 + $0xc8] sm:$0xf] }
 0x16b   : > { %5281 = vmatmul.msk.bf16.gmra.mxu2 %vm4305_vm14, %v5094_v52  ;;  %v2048_v52 = vshll.u32 %v1996_v28, 16  ;;  %v2126_v28 = vshll.u32 %v2006_v29, 16  ;;  %4355 = vmatpush.bf16.msra.mxu0 %v5369_v31  ;;  %v1486_v31 = vld [vmem:[#allocation2 + $0x5c] sm:$0x1]  ;;  %v2138_v51 = vrot.slane %v2136_v38, 5  ;;  %v1062_v44 = vrot.slane %v1060_v34, 4 }
 0x16c   : > { %v2513_v34 = vld [vmem:[#allocation2 + $0x60] sm:$0xe]  ;;  %v1808_v22 = vld [vmem:[#allocation2 + $0x28] sm:$0xf]  ;;  %v2024_v10 = vld [vmem:[#allocation2 + $0x7c] sm:$0xf] }
 0x16d   : > { %2897 = vrot.lane.b32.xlu2 %v2831_v32, %s5504_s29  ;;  %v2050_v32 = vrot.slane %v2048_v52, 5  ;;  %v6225_v30 = vrot.slane %v2126_v28, 5  ;;  %v7480_v52 = vrot.slane %v6219_v47, 5  ;;  %v913_v28 = vld [vmem:[#allocation2 + $0x38] sm:$0x1]  ;;  %v2270_v35 = vshll.u32 %v2024_v10, 16 }
 0x16e   : > { %v1347_v62 = vpop.permute.xlu1 %1346  ;;  %3459 = vrot.lane.b32.xlu1 %v3116_v42, %s5505_s30  ;;  %v2056_v42 = vrot.slane %v2054_v39, 5  ;;  %v2060_v39 = vrot.slane %v2058_v23, 4  ;;  %v936_v23 = vld [vmem:[#allocation2 + $0x94] sm:$0xf] }
 0x16f   : > { %1437 = vst.msk [vmem:[#allocation3 + $0x48] sm:$0xf] %vm1430_vm15, %v1347_v62  ;;  %v1581_v62 = vrot.slane %v1471_v40, 5  ;;  %v2051_v20 = vor.u32 %v2050_v32, %v2047_v63  ;;  %v1998_v40 = vld [vmem:[#allocation2 + $0x14] sm:$0x1]  ;;  %v2133_v29 = vor.u32 %v2132_v37, %v6225_v30  ;;  %v1615_v38 = vrot.slane %v7480_v52, 4 }
 0x170   : > { %2726 = vrot.lane.b32.xlu0 %v2636_v45, %s5503_s24  ;;  %v1375_v21 = vpop.permute.xlu2 %1374  ;;  %v5338_v45 = vld [vmem:[#allocation3 + $0xb8] sm:$0xf0]  ;;  %v2061_v27 = vor.u32 %v2060_v39, %v2056_v42  ;;  %v5368_v37 = vld [vmem:[%s7465_s1 + $0x28] sm:$0xff] }
 0x171   : > { %1451 = vst.msk [vmem:[#allocation3 + $0xf0] sm:$0xf] %vm1430_vm15, %v1375_v21  ;;  %v1582_v15 = vsel %vm5810_vm13, %v1580_v26, %v1581_v62  ;;  %v2052_v63 = vrot.slane %v2051_v20, 4  ;;  %v5106_v58 = vor.u32 %v5338_v45, %v5105_v56  ;;  %v1469_v21 = vld [vmem:[#allocation2 + $0x18] sm:$0xe]  ;;  %v2134_v0 = vrot.slane %v2133_v29, 4  ;;  %4356 = vmatpush.bf16.msra.mxu0 %v5368_v37 }
 0x172   : > { %v935_v26 = vld [vmem:[#allocation2 + $0x90] sm:$0xf]  ;;  %v1616_v62 = vrot.slane %v1486_v31, 5  ;;  %v4965_v56 = vrot.slane %v1469_v21, 9  ;;  %v1066_v45 = vshll.u32 %v913_v28, 16  ;;  %v1063_v20 = vor.u32 %v1062_v44, %v5896_v55 }
 0x173   : > { %v2057_v32 = vsel %vm5710_vm4, %v2052_v63, %v2056_v42  ;;  %v1239_v42 = vshrl.u32 %v935_v26, 16  ;;  %v6255_v31 = vld [vmem:[#allocation2 + $0x64] sm:$0xf]  ;;  %v1242_v29 = vshll.u32 %v935_v26, 16  ;;  %v4986_v21 = vrot.slane %v2513_v34, 9  ;;  %v5366_v34 = vld [vmem:[%s7465_s1 + $0x18] sm:$0xff] }
 0x174   : > { %2460 = vst.msk [vmem:[#allocation3 + $0x4] sm:$0xf] %vm306_vm0, %v2057_v32  ;;  %v5367_v63 = vld [vmem:[%s7465_s1 + $0x20] sm:$0xff]  ;;  %v1617_v39 = vsel %vm5810_vm13, %v1615_v38, %v1616_v62  ;;  %v1064_v32 = vrot.slane %v1063_v20, 4  ;;  %v6278_v37 = vld [vmem:[#allocation2 + $0x1c] sm:$0xf] }
 0x175   : > { %3457 = vrot.lane.b32.xlu2 %v3106_v61, %s5505_s30  ;;  %v2064_v61 = vshll.u32 %v1998_v40, 16  ;;  %v1579_v40 = vsel %vm5810_vm13, %v4965_v56, %v1578_v24  ;;  %v6263_v28 = vld [vmem:[#allocation2 + $0x24] sm:$0xe]  ;;  %v1244_v62 = vrot.slane %v1242_v29, 5  ;;  %v937_v56 = vld [vmem:[#allocation2 + $0x98] sm:$0x1]  ;;  %4357 = vmatpush.bf16.msra.mxu0 %v5367_v63 }
 0x176   : > { %v1373_v46 = vpop.permute.xlu1 %1372  ;;  %1684 = vrot.lane.b32.xlu1 %v1582_v15, %s5504_s29  ;;  %v1999_v15 = vld [vmem:[#allocation2 + $0x18] sm:$0xf]  ;;  %v4981_v29 = vrot.slane %v6263_v28, 9 }
 0x177   : > { %1450 = vst.msk [vmem:[#allocation3 + $0xe4] sm:$0xf] %vm1430_vm15, %v1373_v46  ;;  %v2139_v46 = vsel %vm5710_vm4, %v2134_v0, %v2138_v51  ;;  %v1248_v51 = vshll.u32 %v936_v23, 16  ;;  %v2066_v55 = vrot.slane %v2064_v61, 5  ;;  %v2069_v44 = vshrl.u32 %v1999_v15, 16 }
 0x178   : > { %3477 = vrot.lane.b32.xlu0 %v3226_v41, %s5505_s30  ;;  %2467 = vst.msk [vmem:[#allocation3 + $0x58] sm:$0xf] %vm306_vm0, %v2139_v46  ;;  %v2062_v41 = vrot.slane %v2061_v27, 4  ;;  %v7478_v0 = vrot.slane %v6255_v31, 5  ;;  %v1068_v27 = vrot.slane %v1066_v45, 5  ;;  %v1241_v61 = vrot.slane %v1239_v42, 4 }
 0x179   : > { %v2072_v46 = vshll.u32 %v1999_v15, 16  ;;  %v2071_v20 = vrot.slane %v2069_v44, 4  ;;  %v3611_v42 = vld [vmem:[#allocation2 + $0x90] sm:$0xe]  ;;  %4358 = vmatpush.bf16.msra.mxu0 %v5366_v34  ;;  %v914_v34 = vld [vmem:[#allocation2 + $0x3c] sm:$0xf] }
 0x17a   : > { %v2067_v24 = vsel %vm5710_vm4, %v2062_v41, %v2066_v55  ;;  %v3612_v41 = vld [vmem:[#allocation2 + $0x94] sm:$0xf]  ;;  %v1807_v55 = vld [vmem:[#allocation2 + $0x24] sm:$0xf]  ;;  %v2640_v15 = vsel %vm5810_vm13, %v4986_v21, %v7478_v0  ;;  %v2078_v21 = vshll.u32 %v6278_v37, 16 }
 0x17b   : > { %5282 = vmatmul.msk.bf16.gmra.mxu2 %vm4305_vm14, %v5106_v58  ;;  %v1252_v58 = vshrl.u32 %v936_v23, 16  ;;  %2461 = vst.msk [vmem:[#allocation3 + $0x10] sm:$0xf] %vm306_vm0, %v2067_v24  ;;  %v6272_v23 = vrot.slane %v1248_v51, 5  ;;  %v5005_v51 = vrot.slane %v3611_v42, 9  ;;  %v3749_v63 = vrot.slane %v3612_v41, 5 }
 0x17c   : > { %v2074_v44 = vrot.slane %v2072_v46, 5  ;;  %v1258_v42 = vshll.u32 %v937_v56, 16  ;;  %v2001_v0 = vld [vmem:[#allocation2 + $0x20] sm:$0x1] }
 0x17d   : > { %1682 = vrot.lane.b32.xlu2 %v1579_v40, %s5504_s29  ;;  %v1254_v45 = vrot.slane %v1252_v58, 4  ;;  %v3613_v40 = vld [vmem:[#allocation2 + $0x98] sm:$0x1]  ;;  %v5365_v58 = vld [vmem:[%s7465_s1 + $0x10] sm:$0xff]  ;;  %v3750_v41 = vsel %vm5810_vm13, %v5005_v51, %v3749_v63  ;;  %v3751_v19 = vrot.slane %v3749_v63, 4  ;;  %v6303_v63 = vrot.slane %v2078_v21, 5 }
 0x17e   : > { %1877 = vrot.lane.b32.xlu1 %v1808_v22, %s5505_s30  ;;  %v1351_v38 = vpop.permute.xlu0 %1350  ;;  %v6285_v22 = vld [vmem:[#allocation2 + $0x28] sm:$0xf]  ;;  %v3752_v24 = vrot.slane %v3613_v40, 5  ;;  %v2075_v46 = vor.u32 %v2074_v44, %v2071_v20  ;;  %3841 = vst.msk [vmem:[#allocation3 + $0xf8] sm:$0xf] %vm306_vm0, %v3750_v41  ;;  %4359 = vmatpush.bf16.msra.mxu0 %v5365_v58  ;;  %v1071_v44 = vshrl.u32 %v914_v34, 16 }
 0x17f   : > { %v1379_v26 = vpop.permute.xlu2 %1378  ;;  %1439 = vst.msk [vmem:[#allocation3 + $0x60] sm:$0xf] %vm1430_vm15, %v1351_v38  ;;  %v3049_v40 = vld [vmem:[#allocation2 + $0x88] sm:$0xf]  ;;  %v2604_v56 = vrot.slane %v6285_v22, 5  ;;  %v1090_v22 = vshll.u32 %v916_v8, 16 }
 0x180   : > { %1453 = vst.msk [vmem:[#allocation3 + $0x108] sm:$0xf] %vm1430_vm15, %v1379_v26  ;;  %1704 = vrot.lane.b32.xlu0 %v1617_v39, %s5504_s29  ;;  %v1245_v39 = vor.u32 %v1244_v62, %v1241_v61  ;;  %v5341_v26 = vld [vmem:[#allocation3 + $0xd0] sm:$0xf0]  ;;  %v1069_v61 = vsel %vm5710_vm4, %v1064_v32, %v1068_v27  ;;  %v1255_v62 = vor.u32 %v1254_v45, %v6272_v23  ;;  %v915_v45 = vld [vmem:[#allocation2 + $0x40] sm:$0xf] }
 0x181   : > { %v3753_v51 = vsel %vm5810_vm13, %v3751_v19, %v3752_v24  ;;  %v5118_v32 = vor.u32 %v5341_v26, %v5117_v14  ;;  %v2076_v20 = vrot.slane %v2075_v46, 4  ;;  %v3299_v9 = vshrl.u32 %v3049_v40, 16  ;;  %v3616_v8 = vld [vmem:[#allocation2 + $0xa4] sm:$0x1] }
 0x182   : > { %v1246_v27 = vrot.slane %v1245_v39, 4  ;;  %3842 = vst.msk [vmem:[#allocation3 + $0x104] sm:$0xf] %vm306_vm0, %v3753_v51  ;;  %v1256_v19 = vrot.slane %v1255_v62, 4  ;;  %v1260_v24 = vrot.slane %v1258_v42, 5  ;;  %v1080_v21 = vshll.u32 %v915_v45, 16 }
 0x183   : > { %v2081_v14 = vsel %vm5710_vm4, %v2076_v20, %v6303_v63  ;;  %v6312_v39 = vld [vmem:[#allocation2 + $0x60] sm:$0xe]  ;;  %v6317_v26 = vrot.slane %v3299_v9, 4  ;;  %v6323_v42 = vld [vmem:[#allocation2 + $0x64] sm:$0xf]  ;;  %v2082_v62 = vshrl.u32 %v6278_v37, 16 }
 0x184   : > { %v1377_v38 = vpop.permute.xlu1 %1376  ;;  %2462 = vst.msk [vmem:[#allocation3 + $0x1c] sm:$0xf] %vm306_vm0, %v2081_v14  ;;  %v1251_v41 = vsel %vm5710_vm4, %v1246_v27, %v6272_v23  ;;  %v1073_v46 = vrot.slane %v1071_v44, 4  ;;  %v5364_v9 = vld [vmem:[%s7465_s1 + $0x8] sm:$0xff]  ;;  %v5378_v23 = vld [vmem:[%s7465_s1 + $0x78] sm:$0xff]  ;;  %v1261_v37 = vsel %vm5710_vm4, %v1256_v19, %v1260_v24  ;;  %v4971_v27 = vrot.slane %v6312_v39, 9 }
 0x185   : > { %1875 = vrot.lane.b32.xlu2 %v1807_v55, %s5505_s30  ;;  %1452 = vst.msk [vmem:[#allocation3 + $0xfc] sm:$0xf] %vm1430_vm15, %v1377_v38  ;;  %v1074_v38 = vshll.u32 %v914_v34, 16  ;;  %v2844_v34 = vld [vmem:[#allocation2 + $0x70] sm:$0xf]  ;;  %4360 = vmatpush.bf16.msra.mxu0 %v5364_v9  ;;  %v5363_v19 = vld [vmem:[%s7465_s1] sm:$0xff] }
 0x186   : > { %1352 = vrot.lane.b32.xlu1 %v1069_v61, %s5503_s24  ;;  %v3295_v61 = vshll.u32 %v3049_v40, 16  ;;  %v2500_v20 = vld [vmem:[#allocation2 + $0x2c] sm:$0x1]  ;;  %v6342_v44 = vld [vmem:[#allocation2 + $0x7c] sm:$0xf]  ;;  %4443 = vmatpush.bf16.msra.mxu1 %v5378_v23  ;;  %v5377_v39 = vld [vmem:[%s7465_s1 + $0x70] sm:$0xff] }
 0x187   : > { %v1675_v55 = vpop.permute.xlu2 %1674  ;;  %v1076_v40 = vrot.slane %v1074_v38, 5  ;;  %v2008_v24 = vld [vmem:[#allocation2 + $0x3c] sm:$0xf]  ;;  %v2009_v14 = vld [vmem:[#allocation2 + $0x40] sm:$0xf]  ;;  %v2084_v4 = vrot.slane %v2082_v62, 4  ;;  %v2605_v62 = vsel %vm5810_vm13, %v4981_v29, %v2604_v56 }
 0x188   : > { %1771 = vst.msk [vmem:[#allocation3] sm:$0xf] %vm1770_vm1, %v1675_v55  ;;  %2728 = vrot.lane.b32.xlu0 %v2640_v15, %s5503_s24  ;;  %v6315_v58 = vrot.slane %v3295_v61, 5  ;;  %v1084_v55 = vshrl.u32 %v915_v45, 16  ;;  %v2606_v45 = vrot.slane %v2604_v56, 4  ;;  %v7479_v61 = vrot.slane %v6323_v42, 5 }
 0x189   : > { %v2715_v15 = vpop.permute.xlu0 %2714  ;;  %v1077_v18 = vor.u32 %v1076_v40, %v1073_v46  ;;  %v6354_v13 = vrot.slane %v1080_v21, 5  ;;  %v2150_v51 = vshll.u32 %v2009_v14, 16  ;;  %v2607_v46 = vrot.slane %v2500_v20, 5  ;;  %4361 = vmatpush.bf16.msra.mxu0 %v5363_v19  ;;  %v917_v21 = vld [vmem:[#allocation2 + $0x48] sm:$0xf] }
 0x18a   : > { %2803 = vst.msk [vmem:[#allocation3 + $0x58] sm:$0xf] %vm1430_vm15, %v2715_v15  ;;  %v5129_v15 = vld [vmem:[#allocation3 + $0xe0] sm:$0xf]  ;;  %v1086_v3 = vrot.slane %v1084_v55, 4  ;;  %v3271_v40 = vshll.u32 %v6342_v44, 16  ;;  %4444 = vmatpush.bf16.msra.mxu1 %v5377_v39  ;;  %v1621_v28 = vsel %vm5810_vm13, %v4971_v27, %v7479_v61 }
 0x18b   : > { %5283 = vmatmul.msk.bf16.gmra.mxu2 %vm4305_vm14, %v5118_v32  ;;  %v6337_v32 = vld [vmem:[#allocation3 + $0xe8] sm:$0xf0]  ;;  %v918_v14 = vld [vmem:[#allocation2 + $0x4c] sm:$0xf]  ;;  %v1078_v29 = vrot.slane %v1077_v18, 4  ;;  %v2608_v20 = vsel %vm5810_vm13, %v2606_v45, %v2607_v46  ;;  %v1098_v27 = vshll.u32 %v917_v21, 16 }
 0x18c   : > { %v5130_v23 = vor.u32 %v6337_v32, %v5129_v15  ;;  %v2085_v32 = vor.u32 %v2084_v4, %v6303_v63  ;;  %v5376_v56 = vld [vmem:[%s7465_s1 + $0x68] sm:$0xff]  ;;  %v1095_v63 = vshrl.u32 %v917_v21, 16  ;;  %v3614_v19 = vld [vmem:[#allocation2 + $0x9c] sm:$0xe]  ;;  %v3615_v15 = vld [vmem:[#allocation2 + $0xa0] sm:$0xf] }
 0x18d   : > { %1382 = vrot.lane.b32.xlu2 %v1251_v41, %s5503_s24  ;;  %v2141_v41 = vshrl.u32 %v2008_v24, 16  ;;  %v1104_v18 = vshll.u32 %v918_v14, 16  ;;  %v5375_v45 = vld [vmem:[%s7465_s1 + $0x60] sm:$0xff]  ;;  %v6390_v21 = vrot.slane %v3271_v40, 5 }
 0x18e   : > { %1384 = vrot.lane.b32.xlu1 %v1261_v37, %s5503_s24  ;;  %v2144_v37 = vshll.u32 %v2008_v24, 16  ;;  %v6365_v24 = vrot.slane %v2150_v51, 5  ;;  %v2088_v51 = vshll.u32 %v2001_v0, 16  ;;  %v1108_v0 = vshrl.u32 %v918_v14, 16  ;;  %4445 = vmatpush.bf16.msra.mxu1 %v5376_v56  ;;  %v3047_v46 = vld [vmem:[#allocation2 + $0x80] sm:$0x1] }
 0x18f   : > { %v1868_v38 = vpop.permute.xlu2 %1867 }
 0x190   : > { %1964 = vst.msk [vmem:[#allocation3] sm:$0xf] %vm1963_vm2, %v1868_v38  ;;  %2923 = vrot.lane.b32.xlu0 %v2844_v34, %s5504_s29  ;;  %v1381_v9 = vpop.permute.xlu1 %1380  ;;  %v2143_v38 = vrot.slane %v2141_v41, 4  ;;  %v2146_v34 = vrot.slane %v2144_v37, 5  ;;  %v3275_v41 = vshrl.u32 %v6342_v44, 16  ;;  %v1087_v44 = vor.u32 %v1086_v3, %v6354_v13 }
 0x191   : > { %1454 = vst.msk [vmem:[#allocation3 + $0x114] sm:$0xf] %vm1430_vm15, %v1381_v9  ;;  %v5006_v37 = vrot.slane %v3614_v19, 9  ;;  %v3756_v9 = vrot.slane %v3615_v15, 5  ;;  %v1097_v19 = vrot.slane %v1095_v63, 4  ;;  %v1100_v15 = vrot.slane %v1098_v27, 5 }
 0x192   : > { %v2147_v55 = vor.u32 %v2146_v34, %v2143_v38  ;;  %v3759_v38 = vrot.slane %v3616_v8, 5  ;;  %v2086_v34 = vrot.slane %v2085_v32, 4  ;;  %v1088_v56 = vrot.slane %v1087_v44, 4  ;;  %4446 = vmatpush.bf16.msra.mxu1 %v5375_v45  ;;  %v3027_v44 = vld [vmem:[#allocation2 + $0x30] sm:$0xf]  ;;  %v5374_v63 = vld [vmem:[%s7465_s1 + $0x58] sm:$0xff] }
 0x193   : > { %v2090_v32 = vrot.slane %v2088_v51, 5  ;;  %v1110_v8 = vrot.slane %v1108_v0, 4  ;;  %v919_v51 = vld [vmem:[#allocation2 + $0x50] sm:$0x1]  ;;  %v3028_v27 = vld [vmem:[#allocation2 + $0x34] sm:$0xf] }
 0x194   : > { %v2148_v4 = vrot.slane %v2147_v55, 4  ;;  %v3757_v55 = vsel %vm5810_vm13, %v5006_v37, %v3756_v9  ;;  %v1820_v37 = vld [vmem:[#allocation2 + $0x70] sm:$0xf]  ;;  %v1114_v0 = vshll.u32 %v919_v51, 16  ;;  %v3118_v45 = vshrl.u32 %v3027_v44, 16 }
 0x195   : > { %2708 = vrot.lane.b32.xlu2 %v2605_v62, %s5503_s24  ;;  %3843 = vst.msk [vmem:[#allocation3 + $0x110] sm:$0xf] %vm306_vm0, %v3757_v55  ;;  %v3127_v55 = vshll.u32 %v3028_v27, 16 }
 0x196   : > { %2710 = vrot.lane.b32.xlu1 %v2608_v20, %s5503_s24  ;;  %v2153_v3 = vsel %vm5710_vm4, %v2148_v4, %v6365_v24  ;;  %v1092_v20 = vrot.slane %v1090_v22, 5  ;;  %v3277_v4 = vrot.slane %v3275_v41, 4  ;;  %v2091_v41 = vsel %vm5710_vm4, %v2086_v34, %v2090_v32  ;;  %4447 = vmatpush.bf16.msra.mxu1 %v5374_v63  ;;  %v6439_v63 = vld [vmem:[#allocation2 + $0x38] sm:$0x1] }
 0x197   : > { %v2701_v39 = vpop.permute.xlu2 %2700  ;;  %2468 = vst.msk [vmem:[#allocation3 + $0x64] sm:$0xf] %vm306_vm0, %v2153_v3  ;;  %v3281_v22 = vshll.u32 %v3047_v46, 16  ;;  %v3121_v46 = vshll.u32 %v3027_v44, 16  ;;  %v3131_v32 = vshrl.u32 %v3028_v27, 16  ;;  %v6435_v51 = vrot.slane %v1114_v0, 5 }
 0x198   : > { %2796 = vst.msk [vmem:[#allocation3 + $0x4] sm:$0xf] %vm1430_vm15, %v2701_v39  ;;  %1706 = vrot.lane.b32.xlu0 %v1621_v28, %s5504_s29  ;;  %v1677_v62 = vpop.permute.xlu1 %1676  ;;  %v3758_v28 = vrot.slane %v3756_v9, 4  ;;  %v1083_v39 = vsel %vm5710_vm4, %v1078_v29, %v6354_v13  ;;  %v1093_v13 = vsel %vm5710_vm4, %v1088_v56, %v1092_v20  ;;  %v3278_v29 = vor.u32 %v3277_v4, %v6390_v21  ;;  %v2833_v20 = vld [vmem:[#allocation2 + $0x30] sm:$0xf] }
 0x199   : > { %1772 = vst.msk [vmem:[#allocation3 + $0xc] sm:$0xf] %vm1770_vm1, %v1677_v62  ;;  %v1101_v9 = vor.u32 %v1100_v15, %v1097_v19  ;;  %v6424_v62 = vrot.slane %v3281_v22, 5  ;;  %v5141_v19 = vld [vmem:[#allocation3 + $0xf8] sm:$0xf]  ;;  %v6437_v44 = vrot.slane %v3118_v45, 4 }
 0x19a   : > { %v6395_v14 = vpop.permute.xlu0 %3465  ;;  %v3760_v40 = vsel %vm5810_vm13, %v3758_v28, %v3759_v38  ;;  %2463 = vst.msk [vmem:[#allocation3 + $0x28] sm:$0xf] %vm306_vm0, %v2091_v41  ;;  %v5373_v38 = vld [vmem:[%s7465_s1 + $0x50] sm:$0xff]  ;;  %v2002_v28 = vld [vmem:[#allocation2 + $0x24] sm:$0xf]  ;;  %v6429_v4 = vrot.slane %v3278_v29, 4 }
 0x19b   : > { %5284 = vmatmul.msk.bf16.gmra.mxu2 %vm4305_vm14, %v5130_v23  ;;  %v6404_v23 = vrot.slane %v1104_v18, 5  ;;  %3844 = vst.msk [vmem:[#allocation3 + $0x11c] sm:$0xf] %vm306_vm0, %v3760_v40  ;;  %v5347_v15 = vld [vmem:[#allocation3 + $0x100] sm:$0xf0]  ;;  %v6431_v40 = vrot.slane %v1101_v9, 4  ;;  %4448 = vmatpush.bf16.msra.mxu1 %v5373_v38 }
 0x19c   : > { %v2834_v41 = vld [vmem:[#allocation2 + $0x34] sm:$0xf]  ;;  %v2845_v29 = vld [vmem:[#allocation2 + $0x78] sm:$0xf]  ;;  %v6442_v27 = vrot.slane %v3121_v46, 5  ;;  %v6449_v0 = vrot.slane %v3131_v32, 4  ;;  %v3284_v46 = vsel %vm5710_vm4, %v6429_v4, %v6424_v62  ;;  %v5142_v54 = vor.u32 %v5347_v15, %v5141_v19 }
 0x19d   : > { %1354 = vrot.lane.b32.xlu2 %v1083_v39, %s5503_s24  ;;  %v1111_v3 = vor.u32 %v1110_v8, %v6404_v23  ;;  %v2003_v39 = vld [vmem:[#allocation2 + $0x28] sm:$0xf]  ;;  %v2093_v8 = vshrl.u32 %v2002_v28, 16  ;;  %v3137_v32 = vshll.u32 %v6439_v63, 16 }
 0x19e   : > { %1356 = vrot.lane.b32.xlu1 %v1093_v13, %s5503_s24  ;;  %v2096_v13 = vshll.u32 %v2002_v28, 16  ;;  %v2102_v9 = vshll.u32 %v2003_v39, 16  ;;  %v3617_v45 = vld [vmem:[#allocation2 + $0xa8] sm:$0xe]  ;;  %v5013_v28 = vld [vmem:[#allocation3] sm:$0xf] }
 0x19f   : > { %v2894_v18 = vpop.permute.xlu2 %2893  ;;  %v6433_v22 = vrot.slane %v1111_v3, 4  ;;  %v2004_v3 = vld [vmem:[#allocation2 + $0x2c] sm:$0x1]  ;;  %v2095_v61 = vrot.slane %v2093_v8, 4  ;;  %v5007_v52 = vrot.slane %v3617_v45, 9  ;;  %v5371_v8 = vld [vmem:[%s7465_s1 + $0x40] sm:$0xff] }
 0x1a0   : > { %2989 = vst.msk [vmem:[#allocation3 + $0x4] sm:$0xf] %vm1770_vm1, %v2894_v18  ;;  %1901 = vrot.lane.b32.xlu0 %v1820_v37, %s5505_s30  ;;  %v1870_v34 = vpop.permute.xlu1 %1869  ;;  %v6444_v18 = vrot.slane %v3127_v55, 5  ;;  %v5372_v37 = vld [vmem:[%s7465_s1 + $0x48] sm:$0xff]  ;;  %v920_v55 = vld [vmem:[#allocation2 + $0x54] sm:$0xf] }
 0x1a1   : > { %1965 = vst.msk [vmem:[#allocation3 + $0xc] sm:$0xf] %vm1963_vm2, %v1870_v34  ;;  %v3618_v34 = vld [vmem:[#allocation2 + $0xac] sm:$0xf]  ;;  %4449 = vmatpush.bf16.msra.mxu1 %v5372_v37  ;;  %v2098_v53 = vrot.slane %v2096_v13, 5  ;;  %v2104_v19 = vrot.slane %v2102_v9, 5  ;;  %v1107_v13 = vsel %vm5710_vm4, %v6431_v40, %v6404_v23 }
 0x1a2   : > { %v6426_v56 = vpop.permute.xlu0 %1692  ;;  %v3763_v50 = vrot.slane %v3618_v34, 5  ;;  %v2106_v15 = vshrl.u32 %v2003_v39, 16  ;;  %v1119_v9 = vshrl.u32 %v920_v55, 16  ;;  %v2025_v23 = vld [vmem:[#allocation2 + $0x80] sm:$0x1] }
 0x1a3   : > { %v2099_v37 = vor.u32 %v2098_v53, %v2095_v61  ;;  %v1117_v53 = vsel %vm5710_vm4, %v6433_v22, %v6435_v51  ;;  %v3124_v61 = vor.u32 %v6442_v27, %v6437_v44  ;;  %v2026_v22 = vld [vmem:[#allocation2 + $0x84] sm:$0xf]  ;;  %v3139_v51 = vrot.slane %v3137_v32, 5 }
 0x1a4   : > { %v3764_v45 = vsel %vm5810_vm13, %v5007_v52, %v3763_v50  ;;  %v3765_v34 = vrot.slane %v3763_v50, 4  ;;  %v921_v52 = vld [vmem:[#allocation2 + $0x58] sm:$0xf]  ;;  %v2108_v39 = vrot.slane %v2106_v15, 4  ;;  %v1121_v32 = vrot.slane %v1119_v9, 4 }
 0x1a5   : > { %2901 = vrot.lane.b32.xlu2 %v2833_v20, %s5504_s29  ;;  %v3619_v20 = vld [vmem:[#allocation2 + $0xb0] sm:$0x1]  ;;  %4450 = vmatpush.bf16.msra.mxu1 %v5371_v8  ;;  %3845 = vst.msk [vmem:[#allocation3 + $0x128] sm:$0xf] %vm306_vm0, %v3764_v45  ;;  %v2100_v40 = vrot.slane %v2099_v37, 4  ;;  %v1128_v44 = vshll.u32 %v921_v52, 16 }
 0x1a6   : > { %2903 = vrot.lane.b32.xlu1 %v2834_v41, %s5504_s29  ;;  %v3766_v41 = vrot.slane %v3619_v20, 5  ;;  %v6484_v20 = vrot.slane %v2270_v35, 5  ;;  %v1132_v27 = vshrl.u32 %v921_v52, 16  ;;  %v6489_v45 = vld [vmem:[#allocation2 + $0x88] sm:$0xf]  ;;  %v3125_v35 = vrot.slane %v3124_v61, 4 }
 0x1a7   : > { %v3454_v38 = vpop.permute.xlu2 %3453  ;;  %v2285_v15 = vshrl.u32 %v2026_v22, 16  ;;  %v922_v37 = vld [vmem:[#allocation2 + $0x5c] sm:$0x1] }
 0x1a8   : > { %3549 = vst.msk [vmem:[#allocation3 + $0x4] sm:$0xf] %vm1963_vm2, %v3454_v38  ;;  %2925 = vrot.lane.b32.xlu0 %v2845_v29, %s5504_s29  ;;  %v2703_v62 = vpop.permute.xlu1 %2702  ;;  %v5316_v4 = vld [vmem:[#allocation3 + $0x8] sm:$0xf0]  ;;  %v2112_v38 = vshll.u32 %v2004_v3, 16  ;;  %v3767_v50 = vsel %vm5810_vm13, %v3765_v34, %v3766_v41  ;;  %v1122_v3 = vshll.u32 %v920_v55, 16  ;;  %v2105_v41 = vsel %vm5710_vm4, %v2100_v40, %v2104_v19 }
 0x1a9   : > { %2797 = vst.msk [vmem:[#allocation3 + $0x10] sm:$0xf] %vm1430_vm15, %v2703_v62  ;;  %v5014_v63 = vor.u32 %v5316_v4, %v5013_v28  ;;  %v2109_v28 = vor.u32 %v2108_v39, %v2104_v19  ;;  %v1134_v39 = vrot.slane %v1132_v27, 4  ;;  %v3130_v40 = vsel %vm5710_vm4, %v3125_v35, %v6444_v18 }
 0x1aa   : > { %v2717_v29 = vpop.permute.xlu0 %2716  ;;  %3846 = vst.msk [vmem:[#allocation3 + $0x134] sm:$0xf] %vm306_vm0, %v3767_v50  ;;  %v2114_v55 = vrot.slane %v2112_v38, 5  ;;  %v1124_v34 = vrot.slane %v1122_v3, 5  ;;  %v6502_v50 = vld [vmem:[#allocation2 + $0x7c] sm:$0xf] }
 0x1ab   : > { %5285 = vmatmul.msk.bf16.gmra.mxu2 %vm4305_vm14, %v5142_v54  ;;  %2804 = vst.msk [vmem:[#allocation3 + $0x64] sm:$0xf] %vm1430_vm15, %v2717_v29  ;;  %v2274_v54 = vshrl.u32 %v2024_v10, 16  ;;  %4362 = vmatmul.bf16.vlgmr.msra.gmra.mxu0 %v5014_v63  ;;  %v3134_v10 = vor.u32 %v6449_v0, %v6444_v18  ;;  %v2110_v62 = vrot.slane %v2109_v28, 4  ;;  %v2280_v0 = vshll.u32 %v2025_v23, 16 }
 0x1ac   : > { %2464 = vst.msk [vmem:[#allocation3 + $0x34] sm:$0xf] %vm306_vm0, %v2105_v41  ;;  %v5153_v23 = vld [vmem:[#allocation3 + $0x110] sm:$0xf]  ;;  %v1125_v28 = vor.u32 %v1124_v34, %v1121_v32  ;;  %v1138_v27 = vshll.u32 %v922_v37, 16  ;;  %v7486_v34 = vrot.slane %v6502_v50, 5 }
 0x1ad   : > { %1358 = vrot.lane.b32.xlu2 %v1107_v13, %s5503_s24  ;;  %v2276_v4 = vrot.slane %v2274_v54, 4  ;;  %v3135_v63 = vrot.slane %v3134_v10, 4  ;;  %v2115_v19 = vsel %vm5710_vm4, %v2110_v62, %v2114_v55  ;;  %v2288_v13 = vshll.u32 %v2026_v22, 16  ;;  %v5350_v10 = vld [vmem:[#allocation3 + $0x118] sm:$0xf0] }
 0x1ae   : > { %1360 = vrot.lane.b32.xlu1 %v1117_v53, %s5503_s24  ;;  %v2287_v54 = vrot.slane %v2285_v15, 4  ;;  %v2294_v53 = vshll.u32 %v6489_v45, 16  ;;  %2465 = vst.msk [vmem:[#allocation3 + $0x40] sm:$0xf] %vm306_vm0, %v2115_v19  ;;  %v2282_v9 = vrot.slane %v2280_v0, 5 }
 0x1af   : > { %v1679_v8 = vpop.permute.xlu2 %1678  ;;  %v2277_v38 = vor.u32 %v2276_v4, %v6484_v20  ;;  %v2290_v3 = vrot.slane %v2288_v13, 5  ;;  %v3048_v22 = vld [vmem:[#allocation2 + $0x84] sm:$0xf]  ;;  %v923_v55 = vld [vmem:[#allocation2 + $0x60] sm:$0xf]  ;;  %v3140_v4 = vsel %vm5710_vm4, %v3135_v63, %v3139_v51  ;;  %v6520_v13 = vpop.f32.mrf.mxu2  ;;  %v5154_v51 = vor.u32 %v5350_v10, %v5153_v23 }
 0x1b0   : > { %1773 = vst.msk [vmem:[#allocation3 + $0x18] sm:$0xf] %vm1770_vm1, %v1679_v8  ;;  %3487 = vrot.lane.b32.xlu0 %v3284_v46, %s5505_s30  ;;  %v2896_v29 = vpop.permute.xlu1 %2895  ;;  %v6500_v46 = vrot.slane %v1128_v44, 5  ;;  %v1821_v44 = vld [vmem:[#allocation2 + $0x78] sm:$0xf]  ;;  %v6515_v35 = vrot.slane %v2294_v53, 5 }
 0x1b1   : > { %2990 = vst.msk [vmem:[#allocation3 + $0x10] sm:$0xf] %vm1770_vm1, %v2896_v29  ;;  %v2278_v61 = vrot.slane %v2277_v38, 4  ;;  %v3620_v8 = vld [vmem:[#allocation2 + $0xb4] sm:$0xe]  ;;  %v2291_v62 = vor.u32 %v2290_v3, %v2287_v54  ;;  %v3286_v37 = vshrl.u32 %v3048_v22, 16 }
 0x1b2   : > { %v6497_v52 = vpop.permute.xlu0 %2911  ;;  %v1135_v0 = vor.u32 %v1134_v39, %v6500_v46  ;;  %v3621_v15 = vld [vmem:[#allocation2 + $0xb8] sm:$0xf]  ;;  %v3622_v29 = vld [vmem:[#allocation2 + $0xbc] sm:$0x1]  ;;  %v5008_v18 = vrot.slane %v3620_v8, 9  ;;  %v1126_v63 = vrot.slane %v1125_v28, 4 }
 0x1b3   : > { %v2283_v41 = vsel %vm5710_vm4, %v2278_v61, %v2282_v9  ;;  %v3770_v19 = vrot.slane %v3621_v15, 5  ;;  %v3773_v38 = vrot.slane %v3622_v29, 5  ;;  %v3289_v39 = vshll.u32 %v3048_v22, 16  ;;  %v2521_v61 = vld [vmem:[#allocation2 + $0x80] sm:$0x1] }
 0x1b4   : > { %2479 = vst.msk [vmem:[#allocation3 + $0xe8] sm:$0xf] %vm306_vm0, %v2283_v41  ;;  %v2292_v54 = vrot.slane %v2291_v62, 4  ;;  %v1143_v9 = vshrl.u32 %v923_v55, 16  ;;  %v1146_v3 = vshll.u32 %v923_v55, 16  ;;  %v1136_v23 = vrot.slane %v1135_v0, 4 }
 0x1b5   : > { %3461 = vrot.lane.b32.xlu2 %v3130_v40, %s5505_s30  ;;  %v3771_v40 = vsel %vm5810_vm13, %v5008_v18, %v3770_v19  ;;  %v3772_v8 = vrot.slane %v3770_v19, 4  ;;  %v1140_v10 = vrot.slane %v1138_v27, 5  ;;  %v2655_v22 = vrot.slane %v7486_v34, 4  ;;  %v1473_v55 = vld [vmem:[#allocation2 + $0x28] sm:$0xf] }
 0x1b6   : > { %3463 = vrot.lane.b32.xlu1 %v3140_v4, %s5505_s30  ;;  %v2297_v28 = vsel %vm5710_vm4, %v2292_v54, %v6515_v35  ;;  %3847 = vst.msk [vmem:[#allocation3 + $0x140] sm:$0xf] %vm306_vm0, %v3771_v40  ;;  %v1131_v4 = vsel %vm5710_vm4, %v1126_v63, %v6500_v46  ;;  %v2656_v0 = vrot.slane %v2521_v61, 5  ;;  %v3288_v27 = vrot.slane %v3286_v37, 4  ;;  %v1472_v37 = vld [vmem:[#allocation2 + $0x24] sm:$0xe] }
 0x1b7   : > { %v1872_v32 = vpop.permute.xlu2 %1871  ;;  %v3774_v62 = vsel %vm5810_vm13, %v3772_v8, %v3773_v38  ;;  %v3291_v15 = vrot.slane %v3289_v39, 5  ;;  %v1145_v29 = vrot.slane %v1143_v9, 4  ;;  %v1148_v18 = vrot.slane %v1146_v3, 5  ;;  %2480 = vst.msk [vmem:[#allocation3 + $0xf4] sm:$0xf] %vm306_vm0, %v2297_v28 }
 0x1b8   : > { %1966 = vst.msk [vmem:[#allocation3 + $0x18] sm:$0xf] %vm1963_vm2, %v1872_v32  ;;  %1903 = vrot.lane.b32.xlu0 %v1821_v44, %s5505_s30  ;;  %v3456_v53 = vpop.permute.xlu1 %3455  ;;  %v924_v44 = vld [vmem:[#allocation2 + $0x64] sm:$0xf]  ;;  %v1141_v38 = vsel %vm5710_vm4, %v1136_v23, %v1140_v10  ;;  %v2657_v46 = vsel %vm5810_vm13, %v2655_v22, %v2656_v0  ;;  %v1474_v63 = vld [vmem:[#allocation2 + $0x2c] sm:$0x1]  ;;  %v6553_v10 = vpop.f32.mrf.mxu2 }
 0x1b9   : > { %3550 = vst.msk [vmem:[#allocation3 + $0x10] sm:$0xf] %vm1963_vm2, %v3456_v53  ;;  %v1152_v32 = vshll.u32 %v924_v44, 16  ;;  %v1156_v19 = vshrl.u32 %v924_v44, 16  ;;  %v6551_v39 = vld [vmem:[#allocation2 + $0x7c] sm:$0xf]  ;;  %v3292_v3 = vor.u32 %v3291_v15, %v3288_v27  ;;  %v1149_v40 = vor.u32 %v1148_v18, %v1145_v29 }
 0x1ba   : > { %v6527_v41 = vpop.permute.xlu0 %1694  ;;  %3848 = vst.msk [vmem:[#allocation3 + $0x14c] sm:$0xf] %vm306_vm0, %v3774_v62  ;;  %v5315_v61 = vld [vmem:[#allocation3 + $0x4] sm:$0xf]  ;;  %v4966_v28 = vrot.slane %v1472_v37, 9  ;;  %v1588_v27 = vrot.slane %v1474_v63, 5 }
 0x1bb   : > { %5286 = vmatmul.msk.bf16.gmra.mxu2 %vm4305_vm14, %v5154_v51  ;;  %v1585_v51 = vrot.slane %v1473_v55, 5  ;;  %v1154_v8 = vrot.slane %v1152_v32, 5  ;;  %v1158_v23 = vrot.slane %v1156_v19, 4  ;;  %v925_v62 = vld [vmem:[#allocation2 + $0x68] sm:$0x1]  ;;  %v7487_v15 = vrot.slane %v6551_v39, 5 }
 0x1bc   : > { %v5353_v0 = vld [vmem:[#allocation3 + $0x130] sm:$0xf0]  ;;  %v3293_v29 = vrot.slane %v3292_v3, 4  ;;  %v1150_v18 = vrot.slane %v1149_v40, 4  ;;  %v1162_v19 = vshll.u32 %v925_v62, 16 }
 0x1bd   : > { %1362 = vrot.lane.b32.xlu2 %v1131_v4, %s5503_s24  ;;  %v1587_v55 = vrot.slane %v1585_v51, 4  ;;  %v5165_v4 = vld [vmem:[#allocation3 + $0x128] sm:$0xf]  ;;  %v1159_v32 = vor.u32 %v1158_v23, %v1154_v8  ;;  %v2016_v37 = vld [vmem:[#allocation2 + $0x5c] sm:$0x1] }
 0x1be   : > { %1364 = vrot.lane.b32.xlu1 %v1141_v38, %s5503_s24  ;;  %v1586_v38 = vsel %vm5810_vm13, %v4966_v28, %v1585_v51  ;;  %v5166_v34 = vor.u32 %v5353_v0, %v5165_v4  ;;  %v3298_v63 = vsel %vm5710_vm4, %v3293_v29, %v6315_v58  ;;  %v2208_v3 = vshll.u32 %v2016_v37, 16  ;;  %v3624_v40 = vld [vmem:[#allocation2 + $0xc4] sm:$0xf]  ;;  %v3625_v23 = vld [vmem:[#allocation2 + $0xc8] sm:$0x1] }
 0x1bf   : > { %v2705_v54 = vpop.permute.xlu2 %2704  ;;  %v3777_v62 = vrot.slane %v3624_v40, 5  ;;  %v3780_v4 = vrot.slane %v3625_v23, 5 }
 0x1c0   : > { %2798 = vst.msk [vmem:[#allocation3 + $0x1c] sm:$0xf] %vm1430_vm15, %v2705_v54  ;;  %2738 = vrot.lane.b32.xlu0 %v2657_v46, %s5503_s24  ;;  %v1681_v53 = vpop.permute.xlu1 %1680  ;;  %v5015_v9 = vld [vmem:[#allocation3 + $0xc] sm:$0xf0]  ;;  %v2015_v54 = vld [vmem:[#allocation2 + $0x58] sm:$0xf]  ;;  %v1589_v46 = vsel %vm5810_vm13, %v1587_v55, %v1588_v27 }
 0x1c1   : > { %1774 = vst.msk [vmem:[#allocation3 + $0x24] sm:$0xf] %vm1770_vm1, %v1681_v53  ;;  %v5018_v22 = vor.u32 %v5315_v61, %v5015_v9  ;;  %v2198_v53 = vshll.u32 %v2015_v54, 16  ;;  %v2202_v61 = vshrl.u32 %v2015_v54, 16  ;;  %v3623_v9 = vld [vmem:[#allocation2 + $0xc0] sm:$0xe] }
 0x1c2   : > { %v6555_v44 = vpop.permute.xlu0 %1889  ;;  %v5009_v28 = vrot.slane %v3623_v9, 9  ;;  %v1164_v27 = vrot.slane %v1162_v19, 5  ;;  %v1495_v54 = vld [vmem:[#allocation2 + $0x80] sm:$0x1]  ;;  %v2210_v37 = vrot.slane %v2208_v3, 5  ;;  %v3779_v9 = vrot.slane %v3777_v62, 4 }
 0x1c3   : > { %4451 = vmatmul.bf16.vlgmr.msra.gmra.mxu1 %v5018_v22  ;;  %v6570_v22 = vrot.slane %v2198_v53, 5  ;;  %v2204_v55 = vrot.slane %v2202_v61, 4  ;;  %v1636_v61 = vrot.slane %v7487_v15, 4  ;;  %v859_v3 = vld [vmem:[#allocation2 + $0x90] sm:$0xf] }
 0x1c4   : > { %v3778_v53 = vsel %vm5810_vm13, %v5009_v28, %v3777_v62  ;;  %891 = vst.msk [vmem:[#allocation3 + $0x120] sm:$0xf] %vm306_vm0, %v859_v3  ;;  %v5025_v62 = vld [vmem:[#allocation3 + $0x18] sm:$0xf]  ;;  %v1810_v3 = vld [vmem:[#allocation2 + $0x34] sm:$0xf] }
 0x1c5   : > { %1686 = vrot.lane.b32.xlu2 %v1586_v38, %s5504_s29  ;;  %v1160_v38 = vrot.slane %v1159_v32, 4  ;;  %3849 = vst.msk [vmem:[#allocation3 + $0x158] sm:$0xf] %vm306_vm0, %v3778_v53  ;;  %v6582_v32 = vpop.f32.mrf.mxu2 }
 0x1c6   : > { %1688 = vrot.lane.b32.xlu1 %v1589_v46, %s5504_s29  ;;  %v2205_v46 = vor.u32 %v2204_v55, %v6570_v22 }
 0x1c7   : > { %v2898_v51 = vpop.permute.xlu2 %2897  ;;  %v1165_v40 = vsel %vm5710_vm4, %v1160_v38, %v1164_v27 }
 0x1c8   : > { %2991 = vst.msk [vmem:[#allocation3 + $0x1c] sm:$0xf] %vm1770_vm1, %v2898_v51  ;;  %3489 = vrot.lane.b32.xlu0 %v3298_v63, %s5505_s30  ;;  %v1874_v0 = vpop.permute.xlu1 %1873  ;;  %v2206_v19 = vrot.slane %v2205_v46, 4  ;;  %v3781_v51 = vsel %vm5810_vm13, %v3779_v9, %v3780_v4  ;;  %v1637_v63 = vrot.slane %v1495_v54, 5  ;;  %v2021_v46 = vld [vmem:[#allocation2 + $0x70] sm:$0xf] }
 0x1c9   : > { %1967 = vst.msk [vmem:[#allocation3 + $0x24] sm:$0xf] %vm1963_vm2, %v1874_v0  ;;  %v2522_v0 = vld [vmem:[#allocation2 + $0x84] sm:$0xe]  ;;  %v1809_v9 = vld [vmem:[#allocation2 + $0x30] sm:$0xf] }
 0x1ca   : > { %v6573_v29 = vpop.permute.xlu0 %2913  ;;  %3850 = vst.msk [vmem:[#allocation3 + $0x164] sm:$0xf] %vm306_vm0, %v3781_v51  ;;  %v2211_v23 = vsel %vm5710_vm4, %v2206_v19, %v2210_v37  ;;  %v5486_v37 = vld [vmem:[#allocation2 + $0x40] sm:$0xf]  ;;  %v5356_v19 = vld [vmem:[#allocation3 + $0x148] sm:$0xf0] }
 0x1cb   : > { %5287 = vmatmul.msk.bf16.gmra.mxu2 %vm4305_vm14, %v5166_v34  ;;  %v1155_v34 = vsel %vm5710_vm4, %v1150_v18, %v1154_v8  ;;  %v1638_v8 = vsel %vm5810_vm13, %v1636_v61, %v1637_v63  ;;  %2473 = vst.msk [vmem:[#allocation3 + $0xa0] sm:$0xf] %vm306_vm0, %v2211_v23  ;;  %v6601_v18 = vld [vmem:[#allocation2 + $0x88] sm:$0xf]  ;;  %v3155_v53 = vshrl.u32 %v5486_v37, 16  ;;  %v4989_v61 = vrot.slane %v2522_v0, 9 }
 0x1cc   : > { %v7490_v54 = vrot.slane %v6601_v18, 5  ;;  %v2501_v51 = vld [vmem:[#allocation2 + $0x30] sm:$0xe]  ;;  %v2246_v23 = vshll.u32 %v2021_v46, 16 }
 0x1cd   : > { %1366 = vrot.lane.b32.xlu2 %v1155_v34, %s5503_s24  ;;  %v5177_v34 = vld [vmem:[#allocation3 + $0x140] sm:$0xf]  ;;  %v6608_v63 = vpop.f32.mrf.mxu2  ;;  %v4982_v0 = vrot.slane %v2501_v51, 9  ;;  %v3157_v15 = vrot.slane %v3155_v53, 4  ;;  %v7525_v51 = vrot.slane %v5923_v49, 5 }
 0x1ce   : > { %1368 = vrot.lane.b32.xlu1 %v1165_v40, %s5503_s24  ;;  %v2022_v40 = vld [vmem:[#allocation2 + $0x74] sm:$0x1] }
 0x1cf   : > { %v3458_v28 = vpop.permute.xlu2 %3457  ;;  %v2256_v17 = vshll.u32 %v2022_v40, 16  ;;  %v2850_v53 = vld [vmem:[#allocation2 + $0x94] sm:$0xf]  ;;  %v845_v40 = vld [vmem:[#allocation2 + $0x3c] sm:$0xf] }
 0x1d0   : > { %3551 = vst.msk [vmem:[#allocation3 + $0x1c] sm:$0xf] %vm1963_vm2, %v3458_v28  ;;  %1716 = vrot.lane.b32.xlu0 %v1638_v8, %s5504_s29  ;;  %v2707_v55 = vpop.permute.xlu1 %2706  ;;  %v5319_v4 = vld [vmem:[#allocation3 + $0x20] sm:$0xf0]  ;;  %v2250_v28 = vshrl.u32 %v2021_v46, 16 }
 0x1d1   : > { %2799 = vst.msk [vmem:[#allocation3 + $0x28] sm:$0xf] %vm1430_vm15, %v2707_v55  ;;  %v5026_v27 = vor.u32 %v5319_v4, %v5025_v62  ;;  %v2661_v55 = vsel %vm5810_vm13, %v4989_v61, %v7490_v54  ;;  %v2020_v62 = vld [vmem:[#allocation2 + $0x6c] sm:$0xf]  ;;  %v5178_v4 = vor.u32 %v5356_v19, %v5177_v34  ;;  %v3032_v46 = vld [vmem:[#allocation2 + $0x44] sm:$0x1] }
 0x1d2   : > { %v6603_v38 = vpop.permute.xlu0 %3475  ;;  %v2252_v37 = vrot.slane %v2250_v28, 4  ;;  %v2237_v34 = vshrl.u32 %v2020_v62, 16  ;;  %v2240_v19 = vshll.u32 %v2020_v62, 16  ;;  %v2835_v28 = vld [vmem:[#allocation2 + $0x3c] sm:$0xf] }
 0x1d3   : > { %4367 = vmatmul.bf16.gmra.mxu0 %v5026_v27  ;;  %v6617_v27 = vrot.slane %v2246_v23, 5  ;;  %v2612_v23 = vsel %vm5810_vm13, %v4982_v0, %v7525_v51  ;;  %877 = vst.msk [vmem:[#allocation3 + $0x78] sm:$0xf] %vm306_vm0, %v845_v40  ;;  %v2017_v62 = vld [vmem:[#allocation2 + $0x60] sm:$0xf] }
 0x1d4   : > { %v2239_v6 = vrot.slane %v2237_v34, 4  ;;  %v2242_v49 = vrot.slane %v2240_v19, 5  ;;  %v2018_v0 = vld [vmem:[#allocation2 + $0x64] sm:$0xf]  ;;  %v2216_v51 = vshll.u32 %v2017_v62, 16 }
 0x1d5   : > { %1879 = vrot.lane.b32.xlu2 %v1809_v9, %s5505_s30  ;;  %v2253_v61 = vor.u32 %v2252_v37, %v6617_v27  ;;  %v3158_v37 = vor.u32 %v3157_v15, %v5971_v59  ;;  %v6632_v16 = vpop.f32.mrf.mxu2  ;;  %v2222_v59 = vshll.u32 %v2018_v0, 16 }
 0x1d6   : > { %1881 = vrot.lane.b32.xlu1 %v1810_v3, %s5505_s30  ;;  %v2023_v3 = vld [vmem:[#allocation2 + $0x78] sm:$0xf]  ;;  %v2218_v19 = vrot.slane %v2216_v51, 5  ;;  %v2836_v51 = vld [vmem:[#allocation2 + $0x40] sm:$0xf] }
 0x1d7   : > { %v1683_v8 = vpop.permute.xlu2 %1682  ;;  %v2261_v54 = vshrl.u32 %v2023_v3, 16  ;;  %v3159_v40 = vrot.slane %v3158_v37, 4  ;;  %v6644_v5 = vrot.slane %v2222_v59, 5 }
 0x1d8   : > { %1775 = vst.msk [vmem:[#allocation3 + $0x30] sm:$0xf] %vm1770_vm1, %v1683_v8  ;;  %2740 = vrot.lane.b32.xlu0 %v2661_v55, %s5503_s24  ;;  %v2900_v9 = vpop.permute.xlu1 %2899  ;;  %v3161_v8 = vshll.u32 %v3032_v46, 16  ;;  %v2254_v55 = vrot.slane %v2253_v61, 4  ;;  %v2213_v46 = vshrl.u32 %v2017_v62, 16 }
 0x1d9   : > { %2992 = vst.msk [vmem:[#allocation3 + $0x28] sm:$0xf] %vm1770_vm1, %v2900_v9  ;;  %v2264_v9 = vshll.u32 %v2023_v3, 16  ;;  %v1496_v61 = vld [vmem:[#allocation2 + $0x84] sm:$0xe] }
 0x1da   : > { %v6620_v12 = vpop.permute.xlu0 %1891  ;;  %v2215_v34 = vrot.slane %v2213_v46, 4  ;;  %v3163_v62 = vrot.slane %v3161_v8, 5  ;;  %v2243_v46 = vor.u32 %v2242_v49, %v2239_v6  ;;  %v4974_v37 = vrot.slane %v1496_v61, 9 }
 0x1db   : > { %5288 = vmatmul.msk.bf16.gmra.mxu2 %vm4305_vm14, %v5178_v4  ;;  %v2258_v4 = vrot.slane %v2256_v17, 5  ;;  %v6636_v17 = vld [vmem:[#allocation2 + $0x88] sm:$0xf]  ;;  %v2266_v11 = vrot.slane %v2264_v9, 5 }
 0x1dc   : > { %v2219_v0 = vor.u32 %v2218_v19, %v2215_v34  ;;  %v2244_v59 = vrot.slane %v2243_v46, 4  ;;  %v860_v46 = vld [vmem:[#allocation2 + $0x94] sm:$0xf] }
 0x1dd   : > { %2712 = vrot.lane.b32.xlu2 %v2612_v23, %s5503_s24  ;;  %v844_v23 = vld [vmem:[#allocation2 + $0x34] sm:$0xf]  ;;  %v2259_v3 = vsel %vm5710_vm4, %v2254_v55, %v2258_v4  ;;  %v5189_v55 = vld [vmem:[#allocation3 + $0x158] sm:$0xf]  ;;  %v5359_v4 = vld [vmem:[#allocation3 + $0x160] sm:$0xf0] }
 0x1de   : > { %2905 = vrot.lane.b32.xlu1 %v2835_v28, %s5504_s29  ;;  %876 = vst.msk [vmem:[#allocation3 + $0x6c] sm:$0xf] %vm306_vm0, %v844_v23  ;;  %v1475_v23 = vld [vmem:[#allocation2 + $0x30] sm:$0xe]  ;;  %v2220_v8 = vrot.slane %v2219_v0, 4  ;;  %v5190_v34 = vor.u32 %v5359_v4, %v5189_v55  ;;  %v7526_v55 = vrot.slane %v5973_v25, 5 }
 0x1df   : > { %v1876_v2 = vpop.permute.xlu2 %1875  ;;  %2477 = vst.msk [vmem:[#allocation3 + $0xd0] sm:$0xf] %vm306_vm0, %v2259_v3  ;;  %v4967_v61 = vrot.slane %v1475_v23, 9  ;;  %v5318_v3 = vld [vmem:[#allocation3 + $0x1c] sm:$0xf] }
 0x1e0   : > { %1968 = vst.msk [vmem:[#allocation3 + $0x30] sm:$0xf] %vm1963_vm2, %v1876_v2  ;;  %2935 = vrot.lane.b32.xlu0 %v2850_v53, %s5504_s29  ;;  %v3460_v15 = vpop.permute.xlu1 %3459  ;;  %v2263_v2 = vrot.slane %v2261_v54, 4  ;;  %v7497_v53 = vrot.slane %v6636_v17, 5  ;;  %v3164_v54 = vsel %vm5710_vm4, %v3159_v40, %v3163_v62  ;;  %v2225_v49 = vsel %vm5710_vm4, %v2220_v8, %v6644_v5  ;;  %v6665_v62 = vpop.f32.mrf.mxu2  ;;  %v3033_v23 = vld [vmem:[#allocation2 + $0x48] sm:$0xf] }
 0x1e1   : > { %3552 = vst.msk [vmem:[#allocation3 + $0x28] sm:$0xf] %vm1963_vm2, %v3460_v15  ;;  %v2249_v40 = vsel %vm5710_vm4, %v2244_v59, %v6617_v27  ;;  %v1593_v27 = vsel %vm5810_vm13, %v4967_v61, %v7526_v55  ;;  %v3169_v25 = vshll.u32 %v3033_v23, 16  ;;  %v1812_v55 = vld [vmem:[#allocation2 + $0x40] sm:$0xf] }
 0x1e2   : > { %v2727_v28 = vpop.permute.xlu0 %2726  ;;  %v2267_v9 = vor.u32 %v2266_v11, %v2263_v2  ;;  %v1642_v6 = vsel %vm5810_vm13, %v4974_v37, %v7497_v53  ;;  %v2298_v11 = vshrl.u32 %v6489_v45, 16  ;;  %2474 = vst.msk [vmem:[#allocation3 + $0xac] sm:$0xf] %vm306_vm0, %v2225_v49  ;;  %v2028_v37 = vld [vmem:[#allocation2 + $0x8c] sm:$0x1]  ;;  %v3166_v49 = vshrl.u32 %v3033_v23, 16 }
 0x1e3   : > { %2809 = vst.msk [vmem:[#allocation3 + $0xa0] sm:$0xf] %vm1430_vm15, %v2727_v28  ;;  %v3171_v23 = vrot.slane %v3169_v25, 5 }
 0x1e4   : > { %v2268_v45 = vrot.slane %v2267_v9, 4  ;;  %892 = vst.msk [vmem:[#allocation3 + $0x12c] sm:$0xf] %vm306_vm0, %v860_v46  ;;  %v2300_v8 = vrot.slane %v2298_v11, 4  ;;  %v1811_v9 = vld [vmem:[#allocation2 + $0x3c] sm:$0xf] }
 0x1e5   : > { %2907 = vrot.lane.b32.xlu2 %v2836_v51, %s5504_s29  ;;  %v3055_v51 = vld [vmem:[#allocation2 + $0xa0] sm:$0xf]  ;;  %2476 = vst.msk [vmem:[#allocation3 + $0xc4] sm:$0xf] %vm306_vm0, %v2249_v40 }
 0x1e6   : > { %3467 = vrot.lane.b32.xlu1 %v3164_v54, %s5505_s30  ;;  %v2273_v4 = vsel %vm5710_vm4, %v2268_v45, %v6484_v20  ;;  %v1826_v54 = vld [vmem:[#allocation2 + $0x94] sm:$0xf]  ;;  %v2301_v59 = vor.u32 %v2300_v8, %v6515_v35  ;;  %v3343_v61 = vshll.u32 %v3055_v51, 16  ;;  %v2304_v20 = vshll.u32 %v2028_v37, 16  ;;  %v3056_v8 = vld [vmem:[#allocation2 + $0xa4] sm:$0x1] }
 0x1e7   : > { %v1383_v15 = vpop.permute.xlu2 %1382  ;;  %2478 = vst.msk [vmem:[#allocation3 + $0xdc] sm:$0xf] %vm306_vm0, %v2273_v4  ;;  %v7527_v35 = vrot.slane %v6007_v33, 5 }
 0x1e8   : > { %1455 = vst.msk [vmem:[#allocation3 + $0x120] sm:$0xf] %vm1430_vm15, %v1383_v15  ;;  %1718 = vrot.lane.b32.xlu0 %v1642_v6, %s5504_s29  ;;  %v1685_v19 = vpop.permute.xlu1 %1684  ;;  %v5027_v28 = vld [vmem:[#allocation3 + $0x24] sm:$0xf0]  ;;  %v847_v15 = vld [vmem:[#allocation2 + $0x48] sm:$0xf] }
 0x1e9   : > { %1776 = vst.msk [vmem:[#allocation3 + $0x3c] sm:$0xf] %vm1770_vm1, %v1685_v19  ;;  %v5030_v0 = vor.u32 %v5318_v3, %v5027_v28  ;;  %v2506_v6 = vld [vmem:[#allocation2 + $0x44] sm:$0x1]  ;;  %v3347_v19 = vshrl.u32 %v3055_v51, 16  ;;  %v2302_v11 = vrot.slane %v2301_v59, 4 }
 0x1ea   : > { %v6668_v2 = vpop.permute.xlu0 %3477  ;;  %879 = vst.msk [vmem:[#allocation3 + $0x90] sm:$0xf] %vm306_vm0, %v847_v15  ;;  %v3034_v28 = vld [vmem:[#allocation2 + $0x4c] sm:$0xf]  ;;  %v2306_v40 = vrot.slane %v2304_v20, 5  ;;  %v2620_v46 = vrot.slane %v7527_v35, 4 }
 0x1eb   : > { %5289 = vmatmul.msk.bf16.gmra.mxu2 %vm4305_vm14, %v5190_v34  ;;  %4456 = vmatmul.bf16.gmra.mxu1 %v5030_v0  ;;  %v2621_v45 = vrot.slane %v2506_v6, 5  ;;  %v3168_v51 = vrot.slane %v3166_v49, 4  ;;  %v3349_v4 = vrot.slane %v3347_v19, 4  ;;  %v2851_v49 = vld [vmem:[#allocation2 + $0x9c] sm:$0xf]  ;;  %v3353_v59 = vshll.u32 %v3056_v8, 16 }
 0x1ec   : > { %v2307_v37 = vsel %vm5710_vm4, %v2302_v11, %v2306_v40  ;;  %v3058_v8 = vld [vmem:[#allocation2 + $0xac] sm:$0xf] }
 0x1ed   : > { %1690 = vrot.lane.b32.xlu2 %v1593_v27, %s5504_s29  ;;  %v6692_v27 = vrot.slane %v3343_v61, 5  ;;  %2481 = vst.msk [vmem:[#allocation3 + $0x100] sm:$0xf] %vm306_vm0, %v2307_v37  ;;  %v2622_v33 = vsel %vm5810_vm13, %v2620_v46, %v2621_v45  ;;  %v3172_v15 = vor.u32 %v3171_v23, %v3168_v51  ;;  %v846_v46 = vld [vmem:[#allocation2 + $0x40] sm:$0xf]  ;;  %v3355_v51 = vrot.slane %v3353_v59, 5 }
 0x1ee   : > { %1883 = vrot.lane.b32.xlu1 %v1811_v9, %s5505_s30  ;;  %v3179_v9 = vshrl.u32 %v3034_v28, 16  ;;  %v2837_v23 = vld [vmem:[#allocation2 + $0x48] sm:$0xf]  ;;  %878 = vst.msk [vmem:[#allocation3 + $0x84] sm:$0xf] %vm306_vm0, %v846_v46 }
 0x1ef   : > { %v2709_v34 = vpop.permute.xlu2 %2708  ;;  %v3350_v25 = vor.u32 %v3349_v4, %v6692_v27  ;;  %v3173_v35 = vrot.slane %v3172_v15, 4  ;;  %v849_v4 = vld [vmem:[#allocation2 + $0x54] sm:$0xf]  ;;  %v3371_v15 = vshrl.u32 %v3058_v8, 16 }
 0x1f0   : > { %2800 = vst.msk [vmem:[#allocation3 + $0x34] sm:$0xf] %vm1430_vm15, %v2709_v34  ;;  %1913 = vrot.lane.b32.xlu0 %v1826_v54, %s5505_s30  ;;  %v1878_v3 = vpop.permute.xlu1 %1877  ;;  %v3175_v54 = vshll.u32 %v3034_v28, 16  ;;  %v5037_v34 = vld [vmem:[#allocation3 + $0x30] sm:$0xf]  ;;  %v3181_v19 = vrot.slane %v3179_v9, 4 }
 0x1f1   : > { %1969 = vst.msk [vmem:[#allocation3 + $0x3c] sm:$0xf] %vm1963_vm2, %v1878_v3  ;;  %v3035_v3 = vld [vmem:[#allocation2 + $0x50] sm:$0x1]  ;;  %v3351_v45 = vrot.slane %v3350_v25, 4 }
 0x1f2   : > { %v6687_v0 = vpop.permute.xlu0 %1704  ;;  %v3177_v61 = vrot.slane %v3175_v54, 5  ;;  %881 = vst.msk [vmem:[#allocation3 + $0xa8] sm:$0xf] %vm306_vm0, %v849_v4  ;;  %v848_v4 = vld [vmem:[#allocation2 + $0x4c] sm:$0xf] }
 0x1f3   : > { %v3356_v9 = vsel %vm5710_vm4, %v3351_v45, %v3355_v51  ;;  %v6736_v45 = vld [vmem:[#allocation2 + $0xa0] sm:$0xf]  ;;  %v2507_v51 = vld [vmem:[#allocation2 + $0x48] sm:$0xe]  ;;  %880 = vst.msk [vmem:[#allocation3 + $0x9c] sm:$0xf] %vm306_vm0, %v848_v4 }
 0x1f4   : > { %v3178_v37 = vsel %vm5710_vm4, %v3173_v35, %v3177_v61  ;;  %v1827_v35 = vld [vmem:[#allocation2 + $0x9c] sm:$0xf] }
 0x1f5   : > { %1885 = vrot.lane.b32.xlu2 %v1812_v55, %s5505_s30  ;;  %v3182_v55 = vor.u32 %v3181_v19, %v3177_v61  ;;  %v7528_v19 = vrot.slane %v6072_v60, 5  ;;  %v2508_v60 = vld [vmem:[#allocation2 + $0x4c] sm:$0xf] }
 0x1f6   : > { %2718 = vrot.lane.b32.xlu1 %v2622_v33, %s5503_s24  ;;  %v3367_v33 = vshll.u32 %v3058_v8, 16 }
 0x1f7   : > { %v1355_v6 = vpop.permute.xlu2 %1354 }
 0x1f8   : > { %1441 = vst.msk [vmem:[#allocation3 + $0x78] sm:$0xf] %vm1430_vm15, %v1355_v6  ;;  %2937 = vrot.lane.b32.xlu0 %v2851_v49, %s5504_s29  ;;  %v1353_v20 = vpop.permute.xlu1 %1352  ;;  %v5322_v11 = vld [vmem:[#allocation3 + $0x38] sm:$0xf0]  ;;  %v3183_v6 = vrot.slane %v3182_v55, 4  ;;  %v6720_v59 = vrot.slane %v3367_v33, 5 }
 0x1f9   : > { %1781 = vst.msk [vmem:[#allocation3 + $0x78] sm:$0xf] %vm1770_vm1, %v6527_v41  ;;  %v5038_v40 = vor.u32 %v5322_v11, %v5037_v34  ;;  %v3185_v41 = vshll.u32 %v3035_v3, 16  ;;  %v6722_v34 = vrot.slane %v3371_v15, 4  ;;  %v4984_v33 = vrot.slane %v2507_v51, 9 }
 0x1fa   : > { %v2729_v28 = vpop.permute.xlu0 %2728  ;;  %1440 = vst.msk [vmem:[#allocation3 + $0x6c] sm:$0xf] %vm1430_vm15, %v1353_v20  ;;  %v1601_v20 = vrot.slane %v7528_v19, 4  ;;  %v2625_v15 = vrot.slane %v2508_v60, 5 }
 0x1fb   : > { %2810 = vst.msk [vmem:[#allocation3 + $0xac] sm:$0xf] %vm1430_vm15, %v2729_v28  ;;  %4372 = vmatmul.bf16.gmra.mxu0 %v5038_v40  ;;  %v3187_v49 = vrot.slane %v3185_v41, 5  ;;  %v3057_v40 = vld [vmem:[#allocation2 + $0xa8] sm:$0xf] }
 0x1fc   : > { %1780 = vst.msk [vmem:[#allocation3 + $0x6c] sm:$0xf] %vm1770_vm1, %v6426_v56  ;;  %v1480_v56 = vld [vmem:[#allocation2 + $0x44] sm:$0x1]  ;;  %v3358_v55 = vshrl.u32 %v3057_v40, 16  ;;  %v3361_v41 = vshll.u32 %v3057_v40, 16 }
 0x1fd   : > { %2909 = vrot.lane.b32.xlu2 %v2837_v23, %s5504_s29  ;;  %v1602_v11 = vrot.slane %v1480_v56, 5  ;;  %v3188_v28 = vsel %vm5710_vm4, %v3183_v6, %v3187_v49  ;;  %v2627_v4 = vrot.slane %v2625_v15, 4 }
 0x1fe   : > { %3469 = vrot.lane.b32.xlu1 %v3178_v37, %s5505_s30  ;;  %v2530_v37 = vld [vmem:[#allocation2 + $0xa4] sm:$0x1]  ;;  %v3360_v19 = vrot.slane %v3358_v55, 4 }
 0x1ff   : > { %v2902_v54 = vpop.permute.xlu2 %2901  ;;  %v1603_v46 = vsel %vm5810_vm13, %v1601_v20, %v1602_v11  ;;  %v2677_v49 = vrot.slane %v2530_v37, 5  ;;  %v3363_v20 = vrot.slane %v3361_v41, 5  ;;  %v1813_v11 = vld [vmem:[#allocation2 + $0x48] sm:$0xf] }
 0x200   : > { %2993 = vst.msk [vmem:[#allocation3 + $0x34] sm:$0xf] %vm1770_vm1, %v2902_v54  ;;  %3499 = vrot.lane.b32.xlu0 %v3356_v9, %s5505_s30  ;;  %v1385_v25 = vpop.permute.xlu1 %1384  ;;  %v7496_v54 = vrot.slane %v6736_v45, 5  ;;  %v3036_v9 = vld [vmem:[#allocation2 + $0x54] sm:$0xf] }
 0x201   : > { %1456 = vst.msk [vmem:[#allocation3 + $0x12c] sm:$0xf] %vm1430_vm15, %v1385_v25  ;;  %v2509_v25 = vld [vmem:[#allocation2 + $0x50] sm:$0x1]  ;;  %v3193_v40 = vshll.u32 %v3036_v9, 16  ;;  %v3364_v55 = vor.u32 %v3363_v20, %v3360_v19 }
 0x202   : > { %v6724_v61 = vpop.permute.xlu0 %2923  ;;  %v2676_v6 = vrot.slane %v7496_v54, 4  ;;  %v2628_v51 = vrot.slane %v2509_v25, 5  ;;  %v850_v54 = vld [vmem:[#allocation2 + $0x58] sm:$0xf] }
 0x203   : > { %882 = vst.msk [vmem:[#allocation3 + $0xb4] sm:$0xf] %vm306_vm0, %v850_v54  ;;  %v1483_v54 = vld [vmem:[#allocation2 + $0x50] sm:$0x1] }
 0x204   : > { %v2678_v37 = vsel %vm5810_vm13, %v2676_v6, %v2677_v49 }
 0x205   : > { %3471 = vrot.lane.b32.xlu2 %v3188_v28, %s5505_s30  ;;  %v3190_v28 = vshrl.u32 %v3036_v9, 16  ;;  %v2005_v9 = vld [vmem:[#allocation2 + $0x30] sm:$0xf] }
 0x206   : > { %1696 = vrot.lane.b32.xlu1 %v1603_v46, %s5504_s29  ;;  %v851_v46 = vld [vmem:[#allocation2 + $0x60] sm:$0xf]  ;;  %v2120_v25 = vshll.u32 %v2005_v9, 16 }
 0x207   : > { %v1359_v23 = vpop.permute.xlu2 %1358  ;;  %883 = vst.msk [vmem:[#allocation3 + $0xc0] sm:$0xf] %vm306_vm0, %v851_v46 }
 0x208   : > { %1443 = vst.msk [vmem:[#allocation3 + $0x90] sm:$0xf] %vm1430_vm15, %v1359_v23  ;;  %1915 = vrot.lane.b32.xlu0 %v1827_v35, %s5505_s30  ;;  %v2711_v8 = vpop.permute.xlu1 %2710  ;;  %v939_v35 = vld [vmem:[#allocation2 + $0xa0] sm:$0xf]  ;;  %v2626_v23 = vsel %vm5810_vm13, %v4984_v33, %v2625_v15  ;;  %v3195_v33 = vrot.slane %v3193_v40, 5  ;;  %v2117_v15 = vshrl.u32 %v2005_v9, 16 }
 0x209   : > { %2801 = vst.msk [vmem:[#allocation3 + $0x40] sm:$0xf] %vm1430_vm15, %v2711_v8  ;;  %v1272_v41 = vshll.u32 %v939_v35, 16  ;;  %v1276_v8 = vshrl.u32 %v939_v35, 16  ;;  %v2122_v49 = vrot.slane %v2120_v25, 5  ;;  %v2629_v35 = vsel %vm5810_vm13, %v2627_v4, %v2628_v51 }
 0x20a   : > { %v6743_v56 = vpop.permute.xlu0 %1706  ;;  %v2119_v6 = vrot.slane %v2117_v15, 4  ;;  %v2840_v40 = vld [vmem:[#allocation2 + $0x58] sm:$0xf]  ;;  %v1481_v9 = vld [vmem:[#allocation2 + $0x48] sm:$0xe] }
 0x20b   : > { %v6760_v19 = vrot.slane %v1272_v41, 5  ;;  %v1278_v20 = vrot.slane %v1276_v8, 4  ;;  %v1482_v8 = vld [vmem:[#allocation2 + $0x4c] sm:$0xf]  ;;  %v4969_v25 = vrot.slane %v1481_v9, 9 }
 0x20c   : > { %v3060_v9 = vld [vmem:[#allocation2 + $0xb4] sm:$0xf] }
 0x20d   : > { %1887 = vrot.lane.b32.xlu2 %v1813_v11, %s5505_s30  ;;  %v3192_v11 = vrot.slane %v3190_v28, 4  ;;  %v2123_v28 = vor.u32 %v2122_v49, %v2119_v6  ;;  %v1606_v6 = vrot.slane %v1482_v8, 5  ;;  %v6797_v8 = vld [vmem:[#allocation2 + $0xac] sm:$0xf] }
 0x20e   : > { %2720 = vrot.lane.b32.xlu1 %v2626_v23, %s5503_s24  ;;  %v3365_v23 = vrot.slane %v3364_v55, 4  ;;  %v1279_v55 = vor.u32 %v1278_v20, %v6760_v19  ;;  %7529 = vst [vmem:[#allocation12_spill] sm:$0xff] %v6797_v8 }
 0x20f   : > { %v3462_v60 = vpop.permute.xlu2 %3461  ;;  %v2124_v4 = vrot.slane %v2123_v28, 4 }
 0x210   : > { %3553 = vst.msk [vmem:[#allocation3 + $0x34] sm:$0xf] %vm1963_vm2, %v3462_v60  ;;  %2750 = vrot.lane.b32.xlu0 %v2678_v37, %s5503_s24  ;;  %v1357_v3 = vpop.permute.xlu1 %1356  ;;  %v3196_v60 = vor.u32 %v3195_v33, %v3192_v11  ;;  %v940_v37 = vld [vmem:[#allocation2 + $0xa4] sm:$0x1]  ;;  %v1280_v49 = vrot.slane %v1279_v55, 4 }
 0x211   : > { %1442 = vst.msk [vmem:[#allocation3 + $0x84] sm:$0xf] %vm1430_vm15, %v1357_v3  ;;  %v3370_v3 = vsel %vm5710_vm4, %v3365_v23, %v6720_v59  ;;  %v1282_v41 = vshll.u32 %v940_v37, 16  ;;  %v2129_v33 = vsel %vm5710_vm4, %v2124_v4, %v6225_v30  ;;  %v1607_v30 = vsel %vm5810_vm13, %v4969_v25, %v1606_v6  ;;  %v1829_v4 = vld [vmem:[#allocation2 + $0xa8] sm:$0xf] }
 0x212   : > { %v6757_v46 = vpop.permute.xlu0 %1901  ;;  %v3197_v51 = vrot.slane %v3196_v60, 4  ;;  %2466 = vst.msk [vmem:[#allocation3 + $0x4c] sm:$0xf] %vm306_vm0, %v2129_v33  ;;  %v1608_v60 = vrot.slane %v1606_v6, 4  ;;  %v1609_v37 = vrot.slane %v1483_v54, 5  ;;  %v3382_v6 = vshrl.u32 %v3060_v9, 16 }
 0x213   : > { %v1284_v23 = vrot.slane %v1282_v41, 5  ;;  %v2510_v41 = vld [vmem:[#allocation2 + $0x54] sm:$0xe]  ;;  %v2533_v25 = vld [vmem:[#allocation2 + $0xb0] sm:$0x1] }
 0x215   : > { %2722 = vrot.lane.b32.xlu2 %v2629_v35, %s5503_s24  ;;  %v1285_v35 = vsel %vm5710_vm4, %v1280_v49, %v1284_v23  ;;  %v3385_v49 = vshll.u32 %v3060_v9, 16  ;;  %v4985_v23 = vrot.slane %v2510_v41, 9  ;;  %v7530_v9 = vrot.slane %v6158_v48, 5  ;;  %v3061_v41 = vld [vmem:[#allocation2 + $0xb8] sm:$0xf] }
 0x216   : > { %2915 = vrot.lane.b32.xlu1 %v2840_v40, %s5504_s29  ;;  %v1610_v40 = vsel %vm5810_vm13, %v1608_v60, %v1609_v37  ;;  %v3384_v37 = vrot.slane %v3382_v6, 4  ;;  %v3391_v6 = vshll.u32 %v3061_v41, 16  ;;  %v2842_v41 = vld [vmem:[#allocation2 + $0x64] sm:$0xf] }
 0x217   : > { %v1363_v53 = vpop.permute.xlu2 %1362 }
 0x218   : > { %1445 = vst.msk [vmem:[#allocation3 + $0xa8] sm:$0xf] %vm1430_vm15, %v1363_v53  ;;  %3501 = vrot.lane.b32.xlu0 %v3370_v3, %s5505_s30  ;;  %v2904_v11 = vpop.permute.xlu1 %2903  ;;  %v3202_v53 = vsel %vm5710_vm4, %v3197_v51, %v6136_v43  ;;  %v5487_v3 = vld [vmem:[#allocation2 + $0x64] sm:$0xf]  ;;  %v1816_v51 = vld [vmem:[#allocation2 + $0x58] sm:$0xf] }
 0x219   : > { %2994 = vst.msk [vmem:[#allocation3 + $0x40] sm:$0xf] %vm1770_vm1, %v2904_v11  ;;  %v3227_v55 = vshrl.u32 %v5487_v3, 16  ;;  %v852_v11 = vld [vmem:[#allocation2 + $0x64] sm:$0xf]  ;;  %v2633_v3 = vsel %vm5810_vm13, %v4985_v23, %v7530_v9 }
 0x21a   : > { %v6776_v15 = vpop.permute.xlu0 %2925  ;;  %884 = vst.msk [vmem:[#allocation3 + $0xcc] sm:$0xf] %vm306_vm0, %v852_v11 }
 0x21b   : > { %v3229_v60 = vrot.slane %v3227_v55, 4 }
 0x21d   : > { %3473 = vrot.lane.b32.xlu2 %v3202_v53, %s5505_s30  ;;  %v7498_v53 = vrot.slane %v6797_v8, 5  ;;  %v3230_v11 = vor.u32 %v3229_v60, %v6217_v7 }
 0x21e   : > { %1698 = vrot.lane.b32.xlu1 %v1607_v30, %s5504_s29 }
 0x21f   : > { %v1687_v20 = vpop.permute.xlu2 %1686  ;;  %v3231_v7 = vrot.slane %v3230_v11, 4 }
 0x220   : > { %1777 = vst.msk [vmem:[#allocation3 + $0x48] sm:$0xf] %vm1770_vm1, %v1687_v20  ;;  %1388 = vrot.lane.b32.xlu0 %v1285_v35, %s5503_s24  ;;  %v1361_v28 = vpop.permute.xlu1 %1360  ;;  %v2683_v20 = vrot.slane %v7498_v53, 4  ;;  %v2684_v35 = vrot.slane %v2533_v25, 5  ;;  %v6867_v53 = vld [vmem:[#allocation2 + $0xb8] sm:$0xf] }
 0x221   : > { %1444 = vst.msk [vmem:[#allocation3 + $0x9c] sm:$0xf] %vm1430_vm15, %v1361_v28  ;;  %v3387_v28 = vrot.slane %v3385_v49, 5 }
 0x222   : > { %v6791_v43 = vpop.permute.xlu0 %3487  ;;  %7536 = vst [vmem:[#allocation16_spill] sm:$0xff] %v6867_v53 }
 0x223   : > { %v3388_v25 = vor.u32 %v3387_v28, %v3384_v37  ;;  %v6824_v37 = vrot.slane %v3391_v6, 5 }
 0x225   : > { %1700 = vrot.lane.b32.xlu2 %v1610_v40, %s5504_s29  ;;  %v3041_v40 = vld [vmem:[#allocation2 + $0x68] sm:$0x1]  ;;  %v3389_v60 = vrot.slane %v3388_v25, 4  ;;  %7531 = vst [vmem:[#allocation13_spill] sm:$0xff] %v6824_v37 }
 0x226   : > { %1893 = vrot.lane.b32.xlu1 %v1816_v51, %s5505_s30  ;;  %v2841_v51 = vld [vmem:[#allocation2 + $0x60] sm:$0xf] }
 0x227   : > { %v1367_v33 = vpop.permute.xlu2 %1366 }
 0x228   : > { %1447 = vst.msk [vmem:[#allocation3 + $0xc0] sm:$0xf] %vm1430_vm15, %v1367_v33  ;;  %1919 = vrot.lane.b32.xlu0 %v1829_v4, %s5505_s30  ;;  %v3464_v54 = vpop.permute.xlu1 %3463  ;;  %v2685_v4 = vsel %vm5810_vm13, %v2683_v20, %v2684_v35  ;;  %v3233_v33 = vshll.u32 %v3041_v40, 16 }
 0x229   : > { %1787 = vst.msk [vmem:[#allocation3 + $0xc0] sm:$0xf] %vm1770_vm1, %v6743_v56  ;;  %v942_v56 = vld [vmem:[#allocation2 + $0xac] sm:$0xf] }
 0x22a   : > { %v6806_v30 = vpop.permute.xlu0 %1903  ;;  %3554 = vst.msk [vmem:[#allocation3 + $0x40] sm:$0xf] %vm1963_vm2, %v3464_v54  ;;  %v1296_v48 = vshll.u32 %v942_v56, 16  ;;  %v1300_v49 = vshrl.u32 %v942_v56, 16  ;;  %v5321_v54 = vld [vmem:[#allocation3 + $0x34] sm:$0xf] }
 0x22b   : > { %v3235_v35 = vrot.slane %v3233_v33, 5  ;;  %v943_v56 = vld [vmem:[#allocation2 + $0xb0] sm:$0x1] }
 0x22c   : > { %v6826_v28 = vrot.slane %v1296_v48, 5  ;;  %v1302_v40 = vrot.slane %v1300_v49, 4  ;;  %v1306_v25 = vshll.u32 %v943_v56, 16 }
 0x22d   : > { %2724 = vrot.lane.b32.xlu2 %v2633_v3, %s5503_s24  ;;  %v3236_v11 = vsel %vm5710_vm4, %v3231_v7, %v3235_v35  ;;  %v1817_v35 = vld [vmem:[#allocation2 + $0x60] sm:$0xf] }
 0x22e   : > { %2917 = vrot.lane.b32.xlu1 %v2841_v51, %s5504_s29  ;;  %7532 = vst [vmem:[#allocation14_spill] sm:$0xff] %v6826_v28  ;;  %v5381_v51 = vld [vmem:[%s7467_s3] sm:$0xff] }
 0x22f   : > { %v1880_v55 = vpop.permute.xlu2 %1879  ;;  %4737 = vmatpush.bf16.msra.mxu3 %v5381_v51 }
 0x230   : > { %1970 = vst.msk [vmem:[#allocation3 + $0x48] sm:$0xf] %vm1963_vm2, %v1880_v55  ;;  %2754 = vrot.lane.b32.xlu0 %v2685_v4, %s5503_s24  ;;  %v1365_v23 = vpop.permute.xlu1 %1364  ;;  %v1484_v4 = vld [vmem:[#allocation2 + $0x54] sm:$0xe]  ;;  %v3394_v55 = vsel %vm5710_vm4, %v3389_v60, %v6824_v37  ;;  %v3064_v37 = vld [vmem:[#allocation2 + $0xc4] sm:$0xf] }
 0x231   : > { %v5039_v9 = vld [vmem:[#allocation3 + $0x3c] sm:$0xf0]  ;;  %1446 = vst.msk [vmem:[#allocation3 + $0xb4] sm:$0xf] %vm1430_vm15, %v1365_v23  ;;  %v4970_v6 = vrot.slane %v1484_v4, 9  ;;  %v4363_v23 = vpop.f32.mrf.mxu0 }
 0x232   : > { %v2739_v3 = vpop.permute.xlu0 %2738  ;;  %v5042_v20 = vor.u32 %v5321_v54, %v5039_v9  ;;  %1786 = vst.msk [vmem:[#allocation3 + $0xb4] sm:$0xf] %vm1770_vm1, %v6687_v0  ;;  %v1303_v0 = vor.u32 %v1302_v40, %v6826_v28  ;;  %v1308_v9 = vrot.slane %v1306_v25, 5  ;;  %v945_v28 = vld [vmem:[#allocation2 + $0xb8] sm:$0xf] }
 0x233   : > { %2815 = vst.msk [vmem:[#allocation3 + $0xe8] sm:$0xf] %vm1430_vm15, %v2739_v3  ;;  %v3042_v3 = vld [vmem:[#allocation2 + $0x6c] sm:$0xf] }
 0x234   : > { %4461 = vmatmul.bf16.gmra.mxu1 %v5042_v20  ;;  %v1304_v54 = vrot.slane %v1303_v0, 4  ;;  %v7534_v20 = vrot.slane %v6219_v47, 5  ;;  %v3238_v60 = vshrl.u32 %v3042_v3, 16  ;;  %v3241_v40 = vshll.u32 %v3042_v3, 16  ;;  %v2515_v47 = vld [vmem:[#allocation2 + $0x68] sm:$0x1] }
 0x235   : > { %2919 = vrot.lane.b32.xlu2 %v2842_v41, %s5504_s29  ;;  %v6854_v41 = vld [vmem:[%s7466_s2] ss:$0 sm:$0xff]  ;;  %v7535_v0 = vrot.slane %v6255_v31, 5 }
 0x236   : > { %3479 = vrot.lane.b32.xlu1 %v3236_v11, %s5505_s30  ;;  %v1614_v7 = vsel %vm5810_vm13, %v4970_v6, %v7534_v20  ;;  %v1309_v4 = vsel %vm5710_vm4, %v1304_v54, %v1308_v9  ;;  %v2642_v6 = vrot.slane %v2515_v47, 5  ;;  %v3243_v3 = vrot.slane %v3241_v40, 5  ;;  %v1818_v9 = vld [vmem:[#allocation2 + $0x64] sm:$0xf]  ;;  %v1831_v40 = vld [vmem:[#allocation2 + $0xb4] sm:$0xf] }
 0x237   : > { %v2713_v33 = vpop.permute.xlu2 %2712  ;;  %v2641_v25 = vrot.slane %v7535_v0, 4  ;;  %v4364_v54 = vadd.f32 %v6854_v41, %v4363_v23  ;;  %v2536_v23 = vld [vmem:[#allocation2 + $0xbc] sm:$0x1] }
 0x238   : > { %2802 = vst.msk [vmem:[#allocation3 + $0x4c] sm:$0xf] %vm1430_vm15, %v2713_v33  ;;  %3505 = vrot.lane.b32.xlu0 %v3394_v55, %s5505_s30  ;;  %v1689_v48 = vpop.permute.xlu1 %1688  ;;  %v3043_v33 = vld [vmem:[#allocation2 + $0x70] sm:$0xf] }
 0x239   : > { %1778 = vst.msk [vmem:[#allocation3 + $0x54] sm:$0xf] %vm1770_vm1, %v1689_v48  ;;  %v3240_v48 = vrot.slane %v3238_v60, 4  ;;  %v3247_v20 = vshll.u32 %v3043_v33, 16  ;;  %v2643_v31 = vsel %vm5810_vm13, %v2641_v25, %v2642_v6 }
 0x23a   : > { %v6843_v49 = vpop.permute.xlu0 %3489 }
 0x23b   : > { %7533 = vst [vmem:[#allocation15_spill] sm:$0xff] %v6843_v49  ;;  %v3244_v47 = vor.u32 %v3243_v3, %v3240_v48  ;;  %v3249_v0 = vrot.slane %v3247_v20, 5 }
 0x23d   : > { %1702 = vrot.lane.b32.xlu2 %v1614_v7, %s5504_s29  ;;  %v3251_v7 = vshrl.u32 %v3043_v33, 16 }
 0x23e   : > { %1895 = vrot.lane.b32.xlu1 %v1817_v35, %s5505_s30  ;;  %v3063_v35 = vld [vmem:[#allocation2 + $0xc0] sm:$0xf] }
 0x23f   : > { %v2908_v56 = vpop.permute.xlu2 %2907 }
 0x240   : > { %2996 = vst.msk [vmem:[#allocation3 + $0x58] sm:$0xf] %vm1770_vm1, %v2908_v56  ;;  %1392 = vrot.lane.b32.xlu0 %v1309_v4, %s5503_s24  ;;  %v1369_v51 = vpop.permute.xlu1 %1368  ;;  %v4452_v11 = vpop.f32.mrf.mxu1 }
 0x241   : > { %1448 = vst.msk [vmem:[#allocation3 + $0xcc] sm:$0xf] %vm1430_vm15, %v1369_v51  ;;  %v4365_v56 = vpop.f32.mrf.mxu0  ;;  %v4453_v4 = vadd.f32 %v4452_v11, %v4364_v54  ;;  %v3406_v51 = vshrl.u32 %v3063_v35, 16  ;;  %v7503_v11 = vrot.slane %v6867_v53, 5  ;;  %v3253_v54 = vrot.slane %v3251_v7, 4 }
 0x242   : > { %v1717_v55 = vpop.permute.xlu0 %1716  ;;  %v4366_v33 = vadd.f32 %v6854_v41, %v4365_v56  ;;  %v864_v53 = vld [vmem:[#allocation2 + $0xac] sm:$0xf] }
 0x243   : > { %1792 = vst.msk [vmem:[#allocation3 + $0xfc] sm:$0xf] %vm1770_vm1, %v1717_v55  ;;  %v3409_v55 = vshll.u32 %v3063_v35, 16  ;;  %v4542_v6 = vadd.f32 %v6520_v13, %v4453_v4  ;;  %v2690_v56 = vrot.slane %v7503_v11, 4  ;;  %v3408_v20 = vrot.slane %v3406_v51, 4 }
 0x244   : > { %v2843_v13 = vld [vmem:[#allocation2 + $0x6c] sm:$0xf]  ;;  %v3254_v4 = vor.u32 %v3253_v54, %v3249_v0  ;;  %v1320_v51 = vshll.u32 %v945_v28, 16  ;;  %896 = vst.msk [vmem:[#allocation3 + $0x15c] sm:$0xf] %vm306_vm0, %v864_v53 }
 0x245   : > { %1897 = vrot.lane.b32.xlu2 %v1818_v9, %s5505_s30  ;;  %v5488_v9 = vld [vmem:[#allocation2 + $0x40] sm:$0xf]  ;;  %v3411_v7 = vrot.slane %v3409_v55, 5  ;;  %v4621_v8 = vmax.f32 %v4542_v6, 0.0  ;;  %v1324_v55 = vshrl.u32 %v945_v28, 16  ;;  %v3415_v6 = vshll.u32 %v3064_v37, 16 }
 0x246   : > { %2730 = vrot.lane.b32.xlu1 %v2643_v31, %s5503_s24  ;;  %v2154_v25 = vshrl.u32 %v5488_v9, 16  ;;  %v3044_v31 = vld [vmem:[#allocation2 + $0x74] sm:$0x1] }
 0x247   : > { %v1691_v60 = vpop.permute.xlu2 %1690  ;;  %v3257_v49 = vshll.u32 %v3044_v31, 16  ;;  %v3412_v54 = vor.u32 %v3411_v7, %v3408_v20  ;;  %v1326_v7 = vrot.slane %v1324_v55, 4 }
 0x248   : > { %1779 = vst.msk [vmem:[#allocation3 + $0x60] sm:$0xf] %vm1770_vm1, %v1691_v60  ;;  %1923 = vrot.lane.b32.xlu0 %v1831_v40, %s5505_s30  ;;  %v1882_v48 = vpop.permute.xlu1 %1881  ;;  %v4454_v3 = vpop.f32.mrf.mxu1  ;;  %v2691_v60 = vrot.slane %v2536_v23, 5  ;;  %v3245_v40 = vrot.slane %v3244_v47, 4  ;;  %v2010_v23 = vld [vmem:[#allocation2 + $0x44] sm:$0x1] }
 0x249   : > { %1971 = vst.msk [vmem:[#allocation3 + $0x54] sm:$0xf] %vm1963_vm2, %v1882_v48  ;;  %v4455_v35 = vadd.f32 %v4454_v3, %v4366_v33  ;;  %v2156_v47 = vrot.slane %v2154_v25, 4  ;;  %v2160_v3 = vshll.u32 %v2010_v23, 16  ;;  %v3255_v25 = vrot.slane %v3254_v4, 4 }
 0x24a   : > { %v2741_v1 = vpop.permute.xlu0 %2740  ;;  %v3250_v33 = vsel %vm5710_vm4, %v3245_v40, %v3249_v0  ;;  %v5049_v40 = vld [vmem:[#allocation3 + $0x48] sm:$0xf]  ;;  %v6901_v4 = vrot.slane %v3415_v6, 5 }
 0x24b   : > { %2816 = vst.msk [vmem:[#allocation3 + $0xf4] sm:$0xf] %vm1430_vm15, %v2741_v1  ;;  %v4544_v9 = vadd.f32 %v6553_v10, %v4455_v35  ;;  %v1489_v1 = vld [vmem:[#allocation2 + $0x68] sm:$0x1]  ;;  %v2692_v10 = vsel %vm5810_vm13, %v2690_v56, %v2691_v60  ;;  %v2157_v31 = vor.u32 %v2156_v47, %v6365_v24  ;;  %v3045_v35 = vld [vmem:[#allocation2 + $0x78] sm:$0xf] }
 0x24c   : > { %v2162_v28 = vrot.slane %v2160_v3, 5  ;;  %v7537_v56 = vrot.slane %v6323_v42, 5  ;;  %7540 = vst [vmem:[#allocation19_spill] sm:$0xff] %v6901_v4  ;;  %v2516_v42 = vld [vmem:[#allocation2 + $0x6c] sm:$0xe]  ;;  %v3265_v3 = vshll.u32 %v3045_v35, 16 }
 0x24d   : > { %2921 = vrot.lane.b32.xlu2 %v2843_v13, %s5504_s29  ;;  %v4622_v48 = vmax.f32 %v4544_v9, 0.0  ;;  %v3259_v13 = vrot.slane %v3257_v49, 5  ;;  %v2158_v20 = vrot.slane %v2157_v31, 4  ;;  %v3413_v49 = vrot.slane %v3412_v54, 4  ;;  %v2013_v54 = vld [vmem:[#allocation2 + $0x50] sm:$0x1] }
 0x24e   : > { %3481 = vrot.lane.b32.xlu1 %v3250_v33, %s5505_s30  ;;  %v1622_v60 = vrot.slane %v7537_v56, 4  ;;  %v1623_v33 = vrot.slane %v1489_v1, 5  ;;  %v2517_v1 = vld [vmem:[#allocation2 + $0x70] sm:$0xf] }
 0x24f   : > { %v1886_v11 = vpop.permute.xlu2 %1885  ;;  %v4653_v0 = vpack.c.bf16 %v4622_v48, %v4621_v8  ;;  %v6897_v8 = vrot.slane %v1320_v51, 5  ;;  %v2163_v47 = vsel %vm5710_vm4, %v2158_v20, %v2162_v28  ;;  %v3260_v48 = vsel %vm5710_vm4, %v3255_v25, %v3259_v13 }
 0x250   : > { %1973 = vst.msk [vmem:[#allocation3 + $0x6c] sm:$0xf] %vm1963_vm2, %v1886_v11  ;;  %2758 = vrot.lane.b32.xlu0 %v2692_v10, %s5503_s24  ;;  %v2906_v9 = vpop.permute.xlu1 %2905  ;;  %v5325_v23 = vld [vmem:[#allocation3 + $0x50] sm:$0xf0]  ;;  %v946_v11 = vld [vmem:[#allocation2 + $0xbc] sm:$0x1]  ;;  %v3418_v28 = vsel %vm5710_vm4, %v3413_v49, %v6901_v4 }
 0x251   : > { %2995 = vst.msk [vmem:[#allocation3 + $0x4c] sm:$0xf] %vm1770_vm1, %v2906_v9  ;;  %5295 = vmatmul.msk.bf16.vlgmr.msra.gmra.mxu3 %vm4681_vm3, %v4653_v0  ;;  %v5050_v24 = vor.u32 %v5325_v23, %v5049_v40  ;;  %v3262_v51 = vshrl.u32 %v3045_v35, 16  ;;  %v1330_v55 = vshll.u32 %v946_v11, 16  ;;  %v2012_v10 = vld [vmem:[#allocation2 + $0x4c] sm:$0xf]  ;;  %v1327_v6 = vor.u32 %v1326_v7, %v6897_v8 }
 0x252   : > { %v6893_v37 = vpop.permute.xlu0 %2935  ;;  %7539 = vst [vmem:[#allocation18_spill] sm:$0xff] %v6897_v8  ;;  %v2174_v31 = vshll.u32 %v2012_v10, 16  ;;  %v2178_v0 = vshrl.u32 %v2012_v10, 16  ;;  %v2184_v40 = vshll.u32 %v2013_v54, 16  ;;  %v2033_v9 = vld [vmem:[#allocation2 + $0xa0] sm:$0xf] }
 0x253   : > { %7538 = vst [vmem:[#allocation17_spill] sm:$0xff] %v6893_v37  ;;  %4377 = vmatmul.bf16.gmra.mxu0 %v5050_v24  ;;  %v4987_v35 = vrot.slane %v2516_v42, 9  ;;  %v2646_v13 = vrot.slane %v2517_v1, 5  ;;  %v6922_v20 = vrot.slane %v3265_v3, 5  ;;  %v2342_v24 = vshll.u32 %v2033_v9, 16 }
 0x254   : > { %3555 = vst.msk [vmem:[#allocation3 + $0x4c] sm:$0xf] %vm1963_vm2, %v6395_v14  ;;  %v1624_v14 = vsel %vm5810_vm13, %v1622_v60, %v1623_v33  ;;  %v6918_v23 = vrot.slane %v2174_v31, 5  ;;  %v2180_v56 = vrot.slane %v2178_v0, 4  ;;  %v6920_v33 = vrot.slane %v3262_v51, 4 }
 0x255   : > { %2469 = vst.msk [vmem:[#allocation3 + $0x70] sm:$0xf] %vm306_vm0, %v2163_v47  ;;  %3483 = vrot.lane.b32.xlu2 %v3260_v48, %s5505_s30  ;;  %v2346_v11 = vshrl.u32 %v2033_v9, 16  ;;  %v862_v7 = vld [vmem:[#allocation2 + $0xa0] sm:$0xf]  ;;  %v1328_v48 = vrot.slane %v1327_v6, 4  ;;  %v2647_v31 = vsel %vm5810_vm13, %v4987_v35, %v2646_v13 }
 0x256   : > { %1708 = vrot.lane.b32.xlu1 %v1624_v14, %s5504_s29  ;;  %v1819_v47 = vld [vmem:[#allocation2 + $0x6c] sm:$0xf]  ;;  %v1332_v14 = vrot.slane %v1330_v55, 5  ;;  %v2181_v42 = vor.u32 %v2180_v56, %v6918_v23  ;;  %v2186_v1 = vrot.slane %v2184_v40, 5  ;;  %v2518_v10 = vld [vmem:[#allocation2 + $0x74] sm:$0x1] }
 0x257   : > { %v2910_v25 = vpop.permute.xlu2 %2909  ;;  %v2034_v54 = vld [vmem:[#allocation2 + $0xa4] sm:$0x1]  ;;  %v6927_v51 = vrot.slane %v2342_v24, 5  ;;  %v2348_v3 = vrot.slane %v2346_v11, 4  ;;  %894 = vst.msk [vmem:[#allocation3 + $0x144] sm:$0xf] %vm306_vm0, %v862_v7 }
 0x258   : > { %2997 = vst.msk [vmem:[#allocation3 + $0x64] sm:$0xf] %vm1770_vm1, %v2910_v25  ;;  %3509 = vrot.lane.b32.xlu0 %v3418_v28, %s5505_s30  ;;  %v3468_v60 = vpop.permute.xlu1 %3467  ;;  %v2182_v0 = vrot.slane %v2181_v42, 4  ;;  %v2352_v25 = vshll.u32 %v2034_v54, 16  ;;  %v2030_v28 = vld [vmem:[#allocation2 + $0x94] sm:$0xf] }
 0x259   : > { %3556 = vst.msk [vmem:[#allocation3 + $0x58] sm:$0xf] %vm1963_vm2, %v3468_v60  ;;  %v2648_v55 = vrot.slane %v2646_v13, 4  ;;  %v2349_v6 = vor.u32 %v2348_v3, %v6927_v51  ;;  %v2318_v40 = vshll.u32 %v2030_v28, 16  ;;  %v2322_v9 = vshrl.u32 %v2030_v28, 16 }
 0x25a   : > { %v1719_v49 = vpop.permute.xlu0 %1718  ;;  %v2029_v56 = vld [vmem:[#allocation2 + $0x90] sm:$0xf]  ;;  %v1333_v60 = vsel %vm5710_vm4, %v1328_v48, %v1332_v14  ;;  %v2187_v24 = vsel %vm5710_vm4, %v2182_v0, %v2186_v1  ;;  %v6938_v35 = vld [vmem:[#allocation2 + $0x6c] sm:$0xe]  ;;  %v2354_v11 = vrot.slane %v2352_v25, 5  ;;  %v2649_v48 = vrot.slane %v2518_v10, 5 }
 0x25b   : > { %1793 = vst.msk [vmem:[#allocation3 + $0x108] sm:$0xf] %vm1770_vm1, %v1719_v49  ;;  %v2031_v49 = vld [vmem:[#allocation2 + $0x98] sm:$0x1]  ;;  %v2309_v7 = vshrl.u32 %v2029_v56, 16  ;;  %v2350_v13 = vrot.slane %v2349_v6, 4  ;;  %v3268_v14 = vor.u32 %v6922_v20, %v6920_v33 }
 0x25c   : > { %2471 = vst.msk [vmem:[#allocation3 + $0x88] sm:$0xf] %vm306_vm0, %v2187_v24  ;;  %v2324_v54 = vrot.slane %v2322_v9, 4  ;;  %v2328_v3 = vshll.u32 %v2031_v49, 16  ;;  %v6949_v1 = vld [vmem:[#allocation2 + $0xc4] sm:$0xf]  ;;  %v4368_v49 = vpop.f32.mrf.mxu0 }
 0x25d   : > { %1899 = vrot.lane.b32.xlu2 %v1819_v47, %s5505_s30  ;;  %v6944_v47 = vrot.slane %v2318_v40, 5  ;;  %v6951_v0 = vld [vmem:[#allocation2 + $0x70] sm:$0xf]  ;;  %v2312_v25 = vshll.u32 %v2029_v56, 16  ;;  %v2355_v6 = vsel %vm5710_vm4, %v2350_v13, %v2354_v11  ;;  %v2311_v24 = vrot.slane %v2309_v7, 4 }
 0x25e   : > { %2732 = vrot.lane.b32.xlu1 %v2647_v31, %s5503_s24  ;;  %v5324_v31 = vld [vmem:[#allocation3 + $0x4c] sm:$0xf]  ;;  %v2330_v9 = vrot.slane %v2328_v3, 5  ;;  %v6959_v20 = vld [vmem:[#allocation2 + $0xc8] sm:$0x1]  ;;  %v2650_v56 = vsel %vm5810_vm13, %v2648_v55, %v2649_v48  ;;  %v3269_v7 = vrot.slane %v3268_v14, 4 }
 0x25f   : > { %v6940_v42 = vpop.permute.xlu2 %3471  ;;  %v2325_v40 = vor.u32 %v2324_v54, %v6944_v47  ;;  %v2314_v10 = vrot.slane %v2312_v25, 5  ;;  %2485 = vst.msk [vmem:[#allocation3 + $0x130] sm:$0xf] %vm306_vm0, %v2355_v6  ;;  %v2011_v11 = vld [vmem:[#allocation2 + $0x48] sm:$0xf] }
 0x260   : > { %1396 = vrot.lane.b32.xlu0 %v1333_v60, %s5503_s24  ;;  %v1884_v28 = vpop.permute.xlu1 %1883  ;;  %v5051_v8 = vld [vmem:[#allocation3 + $0x54] sm:$0xf0]  ;;  %v2165_v3 = vshrl.u32 %v2011_v11, 16  ;;  %v2014_v55 = vld [vmem:[#allocation2 + $0x54] sm:$0xf] }
 0x261   : > { %1972 = vst.msk [vmem:[#allocation3 + $0x60] sm:$0xf] %vm1963_vm2, %v1884_v28  ;;  %v5054_v33 = vor.u32 %v5324_v31, %v5051_v8  ;;  %v2326_v13 = vrot.slane %v2325_v40, 4  ;;  %v2168_v28 = vshll.u32 %v2011_v11, 16  ;;  %v2846_v8 = vld [vmem:[#allocation2 + $0x7c] sm:$0xf]  ;;  %v2315_v6 = vor.u32 %v2314_v10, %v2311_v24 }
 0x262   : > { %v6956_v60 = vpop.permute.xlu0 %1913  ;;  %v2698_v31 = vrot.slane %v6959_v20, 5  ;;  %v1833_v4 = vld [vmem:[#allocation2 + $0xc0] sm:$0xf]  ;;  %v2167_v40 = vrot.slane %v2165_v3, 4  ;;  %v2189_v14 = vshrl.u32 %v2014_v55, 16 }
 0x263   : > { %7541 = vst [vmem:[#allocation20_spill] sm:$0xff] %v6956_v60  ;;  %4466 = vmatmul.bf16.gmra.mxu1 %v5054_v33  ;;  %v2331_v48 = vsel %vm5710_vm4, %v2326_v13, %v2330_v9  ;;  %v2170_v33 = vrot.slane %v2168_v28, 5  ;;  %v2192_v60 = vshll.u32 %v2014_v55, 16  ;;  %v5328_v11 = vld [vmem:[#allocation3 + $0x68] sm:$0xf0] }
 0x264   : > { %2483 = vst.msk [vmem:[#allocation3 + $0x118] sm:$0xf] %vm306_vm0, %v2331_v48  ;;  %v2191_v9 = vrot.slane %v2189_v14, 4 }
 0x265   : > { %2734 = vrot.lane.b32.xlu2 %v2650_v56, %s5503_s24  ;;  %v2036_v56 = vld [vmem:[#allocation2 + $0xac] sm:$0xf]  ;;  %v2171_v20 = vor.u32 %v2170_v33, %v2167_v40  ;;  %v2194_v24 = vrot.slane %v2192_v60, 5  ;;  %v3274_v60 = vsel %vm5710_vm4, %v3269_v7, %v6390_v21  ;;  %v2037_v33 = vld [vmem:[#allocation2 + $0xb0] sm:$0x1]  ;;  %v4370_v7 = vpop.f32.mrf.mxu0 }
 0x266   : > { %2927 = vrot.lane.b32.xlu1 %v2846_v8, %s5504_s29  ;;  %v2366_v10 = vshll.u32 %v2036_v56, 16  ;;  %v2370_v55 = vshrl.u32 %v2036_v56, 16  ;;  %v2316_v8 = vrot.slane %v2315_v6, 4  ;;  %v2376_v21 = vshll.u32 %v2037_v33, 16 }
 0x267   : > { %v1888_v54 = vpop.permute.xlu2 %1887  ;;  %v2195_v40 = vor.u32 %v2194_v24, %v2191_v9  ;;  %v7544_v9 = vrot.slane %v6938_v35, 9 }
 0x268   : > { %1974 = vst.msk [vmem:[#allocation3 + $0x78] sm:$0xf] %vm1963_vm2, %v1888_v54  ;;  %1927 = vrot.lane.b32.xlu0 %v1833_v4, %s5505_s30  ;;  %v2719_v13 = vpop.permute.xlu1 %2718  ;;  %v4457_v3 = vpop.f32.mrf.mxu1  ;;  %v5061_v28 = vld [vmem:[#allocation3 + $0x60] sm:$0xf]  ;;  %v7542_v54 = vrot.slane %v6949_v1, 5  ;;  %v2172_v4 = vrot.slane %v2171_v20, 4  ;;  %v2321_v14 = vsel %vm5710_vm4, %v2316_v8, %v6944_v47 }
 0x269   : > { %2805 = vst.msk [vmem:[#allocation3 + $0x70] sm:$0xf] %vm1430_vm15, %v2719_v13  ;;  %v5062_v48 = vor.u32 %v5328_v11, %v5061_v28  ;;  %v6986_v53 = vrot.slane %v2366_v10, 5  ;;  %v2372_v6 = vrot.slane %v2370_v55, 4  ;;  %v4369_v11 = vadd.f32 %v6854_v41, %v4368_v49 }
 0x26a   : > { %v6976_v25 = vpop.permute.xlu0 %2937  ;;  %v2697_v37 = vrot.slane %v7542_v54, 4  ;;  %2998 = vst.msk [vmem:[#allocation3 + $0x70] sm:$0xf] %vm1770_vm1, %v6497_v52  ;;  %v2177_v52 = vsel %vm5710_vm4, %v2172_v4, %v6918_v23  ;;  %v2196_v56 = vrot.slane %v2195_v40, 4  ;;  %v7543_v49 = vrot.slane %v6951_v0, 5 }
 0x26b   : > { %3558 = vst.msk [vmem:[#allocation3 + $0x70] sm:$0xf] %vm1963_vm2, %v6940_v42  ;;  %4382 = vmatmul.bf16.gmra.mxu0 %v5062_v48  ;;  %v2373_v20 = vor.u32 %v2372_v6, %v6986_v53  ;;  %v4458_v47 = vadd.f32 %v4457_v3, %v4369_v11  ;;  %v2378_v24 = vrot.slane %v2376_v21, 5  ;;  %v1492_v3 = vld [vmem:[#allocation2 + $0x74] sm:$0x1]  ;;  %v4371_v28 = vadd.f32 %v6854_v41, %v4370_v7 }
 0x26c   : > { %2470 = vst.msk [vmem:[#allocation3 + $0x7c] sm:$0xf] %vm306_vm0, %v2177_v52  ;;  %v1628_v42 = vsel %vm5810_vm13, %v7544_v9, %v7543_v49  ;;  %v2201_v23 = vsel %vm5710_vm4, %v2196_v56, %v6570_v22  ;;  %v2699_v13 = vsel %vm5810_vm13, %v2697_v37, %v2698_v31  ;;  %v7545_v22 = vmov %v7543_v49  ;;  %v2032_v31 = vld [vmem:[#allocation2 + $0x9c] sm:$0xf] }
 0x26d   : > { %3485 = vrot.lane.b32.xlu2 %v3274_v60, %s5505_s30  ;;  %2482 = vst.msk [vmem:[#allocation3 + $0x10c] sm:$0xf] %vm306_vm0, %v2321_v14  ;;  %v2374_v35 = vrot.slane %v2373_v20, 4  ;;  %v1629_v55 = vrot.slane %v7545_v22, 4  ;;  %v4547_v54 = vadd.f32 %v6582_v32, %v4458_v47  ;;  %v1630_v60 = vrot.slane %v1492_v3, 5 }
 0x26e   : > { %1710 = vrot.lane.b32.xlu1 %v1628_v42, %s5504_s29  ;;  %2472 = vst.msk [vmem:[#allocation3 + $0x94] sm:$0xf] %vm306_vm0, %v2201_v23  ;;  %v2333_v33 = vshrl.u32 %v2032_v31, 16  ;;  %v2336_v6 = vshll.u32 %v2032_v31, 16  ;;  %v861_v32 = vld [vmem:[#allocation2 + $0x9c] sm:$0xf] }
 0x26f   : > { %v2723_v10 = vpop.permute.xlu2 %2722  ;;  %v2379_v37 = vsel %vm5710_vm4, %v2374_v35, %v2378_v24  ;;  %v1631_v14 = vsel %vm5810_vm13, %v1629_v55, %v1630_v60  ;;  %v4623_v56 = vmax.f32 %v4547_v54, 0.0  ;;  %v1822_v7 = vld [vmem:[#allocation2 + $0x7c] sm:$0xf]  ;;  %893 = vst.msk [vmem:[#allocation3 + $0x138] sm:$0xf] %vm306_vm0, %v861_v32  ;;  %v7547_v54 = vor.u32 %v6317_v26, %v6315_v58 }
 0x270   : > { %2807 = vst.msk [vmem:[#allocation3 + $0x88] sm:$0xf] %vm1430_vm15, %v2723_v10  ;;  %2762 = vrot.lane.b32.xlu0 %v2699_v13, %s5503_s24  ;;  %v3470_v8 = vpop.permute.xlu1 %3469  ;;  %v4459_v48 = vpop.f32.mrf.mxu1  ;;  %v2335_v11 = vrot.slane %v2333_v33, 4  ;;  %v2338_v52 = vrot.slane %v2336_v6, 5  ;;  %v2519_v47 = vld [vmem:[#allocation2 + $0x78] sm:$0xe] }
 0x271   : > { %3557 = vst.msk [vmem:[#allocation3 + $0x64] sm:$0xf] %vm1963_vm2, %v3470_v8  ;;  %v4460_v40 = vadd.f32 %v4459_v48, %v4371_v28  ;;  %v4988_v13 = vrot.slane %v2519_v47, 9  ;;  %v7546_v28 = vrot.slane %v6502_v50, 5  ;;  %v3050_v55 = vld [vmem:[#allocation2 + $0x8c] sm:$0x1] }
 0x272   : > { %v7022_v4 = vpop.permute.xlu0 %3499  ;;  %2487 = vst.msk [vmem:[#allocation3 + $0x148] sm:$0xf] %vm306_vm0, %v2379_v37  ;;  %v2339_v49 = vor.u32 %v2338_v52, %v2335_v11  ;;  %v5063_v23 = vld [vmem:[#allocation3 + $0x6c] sm:$0xf0]  ;;  %v2847_v8 = vld [vmem:[#allocation2 + $0x84] sm:$0xf] }
 0x273   : > { %v4549_v0 = vadd.f32 %v6608_v63, %v4460_v40  ;;  %v2654_v22 = vsel %vm5810_vm13, %v4988_v13, %v7546_v28  ;;  %v2035_v48 = vld [vmem:[#allocation2 + $0xa8] sm:$0xf]  ;;  %v3303_v40 = vrot.slane %v7547_v54, 4  ;;  %v5073_v33 = vld [vmem:[#allocation3 + $0x78] sm:$0xf] }
 0x274   : > { %v2340_v24 = vrot.slane %v2339_v49, 4  ;;  %v2360_v31 = vshll.u32 %v2035_v48, 16  ;;  %v5489_v58 = vld [vmem:[#allocation2 + $0x64] sm:$0xf] }
 0x275   : > { %1712 = vrot.lane.b32.xlu2 %v1631_v14, %s5504_s29  ;;  %v4624_v21 = vmax.f32 %v4549_v0, 0.0  ;;  %v2848_v0 = vld [vmem:[#allocation2 + $0x88] sm:$0xf]  ;;  %v2226_v26 = vshrl.u32 %v5489_v58, 16 }
 0x276   : > { %1905 = vrot.lane.b32.xlu1 %v1822_v7, %s5505_s30  ;;  %v2345_v35 = vsel %vm5710_vm4, %v2340_v24, %v6927_v51  ;;  %v2357_v51 = vshrl.u32 %v2035_v48, 16  ;;  %v2362_v32 = vrot.slane %v2360_v31, 5  ;;  %v866_v7 = vld [vmem:[#allocation2 + $0xb8] sm:$0xf]  ;;  %v3051_v24 = vld [vmem:[#allocation2 + $0x90] sm:$0xf] }
 0x277   : > { %v3474_v20 = vpop.permute.xlu2 %3473  ;;  %v4654_v9 = vpack.c.bf16 %v4624_v21, %v4623_v56  ;;  %2484 = vst.msk [vmem:[#allocation3 + $0x124] sm:$0xf] %vm306_vm0, %v2345_v35  ;;  %v2039_v21 = vld [vmem:[#allocation2 + $0xb8] sm:$0xf]  ;;  %v2019_v48 = vld [vmem:[#allocation2 + $0x68] sm:$0x1] }
 0x278   : > { %v1697_v63 = vpop.permute.xlu1 %1696  ;;  %v5327_v42 = vld [vmem:[#allocation3 + $0x64] sm:$0xf]  ;;  %v2359_v52 = vrot.slane %v2357_v51, 4  ;;  %898 = vst.msk [vmem:[#allocation3 + $0x174] sm:$0xf] %vm306_vm0, %v866_v7  ;;  %v7548_v51 = vrot.slane %v6551_v39, 5 }
 0x279   : > { %1782 = vst.msk [vmem:[#allocation3 + $0x84] sm:$0xf] %vm1770_vm1, %v1697_v63  ;;  %5296 = vmatmul.msk.bf16.gmra.mxu3 %vm4681_vm3, %v4654_v9  ;;  %v5066_v3 = vor.u32 %v5327_v42, %v5063_v23  ;;  %v2390_v9 = vshll.u32 %v2039_v21, 16  ;;  %v2394_v63 = vshrl.u32 %v2039_v21, 16  ;;  %v863_v42 = vld [vmem:[#allocation2 + $0xa8] sm:$0xf] }
 0x27a   : > { %v7032_v10 = vpop.permute.xlu0 %1915  ;;  %1975 = vst.msk [vmem:[#allocation3 + $0x84] sm:$0xf] %vm1963_vm2, %v6555_v44  ;;  %v3305_v44 = vshll.u32 %v3050_v55, 16  ;;  %v2363_v47 = vor.u32 %v2362_v32, %v2359_v52  ;;  %v2040_v55 = vld [vmem:[#allocation2 + $0xbc] sm:$0x1]  ;;  %v2232_v54 = vshll.u32 %v2019_v48, 16 }
 0x27b   : > { %4471 = vmatmul.bf16.gmra.mxu1 %v5066_v3  ;;  %v7063_v13 = vrot.slane %v2390_v9, 5  ;;  %v2396_v3 = vrot.slane %v2394_v63, 4  ;;  %895 = vst.msk [vmem:[#allocation3 + $0x150] sm:$0xf] %vm306_vm0, %v863_v42  ;;  %v2524_v39 = vld [vmem:[#allocation2 + $0x8c] sm:$0x1] }
 0x27c   : > { %v3307_v11 = vrot.slane %v3305_v44, 5  ;;  %v2400_v44 = vshll.u32 %v2040_v55, 16  ;;  %v865_v48 = vld [vmem:[#allocation2 + $0xb4] sm:$0xf] }
 0x27d   : > { %2736 = vrot.lane.b32.xlu2 %v2654_v22, %s5503_s24  ;;  %v2228_v22 = vrot.slane %v2226_v26, 4  ;;  %897 = vst.msk [vmem:[#allocation3 + $0x168] sm:$0xf] %vm306_vm0, %v865_v48  ;;  %v2526_v48 = vld [vmem:[#allocation2 + $0x94] sm:$0xf] }
 0x27e   : > { %2929 = vrot.lane.b32.xlu1 %v2847_v8, %s5504_s29  ;;  %v3308_v56 = vsel %vm5710_vm4, %v3303_v40, %v3307_v11  ;;  %v3310_v40 = vshrl.u32 %v3051_v24, 16 }
 0x27f   : > { %v1701_v37 = vpop.permute.xlu2 %1700 }
 0x280   : > { %1784 = vst.msk [vmem:[#allocation3 + $0x9c] sm:$0xf] %vm1770_vm1, %v1701_v37  ;;  %v2721_v50 = vpop.permute.xlu1 %2720  ;;  %v2397_v37 = vor.u32 %v2396_v3, %v7063_v13  ;;  %v3312_v21 = vrot.slane %v3310_v40, 4  ;;  %v2849_v40 = vld [vmem:[#allocation2 + $0x90] sm:$0xf] }
 0x281   : > { %2806 = vst.msk [vmem:[#allocation3 + $0x7c] sm:$0xf] %vm1430_vm15, %v2721_v50  ;;  %v5331_v6 = vld [vmem:[#allocation3 + $0x80] sm:$0xf0]  ;;  %v2229_v50 = vor.u32 %v2228_v22, %v6644_v5  ;;  %v7549_v5 = vrot.slane %v6601_v18, 5 }
 0x282   : > { %v2751_v60 = vpop.permute.xlu0 %2750  ;;  %v5074_v14 = vor.u32 %v5331_v6, %v5073_v33  ;;  %2999 = vst.msk [vmem:[#allocation3 + $0x7c] sm:$0xf] %vm1770_vm1, %v6573_v29  ;;  %v1493_v29 = vld [vmem:[#allocation2 + $0x78] sm:$0xe]  ;;  %v2234_v33 = vrot.slane %v2232_v54, 5  ;;  %v2398_v6 = vrot.slane %v2397_v37, 4 }
 0x283   : > { %2821 = vst.msk [vmem:[#allocation3 + $0x130] sm:$0xf] %vm1430_vm15, %v2751_v60  ;;  %v4973_v28 = vrot.slane %v1493_v29, 9  ;;  %v3313_v60 = vshll.u32 %v3051_v24, 16  ;;  %v2662_v52 = vrot.slane %v7549_v5, 4 }
 0x284   : > { %3559 = vst.msk [vmem:[#allocation3 + $0x7c] sm:$0xf] %vm1963_vm2, %v3474_v20  ;;  %4387 = vmatmul.bf16.gmra.mxu0 %v5074_v14  ;;  %v2364_v20 = vrot.slane %v2363_v47, 4  ;;  %v2038_v14 = vld [vmem:[#allocation2 + $0xb4] sm:$0xf] }
 0x285   : > { %2931 = vrot.lane.b32.xlu2 %v2848_v0, %s5504_s29  ;;  %v1635_v31 = vsel %vm5810_vm13, %v4973_v28, %v7548_v51  ;;  %v2402_v0 = vrot.slane %v2400_v44, 5  ;;  %v2381_v58 = vshrl.u32 %v2038_v14, 16  ;;  %v3315_v7 = vrot.slane %v3313_v60, 5  ;;  %v1824_v18 = vld [vmem:[#allocation2 + $0x88] sm:$0xf] }
 0x286   : > { %3491 = vrot.lane.b32.xlu1 %v3308_v56, %s5505_s30  ;;  %v2369_v8 = vsel %vm5710_vm4, %v2364_v20, %v6986_v53  ;;  %v1823_v53 = vld [vmem:[#allocation2 + $0x84] sm:$0xf]  ;;  %v3052_v56 = vld [vmem:[#allocation2 + $0x94] sm:$0xf]  ;;  %v2663_v20 = vrot.slane %v2524_v39, 5  ;;  %v2384_v3 = vshll.u32 %v2038_v14, 16 }
 0x287   : > { %v2725_v49 = vpop.permute.xlu2 %2724  ;;  %2486 = vst.msk [vmem:[#allocation3 + $0x13c] sm:$0xf] %vm306_vm0, %v2369_v8  ;;  %v2403_v9 = vsel %vm5710_vm4, %v2398_v6, %v2402_v0  ;;  %v3319_v42 = vshll.u32 %v3052_v56, 16  ;;  %v2383_v24 = vrot.slane %v2381_v58, 4  ;;  %v3316_v22 = vor.u32 %v3315_v7, %v3312_v21  ;;  %v2041_v0 = vld [vmem:[#allocation2 + $0xc0] sm:$0xf] }
 0x288   : > { %2808 = vst.msk [vmem:[#allocation3 + $0x94] sm:$0xf] %vm1430_vm15, %v2725_v49  ;;  %v2916_v23 = vpop.permute.xlu1 %2915  ;;  %v2664_v28 = vsel %vm5810_vm13, %v2662_v52, %v2663_v20  ;;  %v2386_v55 = vrot.slane %v2384_v3, 5  ;;  %v2408_v39 = vshll.u32 %v2041_v0, 16 }
 0x289   : > { %3000 = vst.msk [vmem:[#allocation3 + $0x88] sm:$0xf] %vm1770_vm1, %v2916_v23  ;;  %v3323_v23 = vshrl.u32 %v3052_v56, 16  ;;  %v3317_v54 = vrot.slane %v3316_v22, 4  ;;  %v2043_v22 = vld [vmem:[#allocation2 + $0xc8] sm:$0x1] }
 0x28a   : > { %v7066_v35 = vpop.permute.xlu0 %3501  ;;  %3560 = vst.msk [vmem:[#allocation3 + $0x88] sm:$0xf] %vm1963_vm2, %v6603_v38  ;;  %v2230_v38 = vrot.slane %v2229_v50, 4  ;;  %v2387_v44 = vor.u32 %v2386_v55, %v2383_v24  ;;  %v2410_v21 = vrot.slane %v2408_v39, 5 }
 0x28b   : > { %v5330_v49 = vld [vmem:[#allocation3 + $0x7c] sm:$0xf]  ;;  %2489 = vst.msk [vmem:[#allocation3 + $0x160] sm:$0xf] %vm306_vm0, %v2403_v9  ;;  %v3325_v37 = vrot.slane %v3323_v23, 4 }
 0x28c   : > { %v2235_v32 = vsel %vm5710_vm4, %v2230_v38, %v2234_v33  ;;  %v2042_v9 = vld [vmem:[#allocation2 + $0xc4] sm:$0xf] }
 0x28d   : > { %1714 = vrot.lane.b32.xlu2 %v1635_v31, %s5504_s29  ;;  %2475 = vst.msk [vmem:[#allocation3 + $0xb8] sm:$0xf] %vm306_vm0, %v2235_v32  ;;  %v3053_v31 = vld [vmem:[#allocation2 + $0x98] sm:$0x1]  ;;  %v1498_v32 = vld [vmem:[#allocation2 + $0x8c] sm:$0x1] }
 0x28e   : > { %1907 = vrot.lane.b32.xlu1 %v1823_v53, %s5505_s30  ;;  %v2388_v53 = vrot.slane %v2387_v44, 4  ;;  %v3329_v38 = vshll.u32 %v3053_v31, 16  ;;  %v1644_v23 = vrot.slane %v1498_v32, 5 }
 0x28f   : > { %v2920_v11 = vpop.permute.xlu2 %2919 }
 0x290   : > { %3002 = vst.msk [vmem:[#allocation3 + $0xa0] sm:$0xf] %vm1770_vm1, %v2920_v11  ;;  %v1699_v26 = vpop.permute.xlu1 %1698  ;;  %v2393_v33 = vsel %vm5710_vm4, %v2388_v53, %v7063_v13  ;;  %v2405_v11 = vshrl.u32 %v2041_v0, 16  ;;  %v3331_v52 = vrot.slane %v3329_v38, 5  ;;  %v4373_v38 = vpop.f32.mrf.mxu0 }
 0x291   : > { %1783 = vst.msk [vmem:[#allocation3 + $0x90] sm:$0xf] %vm1770_vm1, %v1699_v26  ;;  %v5075_v29 = vld [vmem:[#allocation3 + $0x84] sm:$0xf0] }
 0x292   : > { %v1389_v47 = vpop.permute.xlu0 %1388  ;;  %v5078_v63 = vor.u32 %v5330_v49, %v5075_v29  ;;  %1976 = vst.msk [vmem:[#allocation3 + $0x90] sm:$0xf] %vm1963_vm2, %v6620_v12  ;;  %v3321_v12 = vrot.slane %v3319_v42, 5  ;;  %v2407_v56 = vrot.slane %v2405_v11, 4  ;;  %v7550_v49 = vrot.slane %v6636_v17, 5 }
 0x293   : > { %1458 = vst.msk [vmem:[#allocation3 + $0x144] sm:$0xf] %vm1430_vm15, %v1389_v47  ;;  %v2527_v11 = vld [vmem:[#allocation2 + $0x98] sm:$0x1] }
 0x294   : > { %4476 = vmatmul.bf16.gmra.mxu1 %v5078_v63  ;;  %v3326_v60 = vor.u32 %v3325_v37, %v3321_v12  ;;  %2488 = vst.msk [vmem:[#allocation3 + $0x154] sm:$0xf] %vm306_vm0, %v2393_v33  ;;  %v3322_v6 = vsel %vm5710_vm4, %v3317_v54, %v3321_v12  ;;  %v1643_v29 = vrot.slane %v7550_v49, 4  ;;  %v2418_v63 = vshrl.u32 %v2042_v9, 16 }
 0x295   : > { %1909 = vrot.lane.b32.xlu2 %v1824_v18, %s5505_s30  ;;  %v2414_v18 = vshll.u32 %v2042_v9, 16  ;;  %v2411_v20 = vor.u32 %v2410_v21, %v2407_v56  ;;  %v2424_v12 = vshll.u32 %v2043_v22, 16  ;;  %v2670_v32 = vrot.slane %v2527_v11, 5 }
 0x296   : > { %2742 = vrot.lane.b32.xlu1 %v2664_v28, %s5503_s24  ;;  %v3327_v5 = vrot.slane %v3326_v60, 4  ;;  %v2420_v3 = vrot.slane %v2418_v63, 4  ;;  %v1645_v28 = vsel %vm5810_vm13, %v1643_v29, %v1644_v23  ;;  %v2667_v60 = vrot.slane %v2526_v48, 5  ;;  %v1499_v23 = vld [vmem:[#allocation2 + $0x90] sm:$0xe] }
 0x297   : > { %v1703_v8 = vpop.permute.xlu2 %1702  ;;  %v2416_v24 = vrot.slane %v2414_v18, 5  ;;  %v2412_v17 = vrot.slane %v2411_v20, 4  ;;  %v2426_v54 = vrot.slane %v2424_v12, 5  ;;  %v4374_v29 = vadd.f32 %v6854_v41, %v4373_v38 }
 0x298   : > { %1785 = vst.msk [vmem:[#allocation3 + $0xa8] sm:$0xf] %vm1770_vm1, %v1703_v8  ;;  %v1894_v51 = vpop.permute.xlu1 %1893  ;;  %v3332_v42 = vsel %vm5710_vm4, %v3327_v5, %v3331_v52  ;;  %v2525_v8 = vld [vmem:[#allocation2 + $0x90] sm:$0xe]  ;;  %v2669_v52 = vrot.slane %v2667_v60, 4  ;;  %v4375_v63 = vpop.f32.mrf.mxu0 }
 0x299   : > { %1977 = vst.msk [vmem:[#allocation3 + $0x9c] sm:$0xf] %vm1963_vm2, %v1894_v51  ;;  %v5085_v13 = vld [vmem:[#allocation3 + $0x90] sm:$0xf]  ;;  %v2417_v37 = vsel %vm5710_vm4, %v2412_v17, %v2416_v24  ;;  %v3054_v51 = vld [vmem:[#allocation2 + $0x9c] sm:$0xf] }
 0x29a   : > { %v7102_v50 = vpop.permute.xlu0 %1919  ;;  %2490 = vst.msk [vmem:[#allocation3 + $0x16c] sm:$0xf] %vm306_vm0, %v2417_v37  ;;  %v3334_v0 = vshrl.u32 %v3054_v51, 16  ;;  %v2671_v9 = vsel %vm5810_vm13, %v2669_v52, %v2670_v32  ;;  %v7150_v17 = vld [vmem:[%s7466_s2] ss:$0 sm:$0xff] }
 0x29b   : > { %v4376_v41 = vadd.f32 %v7150_v17, %v4375_v63 }
 0x29d   : > { %2933 = vrot.lane.b32.xlu2 %v2849_v40, %s5504_s29  ;;  %v4990_v40 = vrot.slane %v2525_v8, 9 }
 0x29e   : > { %3493 = vrot.lane.b32.xlu1 %v3322_v6, %s5505_s30  ;;  %v1825_v6 = vld [vmem:[#allocation2 + $0x90] sm:$0xf] }
 0x29f   : > { %v1898_v14 = vpop.permute.xlu2 %1897  ;;  %v2668_v39 = vsel %vm5810_vm13, %v4990_v40, %v2667_v60 }
 0x2a0   : > { %1979 = vst.msk [vmem:[#allocation3 + $0xb4] sm:$0xf] %vm1963_vm2, %v1898_v14  ;;  %v2918_v58 = vpop.permute.xlu1 %2917  ;;  %v5334_v26 = vld [vmem:[#allocation3 + $0x98] sm:$0xf0]  ;;  %v3337_v14 = vshll.u32 %v3054_v51, 16 }
 0x2a1   : > { %3001 = vst.msk [vmem:[#allocation3 + $0x94] sm:$0xf] %vm1770_vm1, %v2918_v58  ;;  %v5086_v47 = vor.u32 %v5334_v26, %v5085_v13  ;;  %v3336_v58 = vrot.slane %v3334_v0, 4 }
 0x2a2   : > { %v2755_v7 = vpop.permute.xlu0 %2754  ;;  %3561 = vst.msk [vmem:[#allocation3 + $0x94] sm:$0xf] %vm1963_vm2, %v6668_v2  ;;  %v2421_v2 = vor.u32 %v2420_v3, %v2416_v24  ;;  %v3339_v13 = vrot.slane %v3337_v14, 5  ;;  %v1500_v3 = vld [vmem:[#allocation2 + $0x94] sm:$0xf] }
 0x2a3   : > { %2823 = vst.msk [vmem:[#allocation3 + $0x148] sm:$0xf] %vm1430_vm15, %v2755_v7  ;;  %4392 = vmatmul.bf16.gmra.mxu0 %v5086_v47 }
 0x2a4   : > { %v2422_v31 = vrot.slane %v2421_v2, 4  ;;  %v3340_v18 = vor.u32 %v3339_v13, %v3336_v58  ;;  %v4975_v2 = vrot.slane %v1499_v23, 9 }
 0x2a5   : > { %3495 = vrot.lane.b32.xlu2 %v3332_v42, %s5505_s30  ;;  %v2852_v42 = vld [vmem:[#allocation2 + $0xa0] sm:$0xf] }
 0x2a6   : > { %1720 = vrot.lane.b32.xlu1 %v1645_v28, %s5504_s29  ;;  %v2427_v33 = vsel %vm5710_vm4, %v2422_v31, %v2426_v54  ;;  %v3341_v28 = vrot.slane %v3340_v18, 4  ;;  %v1648_v31 = vrot.slane %v1500_v3, 5 }
 0x2a7   : > { %v2922_v55 = vpop.permute.xlu2 %2921  ;;  %2491 = vst.msk [vmem:[#allocation3 + $0x178] sm:$0xf] %vm306_vm0, %v2427_v33  ;;  %v5337_v48 = vld [vmem:[#allocation3 + $0xb0] sm:$0xf0] }
 0x2a8   : > { %3003 = vst.msk [vmem:[#allocation3 + $0xac] sm:$0xf] %vm1770_vm1, %v2922_v55  ;;  %v3480_v44 = vpop.permute.xlu1 %3479  ;;  %v3346_v40 = vsel %vm5710_vm4, %v3341_v28, %v6692_v27  ;;  %v1649_v33 = vsel %vm5810_vm13, %v4975_v2, %v1648_v31 }
 0x2a9   : > { %3562 = vst.msk [vmem:[#allocation3 + $0xa0] sm:$0xf] %vm1963_vm2, %v3480_v44  ;;  %v5333_v21 = vld [vmem:[#allocation3 + $0x94] sm:$0xf] }
 0x2aa   : > { %v7130_v53 = vpop.permute.xlu0 %3505 }
 0x2ad   : > { %1911 = vrot.lane.b32.xlu2 %v1825_v6, %s5505_s30 }
 0x2ae   : > { %2744 = vrot.lane.b32.xlu1 %v2668_v39, %s5503_s24  ;;  %v2528_v39 = vld [vmem:[#allocation2 + $0x9c] sm:$0xe] }
 0x2af   : > { %v3484_v5 = vpop.permute.xlu2 %3483  ;;  %v4991_v32 = vrot.slane %v2528_v39, 9 }
 0x2b0   : > { %v1896_v26 = vpop.permute.xlu1 %1895  ;;  %v5087_v7 = vld [vmem:[#allocation3 + $0x9c] sm:$0xf0] }
 0x2b1   : > { %v4462_v56 = vpop.f32.mrf.mxu1  ;;  %1978 = vst.msk [vmem:[#allocation3 + $0xa8] sm:$0xf] %vm1963_vm2, %v1896_v26  ;;  %v5090_v49 = vor.u32 %v5333_v21, %v5087_v7 }
 0x2b2   : > { %v1393_v47 = vpop.permute.xlu0 %1392  ;;  %v4463_v20 = vadd.f32 %v4462_v56, %v4374_v29  ;;  %v938_v56 = vld [vmem:[#allocation2 + $0x9c] sm:$0xf] }
 0x2b3   : > { %1460 = vst.msk [vmem:[#allocation3 + $0x15c] sm:$0xf] %vm1430_vm15, %v1393_v47  ;;  %4481 = vmatmul.bf16.gmra.mxu1 %v5090_v49  ;;  %v3059_v47 = vld [vmem:[#allocation2 + $0xb0] sm:$0x1]  ;;  %v7551_v49 = vrot.slane %v6736_v45, 5  ;;  %v1266_v18 = vshll.u32 %v938_v56, 16  ;;  %v7552_v45 = vor.u32 %v6722_v34, %v6720_v59 }
 0x2b4   : > { %v4552_v12 = vadd.f32 %v6632_v16, %v4463_v20  ;;  %v1501_v16 = vld [vmem:[#allocation2 + $0x98] sm:$0x1]  ;;  %v3377_v63 = vshll.u32 %v3059_v47, 16  ;;  %v2853_v20 = vld [vmem:[#allocation2 + $0xa8] sm:$0xf] }
 0x2b5   : > { %2746 = vrot.lane.b32.xlu2 %v2671_v9, %s5503_s24  ;;  %v1651_v0 = vrot.slane %v1501_v16, 5  ;;  %v2675_v29 = vsel %vm5810_vm13, %v4991_v32, %v7551_v49  ;;  %v1263_v9 = vshrl.u32 %v938_v56, 16  ;;  %v3375_v3 = vrot.slane %v7552_v45, 4  ;;  %v2531_v32 = vld [vmem:[#allocation2 + $0xa8] sm:$0xe] }
 0x2b6   : > { %2939 = vrot.lane.b32.xlu1 %v2852_v42, %s5504_s29  ;;  %v4625_v60 = vmax.f32 %v4552_v12, 0.0  ;;  %v1502_v12 = vld [vmem:[#allocation2 + $0x9c] sm:$0xe]  ;;  %v1830_v56 = vld [vmem:[#allocation2 + $0xac] sm:$0xf] }
 0x2b7   : > { %v1900_v24 = vpop.permute.xlu2 %1899  ;;  %v1265_v23 = vrot.slane %v1263_v9, 4  ;;  %v941_v9 = vld [vmem:[#allocation2 + $0xa8] sm:$0xf] }
 0x2b8   : > { %1980 = vst.msk [vmem:[#allocation3 + $0xc0] sm:$0xf] %vm1963_vm2, %v1900_v24  ;;  %v2731_v22 = vpop.permute.xlu1 %2730  ;;  %v5097_v8 = vld [vmem:[#allocation3 + $0xa8] sm:$0xf]  ;;  %v1268_v24 = vrot.slane %v1266_v18, 5 }
 0x2b9   : > { %v4464_v55 = vpop.f32.mrf.mxu1  ;;  %2811 = vst.msk [vmem:[#allocation3 + $0xb8] sm:$0xf] %vm1430_vm15, %v2731_v22  ;;  %v5098_v51 = vor.u32 %v5337_v48, %v5097_v8  ;;  %v2854_v48 = vld [vmem:[#allocation2 + $0xac] sm:$0xf] }
 0x2ba   : > { %v7155_v37 = vpop.permute.xlu0 %1923  ;;  %v4465_v44 = vadd.f32 %v4464_v55, %v4376_v41  ;;  %3004 = vst.msk [vmem:[#allocation3 + $0xb8] sm:$0xf] %vm1770_vm1, %v6724_v61  ;;  %v3379_v41 = vrot.slane %v3377_v63, 5  ;;  %v1269_v2 = vor.u32 %v1268_v24, %v1265_v23  ;;  %v3062_v23 = vld [vmem:[#allocation2 + $0xbc] sm:$0x1] }
 0x2bb   : > { %3564 = vst.msk [vmem:[#allocation3 + $0xb8] sm:$0xf] %vm1963_vm2, %v3484_v5  ;;  %4397 = vmatmul.bf16.gmra.mxu0 %v5098_v51  ;;  %v1828_v5 = vld [vmem:[#allocation2 + $0xa0] sm:$0xf] }
 0x2bc   : > { %v4554_v54 = vadd.f32 %v6665_v62, %v4465_v44  ;;  %v1650_v62 = vrot.slane %v1648_v31, 4  ;;  %v3380_v59 = vsel %vm5710_vm4, %v3375_v3, %v3379_v41  ;;  %v1503_v44 = vld [vmem:[#allocation2 + $0xa0] sm:$0xf]  ;;  %v1270_v51 = vrot.slane %v1269_v2, 4 }
 0x2bd   : > { %3497 = vrot.lane.b32.xlu2 %v3346_v40, %s5505_s30  ;;  %v1655_v40 = vrot.slane %v1503_v44, 5  ;;  %v1287_v41 = vshrl.u32 %v941_v9, 16  ;;  %v3401_v2 = vshll.u32 %v3062_v23, 16 }
 0x2be   : > { %v4626_v38 = vmax.f32 %v4554_v54, 0.0  ;;  %1722 = vrot.lane.b32.xlu1 %v1649_v33, %s5504_s29  ;;  %v1652_v27 = vsel %vm5810_vm13, %v1650_v62, %v1651_v0  ;;  %v4976_v54 = vrot.slane %v1502_v12, 9 }
 0x2bf   : > { %v2735_v6 = vpop.permute.xlu2 %2734  ;;  %v5109_v22 = vld [vmem:[#allocation3 + $0xc0] sm:$0xf]  ;;  %v1289_v44 = vrot.slane %v1287_v41, 4 }
 0x2c0   : > { %2813 = vst.msk [vmem:[#allocation3 + $0xd0] sm:$0xf] %vm1430_vm15, %v2735_v6  ;;  %v4655_v61 = vpack.c.bf16 %v4626_v38, %v4625_v60  ;;  %v3482_v14 = vpop.permute.xlu1 %3481  ;;  %v1275_v60 = vsel %vm5710_vm4, %v1270_v51, %v6760_v19  ;;  %v1504_v38 = vld [vmem:[#allocation2 + $0xa4] sm:$0x1]  ;;  %v1656_v33 = vsel %vm5810_vm13, %v4976_v54, %v1655_v40 }
 0x2c1   : > { %3563 = vst.msk [vmem:[#allocation3 + $0xac] sm:$0xf] %vm1963_vm2, %v3482_v14  ;;  %v1658_v62 = vrot.slane %v1504_v38, 5  ;;  %v4556_v14 = vpop.f32.mrf.mxu2 }
 0x2c2   : > { %v2759_v11 = vpop.permute.xlu0 %2758  ;;  %5297 = vmatmul.msk.bf16.gmra.mxu3 %vm4681_vm3, %v4655_v61  ;;  %v5099_v26 = vld [vmem:[#allocation3 + $0xb4] sm:$0xf0]  ;;  %v1657_v61 = vrot.slane %v1655_v40, 4 }
 0x2c3   : > { %2825 = vst.msk [vmem:[#allocation3 + $0x160] sm:$0xf] %vm1430_vm15, %v2759_v11 }
 0x2c5   : > { %1724 = vrot.lane.b32.xlu2 %v1652_v27, %s5504_s29 }
 0x2c6   : > { %1917 = vrot.lane.b32.xlu1 %v1828_v5, %s5505_s30  ;;  %v1659_v5 = vsel %vm5810_vm13, %v1657_v61, %v1658_v62  ;;  %v7556_v61 = vld [vmem:[#allocation15_spill] sm:$0xff]  ;;  %v2856_v62 = vld [vmem:[#allocation2 + $0xb8] sm:$0xf] }
 0x2c7   : > { %v3486_v52 = vpop.permute.xlu2 %3485 }
 0x2c8   : > { %v1709_v58 = vpop.permute.xlu1 %1708  ;;  %v5336_v13 = vld [vmem:[#allocation3 + $0xac] sm:$0xf] }
 0x2c9   : > { %1788 = vst.msk [vmem:[#allocation3 + $0xcc] sm:$0xf] %vm1770_vm1, %v1709_v58  ;;  %v5102_v7 = vor.u32 %v5336_v13, %v5099_v26  ;;  %v5491_v58 = vld [vmem:[#allocation2 + $0xb8] sm:$0xf]  ;;  %v4558_v24 = vpop.f32.mrf.mxu2 }
 0x2ca   : > { %v7177_v21 = vpop.permute.xlu0 %3509  ;;  %1981 = vst.msk [vmem:[#allocation3 + $0xcc] sm:$0xf] %vm1963_vm2, %v6757_v46  ;;  %v3395_v13 = vshrl.u32 %v5491_v58, 16 }
 0x2cb   : > { %4486 = vmatmul.bf16.gmra.mxu1 %v5102_v7 }
 0x2cc   : > { %v3397_v63 = vrot.slane %v3395_v13, 4 }
 0x2cd   : > { %2748 = vrot.lane.b32.xlu2 %v2675_v29, %s5503_s24 }
 0x2ce   : > { %2941 = vrot.lane.b32.xlu1 %v2853_v20, %s5504_s29 }
 0x2cf   : > { %v1713_v42 = vpop.permute.xlu2 %1712 }
 0x2d0   : > { %1790 = vst.msk [vmem:[#allocation3 + $0xe4] sm:$0xf] %vm1770_vm1, %v1713_v42  ;;  %v2733_v46 = vpop.permute.xlu1 %2732  ;;  %v4378_v16 = vpop.f32.mrf.mxu0 }
 0x2d1   : > { %2812 = vst.msk [vmem:[#allocation3 + $0xc4] sm:$0xf] %vm1430_vm15, %v2733_v46  ;;  %v5340_v55 = vld [vmem:[#allocation3 + $0xc8] sm:$0xf0]  ;;  %v7553_v46 = vld [vmem:[#allocation12_spill] sm:$0xff] }
 0x2d2   : > { %v1397_v28 = vpop.permute.xlu0 %1396  ;;  %v5110_v8 = vor.u32 %v5340_v55, %v5109_v22  ;;  %3005 = vst.msk [vmem:[#allocation3 + $0xc4] sm:$0xf] %vm1770_vm1, %v6776_v15  ;;  %v7554_v45 = vrot.slane %v7553_v46, 5  ;;  %v2855_v55 = vld [vmem:[#allocation2 + $0xb4] sm:$0xf] }
 0x2d3   : > { %1462 = vst.msk [vmem:[#allocation3 + $0x174] sm:$0xf] %vm1430_vm15, %v1397_v28  ;;  %v1290_v28 = vshll.u32 %v941_v9, 16 }
 0x2d4   : > { %3565 = vst.msk [vmem:[#allocation3 + $0xc4] sm:$0xf] %vm1963_vm2, %v3486_v52  ;;  %4402 = vmatmul.bf16.gmra.mxu0 %v5110_v8  ;;  %v4379_v52 = vadd.f32 %v7150_v17, %v4378_v16  ;;  %v7555_v8 = vld [vmem:[#allocation13_spill] sm:$0xff] }
 0x2d5   : > { %2943 = vrot.lane.b32.xlu2 %v2854_v48, %s5504_s29  ;;  %v3398_v48 = vor.u32 %v3397_v63, %v7555_v8  ;;  %v1292_v51 = vrot.slane %v1290_v28, 5  ;;  %v5492_v8 = vld [vmem:[#allocation2 + $0xc4] sm:$0xf] }
 0x2d6   : > { %3503 = vrot.lane.b32.xlu1 %v3380_v59, %s5505_s30 }
 0x2d7   : > { %v2737_v34 = vpop.permute.xlu2 %2736  ;;  %v3399_v38 = vrot.slane %v3398_v48, 4  ;;  %v3419_v48 = vshrl.u32 %v5492_v8, 16 }
 0x2d8   : > { %2814 = vst.msk [vmem:[#allocation3 + $0xdc] sm:$0xf] %vm1430_vm15, %v2737_v34  ;;  %v2928_v31 = vpop.permute.xlu1 %2927  ;;  %v4380_v26 = vpop.f32.mrf.mxu0 }
 0x2d9   : > { %3006 = vst.msk [vmem:[#allocation3 + $0xd0] sm:$0xf] %vm1770_vm1, %v2928_v31  ;;  %v4381_v49 = vadd.f32 %v7150_v17, %v4380_v26  ;;  %v7557_v26 = vld [vmem:[#allocation14_spill] sm:$0xff] }
 0x2da   : > { %v7202_v15 = vpop.permute.xlu0 %1927  ;;  %3566 = vst.msk [vmem:[#allocation3 + $0xd0] sm:$0xf] %vm1963_vm2, %v6791_v43 }
 0x2db   : > { %v5339_v19 = vld [vmem:[#allocation3 + $0xc4] sm:$0xf] }
 0x2dd   : > { %1386 = vrot.lane.b32.xlu2 %v1275_v60, %s5503_s24 }
 0x2de   : > { %1726 = vrot.lane.b32.xlu1 %v1656_v33, %s5504_s29  ;;  %v3403_v33 = vrot.slane %v3401_v2, 5 }
 0x2df   : > { %v2932_v6 = vpop.permute.xlu2 %2931 }
 0x2e0   : > { %3008 = vst.msk [vmem:[#allocation3 + $0xe8] sm:$0xf] %vm1770_vm1, %v2932_v6  ;;  %v1711_v0 = vpop.permute.xlu1 %1710  ;;  %v4467_v43 = vpop.f32.mrf.mxu1 }
 0x2e1   : > { %1789 = vst.msk [vmem:[#allocation3 + $0xd8] sm:$0xf] %vm1770_vm1, %v1711_v0  ;;  %v5111_v27 = vld [vmem:[#allocation3 + $0xcc] sm:$0xf0]  ;;  %v4468_v7 = vadd.f32 %v4467_v43, %v4379_v52  ;;  %v1293_v0 = vor.u32 %v1292_v51, %v1289_v44  ;;  %v3404_v43 = vsel %vm5710_vm4, %v3399_v38, %v3403_v33  ;;  %v3421_v38 = vrot.slane %v3419_v48, 4  ;;  %v7558_v33 = vld [vmem:[#allocation17_spill] sm:$0xff] }
 0x2e2   : > { %v2763_v11 = vpop.permute.xlu0 %2762  ;;  %v5114_v39 = vor.u32 %v5339_v19, %v5111_v27  ;;  %1982 = vst.msk [vmem:[#allocation3 + $0xd8] sm:$0xf] %vm1963_vm2, %v6806_v30  ;;  %v4992_v30 = vrot.slane %v2531_v32, 9  ;;  %v1506_v19 = vld [vmem:[#allocation2 + $0xac] sm:$0xf]  ;;  %v4561_v27 = vpop.f32.mrf.mxu2 }
 0x2e3   : > { %2827 = vst.msk [vmem:[#allocation3 + $0x178] sm:$0xf] %vm1430_vm15, %v2763_v11  ;;  %v4557_v20 = vadd.f32 %v4556_v14, %v4468_v7  ;;  %v1505_v11 = vld [vmem:[#allocation2 + $0xa8] sm:$0xe]  ;;  %v1662_v58 = vrot.slane %v1506_v19, 5 }
 0x2e4   : > { %4491 = vmatmul.bf16.gmra.mxu1 %v5114_v39  ;;  %v2682_v3 = vsel %vm5810_vm13, %v4992_v30, %v7554_v45  ;;  %v1294_v39 = vrot.slane %v1293_v0, 4  ;;  %v4977_v32 = vrot.slane %v1505_v11, 9  ;;  %v2857_v19 = vld [vmem:[#allocation2 + $0xc0] sm:$0xf] }
 0x2e5   : > { %1728 = vrot.lane.b32.xlu2 %v1659_v5, %s5504_s29  ;;  %v4627_v59 = vmax.f32 %v4557_v20, 0.0 }
 0x2e6   : > { %1921 = vrot.lane.b32.xlu1 %v1830_v56, %s5505_s30  ;;  %v1299_v56 = vsel %vm5710_vm4, %v1294_v39, %v7557_v26 }
 0x2e7   : > { %v1715_v47 = vpop.permute.xlu2 %1714 }
 0x2e8   : > { %1791 = vst.msk [vmem:[#allocation3 + $0xf0] sm:$0xf] %vm1770_vm1, %v1715_v47  ;;  %v1906_v29 = vpop.permute.xlu1 %1905  ;;  %v4469_v18 = vpop.f32.mrf.mxu1  ;;  %v1507_v47 = vld [vmem:[#allocation2 + $0xb0] sm:$0x1] }
 0x2e9   : > { %1983 = vst.msk [vmem:[#allocation3 + $0xe4] sm:$0xf] %vm1963_vm2, %v1906_v29  ;;  %v4470_v42 = vadd.f32 %v4469_v18, %v4381_v49  ;;  %v5121_v40 = vld [vmem:[#allocation3 + $0xd8] sm:$0xf]  ;;  %v4383_v6 = vpop.f32.mrf.mxu0  ;;  %v1663_v49 = vsel %vm5810_vm13, %v4977_v32, %v1662_v58  ;;  %v1664_v18 = vrot.slane %v1662_v58, 4  ;;  %v1665_v63 = vrot.slane %v1507_v47, 5 }
 0x2ea   : > { %v4384_v13 = vadd.f32 %v7150_v17, %v4383_v6  ;;  %v4563_v41 = vpop.f32.mrf.mxu2  ;;  %v3065_v6 = vld [vmem:[#allocation2 + $0xc8] sm:$0x1] }
 0x2eb   : > { %v4559_v22 = vadd.f32 %v4558_v24, %v4470_v42 }
 0x2ed   : > { %2752 = vrot.lane.b32.xlu2 %v2682_v3, %s5503_s24  ;;  %v4628_v34 = vmax.f32 %v4559_v22, 0.0  ;;  %v1666_v22 = vsel %vm5810_vm13, %v1664_v18, %v1665_v63 }
 0x2ee   : > { %2945 = vrot.lane.b32.xlu1 %v2855_v55, %s5504_s29  ;;  %v2534_v55 = vld [vmem:[#allocation2 + $0xb4] sm:$0xe] }
 0x2ef   : > { %v1910_v12 = vpop.permute.xlu2 %1909  ;;  %v4656_v54 = vpack.c.bf16 %v4628_v34, %v4627_v59  ;;  %v1832_v34 = vld [vmem:[#allocation2 + $0xb8] sm:$0xf]  ;;  %v4993_v51 = vrot.slane %v2534_v55, 9 }
 0x2f0   : > { %1985 = vst.msk [vmem:[#allocation3 + $0xfc] sm:$0xf] %vm1963_vm2, %v1910_v12  ;;  %v2930_v31 = vpop.permute.xlu1 %2929  ;;  %v5343_v16 = vld [vmem:[#allocation3 + $0xe0] sm:$0xf0] }
 0x2f1   : > { %3007 = vst.msk [vmem:[#allocation3 + $0xdc] sm:$0xf] %vm1770_vm1, %v2930_v31  ;;  %v5122_v60 = vor.u32 %v5343_v16, %v5121_v40  ;;  %5298 = vmatmul.msk.bf16.gmra.mxu3 %vm4681_vm3, %v4656_v54  ;;  %v4385_v7 = vpop.f32.mrf.mxu0  ;;  %v944_v16 = vld [vmem:[#allocation2 + $0xb4] sm:$0xf] }
 0x2f2   : > { %3567 = vst.msk [vmem:[#allocation3 + $0xdc] sm:$0xf] %vm1963_vm2, %v7556_v61  ;;  %v4386_v9 = vadd.f32 %v7150_v17, %v4385_v7  ;;  %v1314_v11 = vshll.u32 %v944_v16, 16  ;;  %v4566_v26 = vpop.f32.mrf.mxu2 }
 0x2f3   : > { %4407 = vmatmul.bf16.gmra.mxu0 %v5122_v60 }
 0x2f4   : > { %v1316_v58 = vrot.slane %v1314_v11, 5 }
 0x2f5   : > { %2947 = vrot.lane.b32.xlu2 %v2856_v62, %s5504_s29  ;;  %v7559_v62 = vld [vmem:[#allocation16_spill] sm:$0xff] }
 0x2f6   : > { %3507 = vrot.lane.b32.xlu1 %v3404_v43, %s5505_s30  ;;  %v7560_v0 = vrot.slane %v7559_v62, 5 }
 0x2f7   : > { %v2934_v14 = vpop.permute.xlu2 %2933  ;;  %v5346_v40 = vld [vmem:[#allocation3 + $0xf8] sm:$0xf0] }
 0x2f8   : > { %3009 = vst.msk [vmem:[#allocation3 + $0xf4] sm:$0xf] %vm1770_vm1, %v2934_v14  ;;  %v3492_v5 = vpop.permute.xlu1 %3491  ;;  %v4472_v52 = vpop.f32.mrf.mxu1  ;;  %v2689_v43 = vsel %vm5810_vm13, %v4993_v51, %v7560_v0  ;;  %v1311_v14 = vshrl.u32 %v944_v16, 16 }
 0x2f9   : > { %3568 = vst.msk [vmem:[#allocation3 + $0xe8] sm:$0xf] %vm1963_vm2, %v3492_v5  ;;  %v4473_v30 = vadd.f32 %v4472_v52, %v4384_v13  ;;  %v5342_v23 = vld [vmem:[#allocation3 + $0xdc] sm:$0xf]  ;;  %v3425_v5 = vshll.u32 %v3065_v6, 16 }
 0x2fa   : > { %v1313_v32 = vrot.slane %v1311_v14, 4  ;;  %v4568_v16 = vpop.f32.mrf.mxu2  ;;  %v1510_v6 = vld [vmem:[#allocation2 + $0xbc] sm:$0x1] }
 0x2fb   : > { %v4562_v46 = vadd.f32 %v4561_v27, %v4473_v30  ;;  %v7561_v27 = vld [vmem:[#allocation19_spill] sm:$0xff]  ;;  %v3427_v47 = vrot.slane %v3425_v5, 5 }
 0x2fc   : > { %v3422_v39 = vor.u32 %v3421_v38, %v7561_v27 }
 0x2fd   : > { %1390 = vrot.lane.b32.xlu2 %v1299_v56, %s5503_s24  ;;  %v4629_v2 = vmax.f32 %v4562_v46, 0.0  ;;  %v3066_v46 = vld [vmem:[#allocation2 + $0xcc] sm:$0xf] }
 0x2fe   : > { %1730 = vrot.lane.b32.xlu1 %v1663_v49, %s5504_s29  ;;  %v3423_v7 = vrot.slane %v3422_v39, 4  ;;  %v2858_v49 = vld [vmem:[#allocation2 + $0xc4] sm:$0xf]  ;;  %v3430_v55 = vshrl.u32 %v3066_v46, 16  ;;  %v3433_v8 = vshll.u32 %v3066_v46, 16  ;;  %v1672_v39 = vrot.slane %v1510_v6, 5 }
 0x2ff   : > { %v3496_v29 = vpop.permute.xlu2 %3495 }
 0x300   : > { %v1908_v20 = vpop.permute.xlu1 %1907  ;;  %v4474_v42 = vpop.f32.mrf.mxu1  ;;  %v5123_v24 = vld [vmem:[#allocation3 + $0xe4] sm:$0xf0]  ;;  %v3428_v63 = vsel %vm5710_vm4, %v3423_v7, %v3427_v47 }
 0x301   : > { %1984 = vst.msk [vmem:[#allocation3 + $0xf0] sm:$0xf] %vm1963_vm2, %v1908_v20  ;;  %v4475_v45 = vadd.f32 %v4474_v42, %v4386_v9  ;;  %v5126_v3 = vor.u32 %v5342_v23, %v5123_v24  ;;  %v4388_v61 = vpop.f32.mrf.mxu0  ;;  %v1508_v42 = vld [vmem:[#allocation2 + $0xb4] sm:$0xe]  ;;  %v1509_v23 = vld [vmem:[#allocation2 + $0xb8] sm:$0xf] }
 0x302   : > { %v4389_v30 = vadd.f32 %v7150_v17, %v4388_v61  ;;  %v2537_v47 = vld [vmem:[#allocation2 + $0xc0] sm:$0xe] }
 0x303   : > { %v4564_v28 = vadd.f32 %v4563_v41, %v4475_v45  ;;  %4496 = vmatmul.bf16.gmra.mxu1 %v5126_v3  ;;  %v3067_v45 = vld [vmem:[#allocation2 + $0xd0] sm:$0xf] }
 0x304   : > { %v3443_v7 = vshrl.u32 %v3067_v45, 16 }
 0x305   : > { %1732 = vrot.lane.b32.xlu2 %v1666_v22, %s5504_s29  ;;  %v4630_v59 = vmax.f32 %v4564_v28, 0.0 }
 0x306   : > { %1925 = vrot.lane.b32.xlu1 %v1832_v34, %s5505_s30  ;;  %v4978_v34 = vrot.slane %v1508_v42, 9 }
 0x307   : > { %v1912_v12 = vpop.permute.xlu2 %1911  ;;  %v4657_v44 = vpack.c.bf16 %v4630_v59, %v4629_v2 }
 0x308   : > { %1986 = vst.msk [vmem:[#allocation3 + $0x108] sm:$0xf] %vm1963_vm2, %v1912_v12  ;;  %v2743_v31 = vpop.permute.xlu1 %2742  ;;  %v5133_v54 = vld [vmem:[#allocation3 + $0xf0] sm:$0xf]  ;;  %v1669_v12 = vrot.slane %v1509_v23, 5 }
 0x309   : > { %2817 = vst.msk [vmem:[#allocation3 + $0x100] sm:$0xf] %vm1430_vm15, %v2743_v31  ;;  %5299 = vmatmul.msk.bf16.gmra.mxu3 %vm4681_vm3, %v4657_v44  ;;  %v5134_v60 = vor.u32 %v5346_v40, %v5133_v54  ;;  %v4390_v9 = vpop.f32.mrf.mxu0  ;;  %v7562_v44 = vld [vmem:[#allocation20_spill] sm:$0xff]  ;;  %v3432_v31 = vrot.slane %v3430_v55, 4  ;;  %v3435_v54 = vrot.slane %v3433_v8, 5  ;;  %v3439_v40 = vshll.u32 %v3067_v45, 16  ;;  %v4571_v55 = vpop.f32.mrf.mxu2 }
 0x30a   : > { %3010 = vst.msk [vmem:[#allocation3 + $0x100] sm:$0xf] %vm1770_vm1, %v7558_v33  ;;  %v4391_v3 = vadd.f32 %v7150_v17, %v4390_v9  ;;  %v1670_v62 = vsel %vm5810_vm13, %v4978_v34, %v1669_v12  ;;  %v1671_v27 = vrot.slane %v1669_v12, 4  ;;  %v2859_v23 = vld [vmem:[#allocation2 + $0xcc] sm:$0xf] }
 0x30b   : > { %3570 = vst.msk [vmem:[#allocation3 + $0x100] sm:$0xf] %vm1963_vm2, %v3496_v29  ;;  %4412 = vmatmul.bf16.gmra.mxu0 %v5134_v60  ;;  %v1317_v29 = vor.u32 %v1316_v58, %v1313_v32  ;;  %v7563_v60 = vld [vmem:[#allocation18_spill] sm:$0xff]  ;;  %v3436_v61 = vor.u32 %v3435_v54, %v3432_v31 }
 0x30d   : > { %2756 = vrot.lane.b32.xlu2 %v2689_v43, %s5503_s24  ;;  %v1318_v24 = vrot.slane %v1317_v29, 4  ;;  %v3437_v11 = vrot.slane %v3436_v61, 4  ;;  %v3445_v29 = vrot.slane %v3443_v7, 4 }
 0x30e   : > { %2949 = vrot.lane.b32.xlu1 %v2857_v19, %s5504_s29  ;;  %v3441_v19 = vrot.slane %v3439_v40, 5 }
 0x30f   : > { %v2747_v52 = vpop.permute.xlu2 %2746  ;;  %v1323_v38 = vsel %vm5710_vm4, %v1318_v24, %v7563_v60  ;;  %v5145_v58 = vld [vmem:[#allocation3 + $0x108] sm:$0xf] }
 0x310   : > { %2819 = vst.msk [vmem:[#allocation3 + $0x118] sm:$0xf] %vm1430_vm15, %v2747_v52  ;;  %v3494_v13 = vpop.permute.xlu1 %3493  ;;  %v3442_v32 = vsel %vm5710_vm4, %v3437_v11, %v3441_v19  ;;  %v3446_v24 = vor.u32 %v3445_v29, %v3441_v19 }
 0x311   : > { %3569 = vst.msk [vmem:[#allocation3 + $0xf4] sm:$0xf] %vm1963_vm2, %v3494_v13  ;;  %v4477_v56 = vpop.f32.mrf.mxu1  ;;  %3513 = vrot.lane.b32.xlu0 %v3442_v32, %s5505_s30  ;;  %v4573_v40 = vpop.f32.mrf.mxu2 }
 0x312   : > { %v4478_v18 = vadd.f32 %v4477_v56, %v4389_v30  ;;  %v5135_v22 = vld [vmem:[#allocation3 + $0xfc] sm:$0xf0]  ;;  %v1673_v56 = vsel %vm5810_vm13, %v1671_v27, %v1672_v39  ;;  %v1834_v30 = vld [vmem:[#allocation2 + $0xc4] sm:$0xf] }
 0x314   : > { %v4567_v48 = vadd.f32 %v4566_v26, %v4478_v18  ;;  %v3068_v18 = vld [vmem:[#allocation2 + $0xd4] sm:$0x1] }
 0x315   : > { %2951 = vrot.lane.b32.xlu2 %v2858_v49, %s5504_s29  ;;  %v3449_v46 = vshll.u32 %v3068_v18, 16  ;;  %v7341_v18 = vld [vmem:[%s7468_s4] ss:$0 sm:$0xff] }
 0x316   : > { %3511 = vrot.lane.b32.xlu1 %v3428_v63, %s5505_s30  ;;  %v4631_v0 = vmax.f32 %v4567_v48, 0.0 }
 0x317   : > { %v3498_v20 = vpop.permute.xlu2 %3497 }
 0x318   : > { %v1721_v41 = vpop.permute.xlu1 %1720  ;;  %v5345_v28 = vld [vmem:[#allocation3 + $0xf4] sm:$0xf] }
 0x319   : > { %1794 = vst.msk [vmem:[#allocation3 + $0x114] sm:$0xf] %vm1770_vm1, %v1721_v41  ;;  %v4479_v2 = vpop.f32.mrf.mxu1  ;;  %v5138_v59 = vor.u32 %v5345_v28, %v5135_v22  ;;  %v3451_v41 = vrot.slane %v3449_v46, 5  ;;  %v2860_v22 = vld [vmem:[#allocation2 + $0xd0] sm:$0xf]  ;;  %v4576_v19 = vpop.f32.mrf.mxu2 }
 0x31a   : > { %1987 = vst.msk [vmem:[#allocation3 + $0x114] sm:$0xf] %vm1963_vm2, %v7562_v44  ;;  %v4480_v51 = vadd.f32 %v4479_v2, %v4391_v3  ;;  %v3447_v3 = vrot.slane %v3446_v24, 4 }
 0x31b   : > { %4501 = vmatmul.bf16.gmra.mxu1 %v5138_v59 }
 0x31c   : > { %v4569_v33 = vadd.f32 %v4568_v16, %v4480_v51  ;;  %v3452_v2 = vsel %vm5710_vm4, %v3447_v3, %v3451_v41 }
 0x31d   : > { %1394 = vrot.lane.b32.xlu2 %v1323_v38, %s5503_s24 }
 0x31e   : > { %v4632_v43 = vmax.f32 %v4569_v33, 0.0  ;;  %1734 = vrot.lane.b32.xlu1 %v1670_v62, %s5504_s29 }
 0x31f   : > { %v1725_v14 = vpop.permute.xlu2 %1724 }
 0x320   : > { %1796 = vst.msk [vmem:[#allocation3 + $0x12c] sm:$0xf] %vm1770_vm1, %v1725_v14  ;;  %v2745_v5 = vpop.permute.xlu1 %2744  ;;  %v4658_v52 = vpack.c.bf16 %v4632_v43, %v4631_v0  ;;  %v4393_v63 = vpop.f32.mrf.mxu0 }
 0x321   : > { %2818 = vst.msk [vmem:[#allocation3 + $0x10c] sm:$0xf] %vm1430_vm15, %v2745_v5  ;;  %v5349_v13 = vld [vmem:[#allocation3 + $0x110] sm:$0xf0]  ;;  %v4394_v59 = vadd.f32 %v7150_v17, %v4393_v63  ;;  %v4739_v5 = vpop.f32.mrf.mxu3  ;;  %v4578_v29 = vpop.f32.mrf.mxu2 }
 0x322   : > { %3011 = vst.msk [vmem:[#allocation3 + $0x10c] sm:$0xf] %vm1770_vm1, %v6976_v25  ;;  %5300 = vmatmul.msk.bf16.gmra.mxu3 %vm4681_vm3, %v4658_v52  ;;  %v5146_v26 = vor.u32 %v5349_v13, %v5145_v58  ;;  %v4994_v25 = vrot.slane %v2537_v47, 9  ;;  %v4740_v46 = vadd.f32 %v7341_v18, %v4739_v5 }
 0x323   : > { %3571 = vst.msk [vmem:[#allocation3 + $0x10c] sm:$0xf] %vm1963_vm2, %v3498_v20  ;;  %v7564_v20 = vrot.slane %v6949_v1, 5 }
 0x324   : > { %4417 = vmatmul.bf16.gmra.mxu0 %v5146_v26 }
 0x325   : > { %1736 = vrot.lane.b32.xlu2 %v1673_v56, %s5504_s29  ;;  %v2696_v42 = vsel %vm5810_vm13, %v4994_v25, %v7564_v20 }
 0x326   : > { %1929 = vrot.lane.b32.xlu1 %v1834_v30, %s5505_s30 }
 0x327   : > { %v2749_v49 = vpop.permute.xlu2 %2748 }
 0x328   : > { %2820 = vst.msk [vmem:[#allocation3 + $0x124] sm:$0xf] %vm1430_vm15, %v2749_v49  ;;  %v2940_v9 = vpop.permute.xlu1 %2939  ;;  %v4395_v34 = vpop.f32.mrf.mxu0 }
 0x329   : > { %3012 = vst.msk [vmem:[#allocation3 + $0x118] sm:$0xf] %vm1770_vm1, %v2940_v9  ;;  %v4396_v51 = vadd.f32 %v7150_v17, %v4395_v34  ;;  %v4741_v63 = vpop.f32.mrf.mxu3 }
 0x32a   : > { %3572 = vst.msk [vmem:[#allocation3 + $0x118] sm:$0xf] %vm1963_vm2, %v7022_v4  ;;  %v5348_v1 = vld [vmem:[#allocation3 + $0x10c] sm:$0xf] }
 0x32d   : > { %2760 = vrot.lane.b32.xlu2 %v2696_v42, %s5503_s24 }
 0x32e   : > { %2953 = vrot.lane.b32.xlu1 %v2859_v23, %s5504_s29 }
 0x32f   : > { %v2944_v45 = vpop.permute.xlu2 %2943 }
 0x330   : > { %3014 = vst.msk [vmem:[#allocation3 + $0x130] sm:$0xf] %vm1770_vm1, %v2944_v45  ;;  %v1723_v28 = vpop.permute.xlu1 %1722  ;;  %v4482_v4 = vpop.f32.mrf.mxu1 }
 0x331   : > { %1795 = vst.msk [vmem:[#allocation3 + $0x120] sm:$0xf] %vm1770_vm1, %v1723_v28  ;;  %v5147_v8 = vld [vmem:[#allocation3 + $0x114] sm:$0xf0]  ;;  %v4483_v12 = vadd.f32 %v4482_v4, %v4394_v59  ;;  %v4744_v3 = vpop.f32.mrf.mxu3  ;;  %v4742_v28 = vadd.f32 %v7341_v18, %v4741_v63 }
 0x332   : > { %1988 = vst.msk [vmem:[#allocation3 + $0x120] sm:$0xf] %vm1963_vm2, %v7032_v10  ;;  %v5150_v48 = vor.u32 %v5348_v1, %v5147_v8  ;;  %v4581_v1 = vpop.f32.mrf.mxu2  ;;  %v3627_v63 = vld [vmem:[#allocation2 + $0xd0] sm:$0xf] }
 0x333   : > { %v4572_v36 = vadd.f32 %v4571_v55, %v4483_v12 }
 0x334   : > { %4506 = vmatmul.bf16.gmra.mxu1 %v5150_v48 }
 0x335   : > { %2955 = vrot.lane.b32.xlu2 %v2860_v22, %s5504_s29  ;;  %v4633_v60 = vmax.f32 %v4572_v36, 0.0 }
 0x336   : > { %3515 = vrot.lane.b32.xlu1 %v3452_v2, %s5505_s30 }
 0x337   : > { %v1387_v44 = vpop.permute.xlu2 %1386 }
 0x338   : > { %1457 = vst.msk [vmem:[#allocation3 + $0x138] sm:$0xf] %vm1430_vm15, %v1387_v44  ;;  %v1918_v31 = vpop.permute.xlu1 %1917  ;;  %v4484_v10 = vpop.f32.mrf.mxu1 }
 0x339   : > { %1989 = vst.msk [vmem:[#allocation3 + $0x12c] sm:$0xf] %vm1963_vm2, %v1918_v31  ;;  %v4485_v54 = vadd.f32 %v4484_v10, %v4396_v51  ;;  %v5157_v62 = vld [vmem:[#allocation3 + $0x120] sm:$0xf]  ;;  %v4398_v14 = vpop.f32.mrf.mxu0  ;;  %v4746_v44 = vpop.f32.mrf.mxu3  ;;  %v4745_v51 = vadd.f32 %v7341_v18, %v4744_v3 }
 0x33a   : > { %v4399_v52 = vadd.f32 %v7150_v17, %v4398_v14 }
 0x33b   : > { %v4574_v16 = vadd.f32 %v4573_v40, %v4485_v54  ;;  %v4583_v40 = vpop.f32.mrf.mxu2 }
 0x33d   : > { %v4634_v38 = vmax.f32 %v4574_v16, 0.0 }
 0x33f   : > { %v1729_v33 = vpop.permute.xlu2 %1728  ;;  %v4659_v61 = vpack.c.bf16 %v4634_v38, %v4633_v60 }
 0x340   : > { %1798 = vst.msk [vmem:[#allocation3 + $0x144] sm:$0xf] %vm1770_vm1, %v1729_v33  ;;  %v2942_v6 = vpop.permute.xlu1 %2941  ;;  %v5352_v0 = vld [vmem:[#allocation3 + $0x128] sm:$0xf0] }
 0x341   : > { %3013 = vst.msk [vmem:[#allocation3 + $0x124] sm:$0xf] %vm1770_vm1, %v2942_v6  ;;  %v5158_v43 = vor.u32 %v5352_v0, %v5157_v62  ;;  %5301 = vmatmul.msk.bf16.gmra.mxu3 %vm4681_vm3, %v4659_v61  ;;  %v4400_v32 = vpop.f32.mrf.mxu0  ;;  %v4747_v61 = vadd.f32 %v7341_v18, %v4746_v44 }
 0x342   : > { %3573 = vst.msk [vmem:[#allocation3 + $0x124] sm:$0xf] %vm1963_vm2, %v7066_v35  ;;  %v4401_v26 = vadd.f32 %v7150_v17, %v4400_v32 }
 0x343   : > { %4422 = vmatmul.bf16.gmra.mxu0 %v5158_v43 }
 0x345   : > { %v4749_v6 = vpop.f32.mrf.mxu3 }
 0x347   : > { %v2753_v11 = vpop.permute.xlu2 %2752 }
 0x348   : > { %2822 = vst.msk [vmem:[#allocation3 + $0x13c] sm:$0xf] %vm1430_vm15, %v2753_v11  ;;  %v3504_v27 = vpop.permute.xlu1 %3503  ;;  %v4487_v39 = vpop.f32.mrf.mxu1 }
 0x349   : > { %3574 = vst.msk [vmem:[#allocation3 + $0x130] sm:$0xf] %vm1963_vm2, %v3504_v27  ;;  %v4488_v58 = vadd.f32 %v4487_v39, %v4399_v52  ;;  %v5351_v7 = vld [vmem:[#allocation3 + $0x124] sm:$0xf]  ;;  %v4750_v27 = vadd.f32 %v7341_v18, %v4749_v6 }
 0x34b   : > { %v4577_v30 = vadd.f32 %v4576_v19, %v4488_v58 }
 0x34d   : > { %v4635_v20 = vmax.f32 %v4577_v30, 0.0  ;;  %v4751_v5 = vpop.f32.mrf.mxu3 }
 0x34f   : > { %v2948_v13 = vpop.permute.xlu2 %2947 }
 0x350   : > { %3016 = vst.msk [vmem:[#allocation3 + $0x148] sm:$0xf] %vm1770_vm1, %v2948_v13  ;;  %v1727_v35 = vpop.permute.xlu1 %1726  ;;  %v4489_v56 = vpop.f32.mrf.mxu1  ;;  %v5159_v47 = vld [vmem:[#allocation3 + $0x12c] sm:$0xf0] }
 0x351   : > { %1797 = vst.msk [vmem:[#allocation3 + $0x138] sm:$0xf] %vm1770_vm1, %v1727_v35  ;;  %v4490_v49 = vadd.f32 %v4489_v56, %v4401_v26  ;;  %v5162_v25 = vor.u32 %v5351_v7, %v5159_v47  ;;  %v4586_v56 = vpop.f32.mrf.mxu2 }
 0x352   : > { %1990 = vst.msk [vmem:[#allocation3 + $0x138] sm:$0xf] %vm1963_vm2, %v7102_v50  ;;  %v4403_v50 = vpop.f32.mrf.mxu0 }
 0x353   : > { %v4579_v9 = vadd.f32 %v4578_v29, %v4490_v49  ;;  %4511 = vmatmul.bf16.gmra.mxu1 %v5162_v25  ;;  %v4404_v2 = vadd.f32 %v7150_v17, %v4403_v50 }
 0x355   : > { %v4636_v42 = vmax.f32 %v4579_v9, 0.0  ;;  %v3626_v9 = vld [vmem:[#allocation2 + $0xcc] sm:$0xe] }
 0x357   : > { %v1391_v23 = vpop.permute.xlu2 %1390  ;;  %v4660_v24 = vpack.c.bf16 %v4636_v42, %v4635_v20  ;;  %v3628_v20 = vld [vmem:[#allocation2 + $0xd4] sm:$0x1]  ;;  %v5010_v42 = vrot.slane %v3626_v9, 9 }
 0x358   : > { %1459 = vst.msk [vmem:[#allocation3 + $0x150] sm:$0xf] %vm1430_vm15, %v1391_v23  ;;  %v1922_v45 = vpop.permute.xlu1 %1921  ;;  %v3784_v23 = vrot.slane %v3627_v63, 5 }
 0x359   : > { %1991 = vst.msk [vmem:[#allocation3 + $0x144] sm:$0xf] %vm1963_vm2, %v1922_v45  ;;  %5302 = vmatmul.msk.bf16.gmra.mxu3 %vm4681_vm3, %v4660_v24  ;;  %v5169_v22 = vld [vmem:[#allocation3 + $0x138] sm:$0xf]  ;;  %v3787_v24 = vrot.slane %v3628_v20, 5 }
 0x35a   : > { %v4405_v59 = vpop.f32.mrf.mxu0  ;;  %v3785_v3 = vsel %vm5810_vm13, %v5010_v42, %v3784_v23 }
 0x35b   : > { %4819 = vxpose.xlu2.b32.start [1/16] (narrow) %v4740_v46, 32  ;;  %v4406_v31 = vadd.f32 %v7150_v17, %v4405_v59  ;;  %3851 = vst.msk [vmem:[#allocation3 + $0x170] sm:$0xf] %vm306_vm0, %v3785_v3 }
 0x35f   : > { %v1733_v41 = vpop.permute.xlu2 %1732 }
 0x360   : > { %1800 = vst.msk [vmem:[#allocation3 + $0x15c] sm:$0xf] %vm1770_vm1, %v1733_v41  ;;  %v2946_v4 = vpop.permute.xlu1 %2945  ;;  %v5355_v55 = vld [vmem:[#allocation3 + $0x140] sm:$0xf0]  ;;  %v3786_v41 = vrot.slane %v3784_v23, 4 }
 0x361   : > { %3015 = vst.msk [vmem:[#allocation3 + $0x13c] sm:$0xf] %vm1770_vm1, %v2946_v4  ;;  %v4492_v8 = vpop.f32.mrf.mxu1  ;;  %v5170_v48 = vor.u32 %v5355_v55, %v5169_v22  ;;  %v4588_v22 = vpop.f32.mrf.mxu2 }
 0x362   : > { %3575 = vst.msk [vmem:[#allocation3 + $0x13c] sm:$0xf] %vm1963_vm2, %v7130_v53  ;;  %v4493_v34 = vadd.f32 %v4492_v8, %v4404_v2 }
 0x363   : > { %4820 = vxpose.xlu2.b32.cont [2/16] (narrow) %v4742_v28, 32  ;;  %4427 = vmatmul.bf16.gmra.mxu0 %v5170_v48 }
 0x364   : > { %v4582_v54 = vadd.f32 %v4581_v1, %v4493_v34  ;;  %v3788_v1 = vsel %vm5810_vm13, %v3786_v41, %v3787_v24 }
 0x365   : > { %3852 = vst.msk [vmem:[#allocation3 + $0x17c] sm:$0xf] %vm306_vm0, %v3788_v1 }
 0x366   : > { %v4637_v60 = vmax.f32 %v4582_v54, 0.0 }
 0x367   : > { %v2757_v12 = vpop.permute.xlu2 %2756 }
 0x368   : > { %2824 = vst.msk [vmem:[#allocation3 + $0x154] sm:$0xf] %vm1430_vm15, %v2757_v12  ;;  %v3508_v10 = vpop.permute.xlu1 %3507 }
 0x369   : > { %3576 = vst.msk [vmem:[#allocation3 + $0x148] sm:$0xf] %vm1963_vm2, %v3508_v10  ;;  %v4494_v36 = vpop.f32.mrf.mxu1  ;;  %v5354_v43 = vld [vmem:[#allocation3 + $0x13c] sm:$0xf]  ;;  %v5201_v10 = vld [vmem:[#allocation3 + $0x170] sm:$0xf] }
 0x36a   : > { %v4495_v53 = vadd.f32 %v4494_v36, %v4406_v31 }
 0x36b   : > { %4821 = vxpose.xlu2.b32.cont [3/16] (narrow) %v4745_v51, 32 }
 0x36c   : > { %v4584_v16 = vadd.f32 %v4583_v40, %v4495_v53  ;;  %v5362_v54 = vld [vmem:[#allocation3 + $0x178] sm:$0xf0]  ;;  %v4591_v40 = vpop.f32.mrf.mxu2 }
 0x36d   : > { %v5202_v53 = vor.u32 %v5362_v54, %v5201_v10 }
 0x36e   : > { %v4638_v38 = vmax.f32 %v4584_v16, 0.0 }
 0x36f   : > { %v2952_v33 = vpop.permute.xlu2 %2951  ;;  %5290 = vmatmul.msk.bf16.gmra.mxu2 %vm4305_vm14, %v5202_v53 }
 0x370   : > { %3018 = vst.msk [vmem:[#allocation3 + $0x160] sm:$0xf] %vm1770_vm1, %v2952_v33  ;;  %v1731_v62 = vpop.permute.xlu1 %1730  ;;  %v4661_v0 = vpack.c.bf16 %v4638_v38, %v4637_v60  ;;  %v5171_v14 = vld [vmem:[#allocation3 + $0x144] sm:$0xf0]  ;;  %v4408_v52 = vpop.f32.mrf.mxu0 }
 0x371   : > { %1799 = vst.msk [vmem:[#allocation3 + $0x150] sm:$0xf] %vm1770_vm1, %v1731_v62  ;;  %v5174_v11 = vor.u32 %v5354_v43, %v5171_v14  ;;  %v4409_v30 = vadd.f32 %v7150_v17, %v4408_v52 }
 0x372   : > { %1992 = vst.msk [vmem:[#allocation3 + $0x150] sm:$0xf] %vm1963_vm2, %v7155_v37  ;;  %5303 = vmatmul.msk.bf16.gmra.mxu3 %vm4681_vm3, %v4661_v0  ;;  %v4752_v37 = vadd.f32 %v7341_v18, %v4751_v5 }
 0x373   : > { %4822 = vxpose.xlu2.b32.cont [4/16] (narrow) %v4747_v61, 32  ;;  %4516 = vmatmul.bf16.gmra.mxu1 %v5174_v11 }
 0x374   : > { %v4754_v7 = vpop.f32.mrf.mxu3 }
 0x375   : > { %v4755_v46 = vadd.f32 %v7341_v18, %v4754_v7 }
 0x377   : > { %v1395_v19 = vpop.permute.xlu2 %1394 }
 0x378   : > { %1461 = vst.msk [vmem:[#allocation3 + $0x168] sm:$0xf] %vm1430_vm15, %v1395_v19  ;;  %v1926_v39 = vpop.permute.xlu1 %1925  ;;  %v4410_v49 = vpop.f32.mrf.mxu0 }
 0x379   : > { %1993 = vst.msk [vmem:[#allocation3 + $0x15c] sm:$0xf] %vm1963_vm2, %v1926_v39  ;;  %v5181_v26 = vld [vmem:[#allocation3 + $0x150] sm:$0xf]  ;;  %v4411_v45 = vadd.f32 %v7150_v17, %v4410_v49 }
 0x37b   : > { %4823 = vxpose.xlu2.b32.cont [5/16] (narrow) %v4750_v27, 32 }
 0x37c   : > { %v4756_v55 = vpop.f32.mrf.mxu3 }
 0x37d   : > { %v4757_v59 = vadd.f32 %v7341_v18, %v4756_v55 }
 0x37f   : > { %v1737_v32 = vpop.permute.xlu2 %1736 }
 0x380   : > { %1802 = vst.msk [vmem:[#allocation3 + $0x174] sm:$0xf] %vm1770_vm1, %v1737_v32  ;;  %v2950_v58 = vpop.permute.xlu1 %2949  ;;  %v4497_v13 = vpop.f32.mrf.mxu1  ;;  %v5358_v35 = vld [vmem:[#allocation3 + $0x158] sm:$0xf0] }
 0x381   : > { %3017 = vst.msk [vmem:[#allocation3 + $0x154] sm:$0xf] %vm1770_vm1, %v2950_v58  ;;  %v5182_v47 = vor.u32 %v5358_v35, %v5181_v26  ;;  %v4498_v25 = vadd.f32 %v4497_v13, %v4409_v30 }
 0x382   : > { %3577 = vst.msk [vmem:[#allocation3 + $0x154] sm:$0xf] %vm1963_vm2, %v7177_v21 }
 0x383   : > { %4824 = vxpose.xlu2.b32.cont [6/16] (narrow) %v4752_v37, 32  ;;  %4432 = vmatmul.bf16.gmra.mxu0 %v5182_v47  ;;  %v4587_v28 = vadd.f32 %v4586_v56, %v4498_v25  ;;  %v3514_v43 = vpop.permute.xlu0 %3513  ;;  %v4593_v37 = vpop.f32.mrf.mxu2 }
 0x385   : > { %v4639_v17 = vmax.f32 %v4587_v28, 0.0 }
 0x387   : > { %v2761_v29 = vpop.permute.xlu2 %2760 }
 0x388   : > { %2826 = vst.msk [vmem:[#allocation3 + $0x16c] sm:$0xf] %vm1430_vm15, %v2761_v29  ;;  %v3512_v21 = vpop.permute.xlu1 %3511  ;;  %v4499_v50 = vpop.f32.mrf.mxu1 }
 0x389   : > { %3578 = vst.msk [vmem:[#allocation3 + $0x160] sm:$0xf] %vm1963_vm2, %v3512_v21  ;;  %v4500_v4 = vadd.f32 %v4499_v50, %v4411_v45  ;;  %v5357_v44 = vld [vmem:[#allocation3 + $0x154] sm:$0xf]  ;;  %v4413_v57 = vpop.f32.mrf.mxu0 }
 0x38b   : > { %4825 = vxpose.xlu2.b32.cont [7/16] (narrow) %v4755_v46, 32  ;;  %v4589_v8 = vadd.f32 %v4588_v22, %v4500_v4  ;;  %v4596_v63 = vpop.f32.mrf.mxu2 }
 0x38c   : > { %v4759_v36 = vpop.f32.mrf.mxu3 }
 0x38d   : > { %v4640_v48 = vmax.f32 %v4589_v8, 0.0  ;;  %v4760_v16 = vadd.f32 %v7341_v18, %v4759_v36 }
 0x38f   : > { %v2956_v2 = vpop.permute.xlu2 %2955  ;;  %v4662_v12 = vpack.c.bf16 %v4640_v48, %v4639_v17 }
 0x390   : > { %3020 = vst.msk [vmem:[#allocation3 + $0x178] sm:$0xf] %vm1770_vm1, %v2956_v2  ;;  %v1735_v34 = vpop.permute.xlu1 %1734  ;;  %v5183_v51 = vld [vmem:[#allocation3 + $0x15c] sm:$0xf0] }
 0x391   : > { %1801 = vst.msk [vmem:[#allocation3 + $0x168] sm:$0xf] %vm1770_vm1, %v1735_v34  ;;  %v5186_v31 = vor.u32 %v5357_v44, %v5183_v51  ;;  %5304 = vmatmul.msk.bf16.gmra.mxu3 %vm4681_vm3, %v4662_v12  ;;  %v4415_v6 = vpop.f32.mrf.mxu0 }
 0x392   : > { %1994 = vst.msk [vmem:[#allocation3 + $0x168] sm:$0xf] %vm1963_vm2, %v7202_v15  ;;  %v7394_v15 = vld [vmem:[%s7466_s2] ss:$0 sm:$0xff] }
 0x393   : > { %4826 = vxpose.xlu2.b32.cont [8/16] (narrow) %v4757_v59, 32  ;;  %4521 = vmatmul.bf16.gmra.mxu1 %v5186_v31  ;;  %v4414_v33 = vadd.f32 %v7394_v15, %v4413_v57  ;;  %v4416_v0 = vadd.f32 %v7394_v15, %v4415_v6  ;;  %v4598_v41 = vpop.f32.mrf.mxu2 }
 0x394   : > { %v4761_v61 = vpop.f32.mrf.mxu3 }
 0x395   : > { %v4762_v14 = vadd.f32 %v7341_v18, %v4761_v61 }
 0x398   : > { %v1930_v60 = vpop.permute.xlu1 %1929  ;;  %v4502_v38 = vpop.f32.mrf.mxu1 }
 0x399   : > { %1995 = vst.msk [vmem:[#allocation3 + $0x174] sm:$0xf] %vm1963_vm2, %v1930_v60  ;;  %v4503_v62 = vadd.f32 %v4502_v38, %v4414_v33  ;;  %v5193_v27 = vld [vmem:[#allocation3 + $0x168] sm:$0xf] }
 0x39b   : > { %4827 = vxpose.xlu2.b32.cont [9/16] (narrow) %v4760_v16, 32  ;;  %v4592_v5 = vadd.f32 %v4591_v40, %v4503_v62  ;;  %v4601_v59 = vpop.f32.mrf.mxu2 }
 0x39d   : > { %v4641_v13 = vmax.f32 %v4592_v5, 0.0 }
 0x3a0   : > { %v2954_v11 = vpop.permute.xlu1 %2953  ;;  %v4504_v19 = vpop.f32.mrf.mxu1  ;;  %v5361_v39 = vld [vmem:[#allocation3 + $0x170] sm:$0xf0] }
 0x3a1   : > { %3019 = vst.msk [vmem:[#allocation3 + $0x16c] sm:$0xf] %vm1770_vm1, %v2954_v11  ;;  %v4505_v52 = vadd.f32 %v4504_v19, %v4416_v0  ;;  %v5194_v32 = vor.u32 %v5361_v39, %v5193_v27  ;;  %v4418_v30 = vpop.f32.mrf.mxu0 }
 0x3a2   : > { %3579 = vst.msk [vmem:[#allocation3 + $0x16c] sm:$0xf] %vm1963_vm2, %v3514_v43  ;;  %v4419_v23 = vadd.f32 %v7394_v15, %v4418_v30 }
 0x3a3   : > { %4828 = vxpose.xlu2.b32.cont [10/16] (narrow) %v4762_v14, 32  ;;  %v4594_v58 = vadd.f32 %v4593_v37, %v4505_v52  ;;  %4437 = vmatmul.bf16.gmra.mxu0 %v5194_v32  ;;  %v4603_v54 = vpop.f32.mrf.mxu2 }
 0x3a5   : > { %v4642_v26 = vmax.f32 %v4594_v58, 0.0  ;;  %v4764_v35 = vpop.f32.mrf.mxu3 }
 0x3a6   : > { %v4765_v56 = vadd.f32 %v7341_v18, %v4764_v35 }
 0x3a7   : > { %v4663_v7 = vpack.c.bf16 %v4642_v26, %v4641_v13 }
 0x3a8   : > { %v3516_v47 = vpop.permute.xlu1 %3515 }
 0x3a9   : > { %3580 = vst.msk [vmem:[#allocation3 + $0x178] sm:$0xf] %vm1963_vm2, %v3516_v47  ;;  %5305 = vmatmul.msk.bf16.gmra.mxu3 %vm4681_vm3, %v4663_v7  ;;  %v5360_v29 = vld [vmem:[#allocation3 + $0x16c] sm:$0xf]  ;;  %v4420_v24 = vpop.f32.mrf.mxu0 }
 0x3aa   : > { %v4421_v45 = vadd.f32 %v7394_v15, %v4420_v24 }
 0x3ab   : > { %4829 = vxpose.xlu2.b32.cont [11/16] (narrow) %v4765_v56, 32  ;;  %v4606_v0 = vpop.f32.mrf.mxu2 }
 0x3ad   : > { %v4766_v49 = vpop.f32.mrf.mxu3 }
 0x3ae   : > { %v4767_v25 = vadd.f32 %v7341_v18, %v4766_v49 }
 0x3b0   : > { %v5195_v9 = vld [vmem:[#allocation3 + $0x174] sm:$0xf0] }
 0x3b1   : > { %v4507_v20 = vpop.f32.mrf.mxu1  ;;  %v5198_v42 = vor.u32 %v5360_v29, %v5195_v9 }
 0x3b2   : > { %v4508_v46 = vadd.f32 %v4507_v20, %v4419_v23 }
 0x3b3   : > { %4830 = vxpose.xlu2.b32.cont [12/16] (narrow) %v4767_v25, 32  ;;  %4526 = vmatmul.bf16.gmra.mxu1 %v5198_v42  ;;  %v4608_v58 = vpop.f32.mrf.mxu2 }
 0x3b4   : > { %v4597_v50 = vadd.f32 %v4596_v63, %v4508_v46 }
 0x3b6   : > { %v4643_v4 = vmax.f32 %v4597_v50, 0.0 }
 0x3b9   : > { %v4509_v21 = vpop.f32.mrf.mxu1 }
 0x3ba   : > { %v4510_v3 = vadd.f32 %v4509_v21, %v4421_v45 }
 0x3bb   : > { %v4611_v49 = vpop.f32.mrf.mxu2 }
 0x3bc   : > { %v4599_v28 = vadd.f32 %v4598_v41, %v4510_v3 }
 0x3be   : > { %v4644_v22 = vmax.f32 %v4599_v28, 0.0 }
 0x3c0   : > { %v4664_v55 = vpack.c.bf16 %v4644_v22, %v4643_v4  ;;  %v4423_v17 = vpop.f32.mrf.mxu0 }
 0x3c1   : > { %v4424_v12 = vadd.f32 %v7394_v15, %v4423_v17 }
 0x3c2   : > { %5306 = vmatmul.msk.bf16.gmra.mxu3 %vm4681_vm3, %v4664_v55 }
 0x3c3   : > { %v4613_v21 = vpop.f32.mrf.mxu2 }
 0x3c4   : > { %v4769_v1 = vpop.f32.mrf.mxu3 }
 0x3c5   : > { %v4770_v8 = vadd.f32 %v7341_v18, %v4769_v1 }
 0x3c7   : > { %4831 = vxpose.xlu2.b32.cont [13/16] (narrow) %v4770_v8, 32 }
 0x3c8   : > { %v4425_v44 = vpop.f32.mrf.mxu0 }
 0x3c9   : > { %v4426_v31 = vadd.f32 %v7394_v15, %v4425_v44 }
 0x3cc   : > { %v4771_v48 = vpop.f32.mrf.mxu3 }
 0x3cd   : > { %v4772_v2 = vadd.f32 %v7341_v18, %v4771_v48 }
 0x3cf   : > { %4832 = vxpose.xlu2.b32.cont [14/16] (narrow) %v4772_v2, 32 }
 0x3d0   : > { %v4512_v34 = vpop.f32.mrf.mxu1 }
 0x3d1   : > { %v4513_v51 = vadd.f32 %v4512_v34, %v4424_v12 }
 0x3d3   : > { %v4602_v57 = vadd.f32 %v4601_v59, %v4513_v51 }
 0x3d5   : > { %v4645_v16 = vmax.f32 %v4602_v57, 0.0 }
 0x3d8   : > { %v4514_v10 = vpop.f32.mrf.mxu1 }
 0x3d9   : > { %v4515_v36 = vadd.f32 %v4514_v10, %v4426_v31 }
 0x3db   : > { %v4604_v53 = vadd.f32 %v4603_v54, %v4515_v36 }
 0x3dc   : > { %v4774_v40 = vpop.f32.mrf.mxu3 }
 0x3dd   : > { %v4646_v60 = vmax.f32 %v4604_v53, 0.0  ;;  %v4775_v38 = vadd.f32 %v7341_v18, %v4774_v40 }
 0x3df   : > { %v4665_v33 = vpack.c.bf16 %v4646_v60, %v4645_v16  ;;  %4833 = vxpose.xlu2.b32.cont [15/16] (narrow) %v4775_v38, 32 }
 0x3e0   : > { %v4428_v62 = vpop.f32.mrf.mxu0 }
 0x3e1   : > { %5307 = vmatmul.msk.bf16.gmra.mxu3 %vm4681_vm3, %v4665_v33  ;;  %v4429_v14 = vadd.f32 %v7394_v15, %v4428_v62 }
 0x3e4   : > { %v4776_v6 = vpop.f32.mrf.mxu3 }
 0x3e5   : > { %v4777_v61 = vadd.f32 %v7341_v18, %v4776_v6 }
 0x3e7   : > { %4834 = vxpose.xlu2.b32.end [16/16] (narrow) %v4777_v61, 32 }
 0x3e8   : > { %v4430_v11 = vpop.f32.mrf.mxu0 }
 0x3e9   : > { %v4431_v5 = vadd.f32 %v7394_v15, %v4430_v11 }
 0x3f0   : > { %v4517_v43 = vpop.f32.mrf.mxu1 }
 0x3f1   : > { %v4518_v19 = vadd.f32 %v4517_v43, %v4429_v14 }
 0x3f2   : > { %v4616_v17 = vpop.f32.mrf.mxu2 }
 0x3f3   : > { %v4607_v32 = vadd.f32 %v4606_v0, %v4518_v19 }
 0x3f5   : > { %v4779_v27 = vpop.f32.mrf.mxu3  ;;  %v4647_v26 = vmax.f32 %v4607_v32, 0.0 }
 0x3f6   : > { %v4780_v39 = vadd.f32 %v7341_v18, %v4779_v27 }
 0x3f8   : > { %v4519_v52 = vpop.f32.mrf.mxu1  ;;  %4851 = vxpose.xlu0.b32.start [1/16] (narrow) %v4780_v39, 32 }
 0x3f9   : > { %v4520_v37 = vadd.f32 %v4519_v52, %v4431_v5 }
 0x3fa   : > { %v4618_v36 = vpop.f32.mrf.mxu2 }
 0x3fb   : > { %v4609_v13 = vadd.f32 %v4608_v58, %v4520_v37 }
 0x3fd   : > { %v4648_v35 = vmax.f32 %v4609_v13, 0.0  ;;  %v4781_v56 = vpop.f32.mrf.mxu3 }
 0x3fe   : > { %v4782_v7 = vadd.f32 %v7341_v18, %v4781_v56 }
 0x3ff   : > { %v4666_v47 = vpack.c.bf16 %v4648_v35, %v4647_v26  ;;  %v7565_v35 = vld [vmem:[#allocation4_spill] sm:$0xff] }
 0x400   : > { %4852 = vxpose.xlu0.b32.cont [2/16] (narrow) %v4782_v7, 32  ;;  %v4433_v30 = vpop.f32.mrf.mxu0  ;;  %v7566_v56 = vmax.f32 %v7565_v35, 0.0 }
 0x401   : > { %5308 = vmatmul.msk.bf16.gmra.mxu3 %vm4681_vm3, %v4666_v47  ;;  %v4434_v29 = vadd.f32 %v7394_v15, %v4433_v30  ;;  %v7567_v30 = vld [vmem:[#allocation6_spill] sm:$0xff] }
 0x408   : > { %v4435_v9 = vpop.f32.mrf.mxu0  ;;  %v4835_v26 = vpop.trf.xlu2 }
 0x409   : > { %v4436_v23 = vadd.f32 %v7394_v15, %v4435_v9  ;;  %v4883_v7 = vadd.f32 %v4835_v26, %v7566_v56  ;;  %v7569_v9 = vld [vmem:[#allocation8_spill] sm:$0xff] }
 0x40b   : > { %4891 = vst [vmem:[%s224_s9] sm:$0xff] %v4883_v7 }
 0x410   : > { %v4522_v25 = vpop.f32.mrf.mxu1  ;;  %v4836_v47 = vpop.trf.xlu2 }
 0x411   : > { %v4523_v63 = vadd.f32 %v4522_v25, %v4434_v29 }
 0x413   : > { %v4612_v46 = vadd.f32 %v4611_v49, %v4523_v63  ;;  %v7568_v49 = vmax.f32 %v7567_v30, 0.0  ;;  %v7570_v63 = vmax.f32 %v7569_v9, 0.0 }
 0x414   : > { %v4784_v20 = vpop.f32.mrf.mxu3 }
 0x415   : > { %v4785_v42 = vadd.f32 %v7341_v18, %v4784_v20  ;;  %v4649_v3 = vmax.f32 %v4612_v46, 0.0  ;;  %v4885_v25 = vadd.f32 %v4836_v47, %v7568_v49 }
 0x417   : > { %4853 = vxpose.xlu0.b32.cont [3/16] (narrow) %v4785_v42, 32  ;;  %4893 = vst [vmem:[%s224_s9 + $0x10] sm:$0xff] %v4885_v25  ;;  %v7571_v42 = vld [vmem:[#allocation10_spill] sm:$0xff] }
 0x418   : > { %v4524_v24 = vpop.f32.mrf.mxu1  ;;  %v4837_v29 = vpop.trf.xlu2 }
 0x419   : > { %v4525_v45 = vadd.f32 %v4524_v24, %v4436_v23  ;;  %v7572_v23 = vmax.f32 %v7571_v42, 0.0 }
 0x41b   : > { %v4614_v50 = vadd.f32 %v4613_v21, %v4525_v45  ;;  %v7573_v45 = vld [vmem:[#allocation5_spill] sm:$0xff] }
 0x41c   : > { %v4786_v28 = vpop.f32.mrf.mxu3  ;;  %v7574_v21 = vmax.f32 %v7573_v45, 0.0 }
 0x41d   : > { %v4650_v41 = vmax.f32 %v4614_v50, 0.0  ;;  %v4787_v4 = vadd.f32 %v7341_v18, %v4786_v28 }
 0x41f   : > { %v4667_v22 = vpack.c.bf16 %v4650_v41, %v4649_v3  ;;  %4854 = vxpose.xlu0.b32.cont [4/16] (narrow) %v4787_v4, 32  ;;  %v7575_v41 = vld [vmem:[#allocation7_spill] sm:$0xff] }
 0x420   : > { %v4438_v55 = vpop.f32.mrf.mxu0  ;;  %v4838_v20 = vpop.trf.xlu2  ;;  %v7576_v28 = vmax.f32 %v7575_v41, 0.0 }
 0x421   : > { %5309 = vmatmul.msk.bf16.gmra.mxu3 %vm4681_vm3, %v4667_v22  ;;  %v4439_v2 = vadd.f32 %v7394_v15, %v4438_v55  ;;  %v4889_v24 = vadd.f32 %v4838_v20, %v7572_v23  ;;  %v7577_v55 = vld [vmem:[#allocation9_spill] sm:$0xff] }
 0x423   : > { %4897 = vst [vmem:[%s224_s9 + $0x30] sm:$0xff] %v4889_v24 }
 0x428   : > { %v4440_v59 = vpop.f32.mrf.mxu0 }
 0x429   : > { %v4441_v51 = vadd.f32 %v7394_v15, %v4440_v59 }
 0x42c   : > { %v4789_v1 = vpop.f32.mrf.mxu3 }
 0x42d   : > { %v4790_v8 = vadd.f32 %v7341_v18, %v4789_v1  ;;  %v7578_v1 = vmax.f32 %v7577_v55, 0.0 }
 0x42f   : > { %4855 = vxpose.xlu0.b32.cont [5/16] (narrow) %v4790_v8, 32 }
 0x430   : > { %v4527_v48 = vpop.f32.mrf.mxu1 }
 0x431   : > { %v4528_v12 = vadd.f32 %v4527_v48, %v4439_v2  ;;  %v7579_v48 = vld [vmem:[#allocation11_spill] sm:$0xff] }
 0x432   : > { %v7580_v2 = vmax.f32 %v7579_v48, 0.0 }
 0x433   : > { %v4617_v10 = vadd.f32 %v4616_v17, %v4528_v12 }
 0x434   : > { %v4791_v34 = vpop.f32.mrf.mxu3 }
 0x435   : > { %v4792_v44 = vadd.f32 %v7341_v18, %v4791_v34  ;;  %v4651_v53 = vmax.f32 %v4617_v10, 0.0 }
 0x437   : > { %4856 = vxpose.xlu0.b32.cont [6/16] (narrow) %v4792_v44, 32 }
 0x438   : > { %v4529_v31 = vpop.f32.mrf.mxu1 }
 0x439   : > { %v4530_v57 = vadd.f32 %v4529_v31, %v4441_v51 }
 0x43b   : > { %v4619_v54 = vadd.f32 %v4618_v36, %v4530_v57 }
 0x43d   : > { %v4652_v40 = vmax.f32 %v4619_v54, 0.0 }
 0x43f   : > { %v4668_v16 = vpack.c.bf16 %v4652_v40, %v4651_v53 }
 0x441   : > { %5310 = vmatmul.msk.bf16.gmra.mxu3 %vm4681_vm3, %v4668_v16 }
 0x445   : > { %v4794_v60 = vpop.f32.mrf.mxu3 }
 0x446   : > { %v4795_v38 = vadd.f32 %v7341_v18, %v4794_v60 }
 0x448   : > { %4857 = vxpose.xlu0.b32.cont [7/16] (narrow) %v4795_v38, 32 }
 0x44d   : > { %v4796_v33 = vpop.f32.mrf.mxu3 }
 0x44e   : > { %v4797_v6 = vadd.f32 %v7341_v18, %v4796_v33 }
 0x450   : > { %4858 = vxpose.xlu0.b32.cont [8/16] (narrow) %v4797_v6, 32 }
 0x464   : > { %v4799_v15 = vpop.f32.mrf.mxu3 }
 0x465   : > { %v4800_v61 = vadd.f32 %v7341_v18, %v4799_v15 }
 0x467   : > { %4859 = vxpose.xlu0.b32.cont [9/16] (narrow) %v4800_v61, 32 }
 0x46c   : > { %v4801_v62 = vpop.f32.mrf.mxu3 }
 0x46d   : > { %v4802_v0 = vadd.f32 %v7341_v18, %v4801_v62 }
 0x46f   : > { %4860 = vxpose.xlu0.b32.cont [10/16] (narrow) %v4802_v0, 32 }
 0x484   : > { %v4804_v43 = vpop.f32.mrf.mxu3 }
 0x485   : > { %v4805_v14 = vadd.f32 %v7341_v18, %v4804_v43 }
 0x487   : > { %4861 = vxpose.xlu0.b32.cont [11/16] (narrow) %v4805_v14, 32 }
 0x48c   : > { %v4806_v11 = vpop.f32.mrf.mxu3 }
 0x48d   : > { %v4807_v19 = vadd.f32 %v7341_v18, %v4806_v11 }
 0x48f   : > { %4862 = vxpose.xlu0.b32.cont [12/16] (narrow) %v4807_v19, 32 }
 0x4a4   : > { %v4809_v27 = vpop.f32.mrf.mxu3 }
 0x4a5   : > { %v4810_v39 = vadd.f32 %v7341_v18, %v4809_v27 }
 0x4a7   : > { %4863 = vxpose.xlu0.b32.cont [13/16] (narrow) %v4810_v39, 32 }
 0x4ac   : > { %v4811_v5 = vpop.f32.mrf.mxu3 }
 0x4ad   : > { %v4812_v52 = vadd.f32 %v7341_v18, %v4811_v5 }
 0x4af   : > { %4864 = vxpose.xlu0.b32.cont [14/16] (narrow) %v4812_v52, 32 }
 0x4c4   : > { %v4814_v32 = vpop.f32.mrf.mxu3 }
 0x4c5   : > { %v4815_v37 = vadd.f32 %v7341_v18, %v4814_v32 }
 0x4c7   : > { %4865 = vxpose.xlu0.b32.cont [15/16] (narrow) %v4815_v37, 32 }
 0x4cc   : > { %v4816_v58 = vpop.f32.mrf.mxu3 }
 0x4cd   : > { %v4817_v13 = vadd.f32 %v7341_v18, %v4816_v58  ;;  %v4887_v18 = vadd.f32 %v4837_v29, %v7570_v63 }
 0x4cf   : > { %4866 = vxpose.xlu0.b32.end [16/16] (narrow) %v4817_v13, 32  ;;  %4895 = vst [vmem:[%s224_s9 + $0x20] sm:$0xff] %v4887_v18 }
 0x4fb   : > { %v4867_v46 = vpop.trf.xlu0 }
 0x4fc   : > { %v4884_v50 = vadd.f32 %v4867_v46, %v7574_v21 }
 0x4fe   : > { %4892 = vst [vmem:[%s224_s9 + $0x8] sm:$0xff] %v4884_v50 }
 0x503   : > { %v4868_v3 = vpop.trf.xlu0 }
 0x504   : > { %v4886_v4 = vadd.f32 %v4868_v3, %v7576_v28 }
 0x506   : > { %4894 = vst [vmem:[%s224_s9 + $0x18] sm:$0xff] %v4886_v4 }
 0x50b   : > { %v4869_v22 = vpop.trf.xlu0 }
 0x50c   : > { %v4888_v8 = vadd.f32 %v4869_v22, %v7578_v1 }
 0x50e   : > { %4896 = vst [vmem:[%s224_s9 + $0x28] sm:$0xff] %v4888_v8 }
 0x513   : > { %v4870_v17 = vpop.trf.xlu0 }
 0x514   : > { %v4890_v59 = vadd.f32 %v4870_v17, %v7580_v2 }
 0x516   : > { %4898 = vst [vmem:[%s224_s9 + $0x38] sm:$0xff] %v4890_v59 }
 0x517 PF: > { %s15_s18 = sadd.s32 1, %s5500_s18  }
 0x518   : > { %p12_p4 = scmp.ge.s32.totalorder %s15_s18, 4  }
 0x51a   :  { %14 = sbr.rel (!%p12_p4) target bundleno = 1 (0x1), region = 72 }

</bundles_post_ra>
